<compile_context>
chip_gen: v5e
topology: v5e:2x2
jax: 0.10.0
libtpu: 0.0.40
codegen_flags: <defaults>
</compile_context>

<pallas_src>
import functools

import jax
import jax.numpy as jnp
from jax.experimental import pallas as pl
from jax.experimental.pallas import tpu as pltpu


# ----------------------------------------------------------------------------
# Pallas kernel: fused im2col + matmul + affine(+bias/BN) + ReLU, one output tile
# ----------------------------------------------------------------------------
def _conv_kernel(x_ref, w_ref, aff_ref, o_ref, *, kh, kw, sh, sw, toh, ow, relu):
    # x_ref:   (P, 1, Hph, Wph, C) bf16 phase-split padded input (whole image, resident)
    # w_ref:   (KH*KW, C, OC)      bf16 weights (resident)
    # aff_ref: (2, OC)             f32  [scale; shift] (BN affine with folded conv bias)
    # o_ref:   (1, OC, toh*OW)     output tile (NCHW-flat layout)
    oc = o_ref.shape[1]
    rows = toh * ow
    r0 = pl.program_id(1) * toh  # first output row of this tile (phase-row units)

    acc = jnp.zeros((rows, oc), jnp.float32)
    for i in range(kh):          # static unroll over kernel taps
        for j in range(kw):
            p = (i % sh) * sw + (j % sw)          # phase index (static)
            slab = x_ref[p, 0,
                         pl.ds(r0 + i // sh, toh),
                         pl.ds(j // sw, ow), :]   # (toh, OW, C) bf16
            acc = acc + jnp.dot(slab.reshape(rows, slab.shape[-1]),
                                w_ref[i * kw + j],
                                preferred_element_type=jnp.float32)

    acc = acc * aff_ref[0:1, :] + aff_ref[1:2, :]
    if relu:
        acc = jnp.maximum(acc, 0.0)
    # (rows, OC) -> (OC, rows): cheap in-VMEM transpose so the output is NCHW-flat.
    o_ref[0] = jnp.transpose(acc).astype(o_ref.dtype)


def _pick_row_block(OH, OW, C, OC, KH, KW, P, Hph, Wph, out_bytes):
    """Largest divisor of OH whose working set fits a ~40 MiB VMEM budget."""
    budget = 40 * 1024 * 1024
    fixed = 2 * P * Hph * Wph * C * 2 + 2 * KH * KW * C * OC * 2 + (2 << 20)
    per_row = 2 * OC * out_bytes + 4 * OC + 4 * C + 256
    max_rows = max((budget - fixed) // per_row, OW)
    best = OH  # full-OH block is always BlockSpec-legal (block dim == full dim)
    for d in range(OH, 0, -1):
        if OH % d:
            continue
        r = d * OW
        if r <= max_rows and (d == OH or r % 128 == 0):
            best = d
            break
    # TODO(synk): tile the H dimension of the resident input (halo DMA via
    # memory_space=pl.ANY + pltpu.make_async_copy) for feature maps too large for VMEM.
    return best


# ----------------------------------------------------------------------------
# Module-equivalent wrapper
# ----------------------------------------------------------------------------
class Conv2dPallas:
    """Pallas equivalent of the PyTorch Conv2d module (conv + optional BN + ReLU)."""

    def __init__(self, in_channels, out_channels, kernel_size, stride=1,
                 relu=True, same_padding=False, bn=False, *, key,
                 out_dtype=jnp.float32):
        self.in_channels = in_channels
        self.out_channels = out_channels
        self.kh, self.kw = kernel_size
        self.stride = (stride, stride) if isinstance(stride, int) else tuple(stride)
        p0 = int((self.kh - 1) / 2) if same_padding else 0
        p1 = int((self.kw - 1) / 2) if same_padding else 0
        self.padding = (p0, p1)
        self.relu = relu
        self.bn = bn
        self.out_dtype = out_dtype

        # Deterministic init mimicking PyTorch's kaiming-uniform (bound = 1/sqrt(fan_in)).
        kw_key, kb_key = jax.random.split(key)
        fan_in = in_channels * self.kh * self.kw
        bound = 1.0 / float(fan_in) ** 0.5
        self.weight = jax.random.uniform(          # PyTorch layout: (OC, C, KH, KW)
            kw_key, (out_channels, in_channels, self.kh, self.kw),
            minval=-bound, maxval=bound, dtype=jnp.float32)
        self.bias = jax.random.uniform(
            kb_key, (out_channels,), minval=-bound, maxval=bound, dtype=jnp.float32)

        if bn:
            # TODO(synk): eval-mode BatchNorm only (running stats mean=0, var=1,
            # gamma=1, beta=0); training-mode batch statistics are not implemented.
            eps = 1e-5
            gamma = jnp.ones((out_channels,), jnp.float32)
            beta = jnp.zeros((out_channels,), jnp.float32)
            running_mean = jnp.zeros((out_channels,), jnp.float32)
            running_var = jnp.ones((out_channels,), jnp.float32)
            bn_scale = gamma / jnp.sqrt(running_var + eps)
            bn_shift = beta - running_mean * bn_scale
        else:
            bn_scale = jnp.ones((out_channels,), jnp.float32)
            bn_shift = jnp.zeros((out_channels,), jnp.float32)

        # Fold conv bias into the affine shift: BN(conv + b) = conv*s + (b*s + t)
        self.fused_scale = bn_scale
        self.fused_shift = self.bias * bn_scale + bn_shift
        self.affine = jnp.stack([self.fused_scale, self.fused_shift], axis=0)  # (2, OC)

        # Lane-dense MXU weight: (OC, C, KH, KW) -> (KH, KW, C, OC) -> (KH*KW, C, OC) bf16.
        self.w_k = jnp.transpose(self.weight, (2, 3, 1, 0)).reshape(
            self.kh * self.kw, in_channels, out_channels).astype(jnp.bfloat16)

    def __call__(self, x):
        # x: (N, C, H, W) float32 -> (N, OC, OH, OW) out_dtype
        N, C, H, W = x.shape
        KH, KW = self.kh, self.kw
        sh, sw = self.stride
        ph, pw = self.padding
        OC = self.out_channels

        OH = (H + 2 * ph - KH) // sh + 1
        OW = (W + 2 * pw - KW) // sw + 1

        # NHWC, bf16, spatially padded (bf16 halves producer HBM traffic, feeds MXU).
        xb = jnp.transpose(x.astype(jnp.bfloat16), (0, 2, 3, 1))
        xb = jnp.pad(xb, ((0, 0), (ph, ph), (pw, pw), (0, 0)))

        # Phase split (identity for stride 1):
        #   xph[p, n, i, j, c] = padded[n, i*sh + p//sw, j*sw + p%sw, c]
        Hph = OH + (KH - 1) // sh
        Wph = OW + (KW - 1) // sw
        He, We = Hph * sh, Wph * sw
        xb = xb[:, :min(xb.shape[1], He), :min(xb.shape[2], We), :]
        xb = jnp.pad(xb, ((0, 0), (0, He - xb.shape[1]), (0, We - xb.shape[2]), (0, 0)))
        P = sh * sw
        xph = xb.reshape(N, Hph, sh, Wph, sw, C)
        xph = jnp.transpose(xph, (2, 4, 0, 1, 3, 5)).reshape(P, N, Hph, Wph, C)

        out_bytes = jnp.dtype(self.out_dtype).itemsize
        toh = _pick_row_block(OH, OW, C, OC, KH, KW, P, Hph, Wph, out_bytes)
        rows = toh * OW

        kernel = functools.partial(
            _conv_kernel, kh=KH, kw=KW, sh=sh, sw=sw, toh=toh, ow=OW, relu=self.relu)

        out = pl.pallas_call(
            kernel,
            out_shape=jax.ShapeDtypeStruct((N, OC, OH * OW), self.out_dtype),
            grid=(N, OH // toh),
            in_specs=[
                pl.BlockSpec((P, 1, Hph, Wph, C), lambda n, b: (0, n, 0, 0, 0)),
                pl.BlockSpec((KH * KW, C, OC), lambda n, b: (0, 0, 0)),
                pl.BlockSpec((2, OC), lambda n, b: (0, 0)),
            ],
            out_specs=pl.BlockSpec((1, OC, rows), lambda n, b: (n, 0, b)),
            compiler_params=pltpu.CompilerParams(
                dimension_semantics=("parallel", "parallel"),
                vmem_limit_bytes=48 * 1024 * 1024),
        )(xph, self.w_k, self.affine)

        return out.reshape(N, OC, OH, OW)


# ----------------------------------------------------------------------------
# Reference (pure JAX conv over bf16-quantized operands) for correctness
# ----------------------------------------------------------------------------
def _reference(mod: Conv2dPallas, x):
    xb = x.astype(jnp.bfloat16).astype(jnp.float32)
    wb = mod.weight.astype(jnp.bfloat16).astype(jnp.float32)
    y = jax.lax.conv_general_dilated(
        xb, wb,
        window_strides=mod.stride,
        padding=[(mod.padding[0], mod.padding[0]), (mod.padding[1], mod.padding[1])],
        dimension_numbers=("NCHW", "OIHW", "NCHW"),
        precision=jax.lax.Precision.HIGHEST,
        preferred_element_type=jnp.float32)
    y = y * mod.fused_scale[None, :, None, None] + mod.fused_shift[None, :, None, None]
    if mod.relu:
        y = jnp.maximum(y, 0.0)
    return y.astype(mod.out_dtype)


if __name__ == "__main__":
    key = jax.random.PRNGKey(0)
    kx, kp1, kp2 = jax.random.split(key, 3)

    # Small shapes: batch=2, in_channels=4, spatial=16x16, out_channels=8, 3x3 conv.
    x = jax.random.normal(kx, (2, 4, 16, 16), dtype=jnp.float32)

    # Test 1: same-padding 3x3, stride 1, ReLU, no BN.
    mod = Conv2dPallas(in_channels=4, out_channels=8, kernel_size=(3, 3),
                       stride=1, relu=True, same_padding=True, bn=False, key=kp1)
    y = mod(x)
    jax.block_until_ready(y)
    y_ref = _reference(mod, x)
    assert y.shape == (2, 8, 16, 16), y.shape
    assert jnp.allclose(y, y_ref, atol=2e-3, rtol=2e-3), \
        float(jnp.max(jnp.abs(y - y_ref)))

    # Test 2: stride 2, BN(eval), no ReLU (exercises the phase path + affine fold).
    mod2 = Conv2dPallas(in_channels=4, out_channels=8, kernel_size=(3, 3),
                        stride=2, relu=False, same_padding=True, bn=True, key=kp2)
    y2 = mod2(x)
    jax.block_until_ready(y2)
    y2_ref = _reference(mod2, x)
    assert y2.shape == (2, 8, 8, 8), y2.shape
    assert jnp.allclose(y2, y2_ref, atol=2e-3, rtol=2e-3), \
        float(jnp.max(jnp.abs(y2 - y2_ref)))

    print("KERNEL_OK")
</pallas_src>

<mosaic_0001>
module attributes {stable_mosaic.version = 11 : i64} {
  func.func @_conv_kernel(%arg0: i32, %arg1: i32, %arg2: memref<1x1x18x18x4xbf16, #tpu.memory_space<vmem>>, %arg3: memref<9x4x8xbf16, #tpu.memory_space<vmem>>, %arg4: memref<2x8xf32, #tpu.memory_space<vmem>>, %arg5: memref<1x8x256xf32, #tpu.memory_space<vmem>>) attributes {dimension_semantics = [#tpu.dimension_semantics<parallel>, #tpu.dimension_semantics<parallel>], iteration_bounds = array<i64: 2, 1>, scalar_prefetch = 0 : i64, scratch_operands = 0 : i64, tpu.core_type = #tpu.core_type<tc>, window_params = [{transform_indices = @transform_0, window_bounds = array<i64: 1, 1, 18, 18, 4>}, {pipeline_mode = #tpu.pipeline_mode<synchronous>, transform_indices = @transform_1, window_bounds = array<i64: 9, 4, 8>}, {pipeline_mode = #tpu.pipeline_mode<synchronous>, transform_indices = @transform_2, window_bounds = array<i64: 2, 8>}, {transform_indices = @transform_3, window_bounds = array<i64: 1, 8, 256>}]} {
    %c16_i32 = arith.constant 16 : i32
    %0 = arith.muli %arg1, %c16_i32 : i32
    %cst = arith.constant 0.000000e+00 : f32
    %1 = vector.broadcast %cst : f32 to vector<256x8xf32>
    %c0_i32 = arith.constant 0 : i32
    %2 = arith.addi %0, %c0_i32 : i32
    %c0 = arith.constant 0 : index
    %c0_0 = arith.constant 0 : index
    %3 = arith.index_cast %2 : i32 to index
    %c0_1 = arith.constant 0 : index
    %c0_2 = arith.constant 0 : index
    %4 = vector.load %arg2[%c0, %c0_0, %3, %c0_1, %c0_2] : memref<1x1x18x18x4xbf16, #tpu.memory_space<vmem>>, vector<1x1x16x16x4xbf16>
    %5 = vector.shape_cast %4 : vector<1x1x16x16x4xbf16> to vector<16x16x4xbf16>
    %6 = vector.shape_cast %5 : vector<16x16x4xbf16> to vector<256x4xbf16>
    %c0_3 = arith.constant 0 : index
    %c0_4 = arith.constant 0 : index
    %c0_5 = arith.constant 0 : index
    %7 = vector.load %arg3[%c0_3, %c0_4, %c0_5] : memref<9x4x8xbf16, #tpu.memory_space<vmem>>, vector<1x4x8xbf16>
    %8 = vector.shape_cast %7 : vector<1x4x8xbf16> to vector<4x8xbf16>
    %cst_6 = arith.constant dense<0.000000e+00> : vector<256x8xf32>
    %9 = tpu.matmul %6, %8, %cst_6 {dimension_numbers = #tpu.dot_dimension_numbers<[1], [0], [0], [1], [0, 0, 1, 1], [], []>} : vector<256x4xbf16>, vector<4x8xbf16>, vector<256x8xf32> -> vector<256x8xf32>
    %10 = arith.addf %1, %9 : vector<256x8xf32>
    %c0_i32_7 = arith.constant 0 : i32
    %11 = arith.addi %0, %c0_i32_7 : i32
    %c0_8 = arith.constant 0 : index
    %c0_9 = arith.constant 0 : index
    %12 = arith.index_cast %11 : i32 to index
    %c1 = arith.constant 1 : index
    %c0_10 = arith.constant 0 : index
    %13 = vector.load %arg2[%c0_8, %c0_9, %12, %c1, %c0_10] : memref<1x1x18x18x4xbf16, #tpu.memory_space<vmem>>, vector<1x1x16x16x4xbf16>
    %14 = vector.shape_cast %13 : vector<1x1x16x16x4xbf16> to vector<16x16x4xbf16>
    %15 = vector.shape_cast %14 : vector<16x16x4xbf16> to vector<256x4xbf16>
    %c1_11 = arith.constant 1 : index
    %c0_12 = arith.constant 0 : index
    %c0_13 = arith.constant 0 : index
    %16 = vector.load %arg3[%c1_11, %c0_12, %c0_13] : memref<9x4x8xbf16, #tpu.memory_space<vmem>>, vector<1x4x8xbf16>
    %17 = vector.shape_cast %16 : vector<1x4x8xbf16> to vector<4x8xbf16>
    %cst_14 = arith.constant dense<0.000000e+00> : vector<256x8xf32>
    %18 = tpu.matmul %15, %17, %cst_14 {dimension_numbers = #tpu.dot_dimension_numbers<[1], [0], [0], [1], [0, 0, 1, 1], [], []>} : vector<256x4xbf16>, vector<4x8xbf16>, vector<256x8xf32> -> vector<256x8xf32>
    %19 = arith.addf %10, %18 : vector<256x8xf32>
    %c0_i32_15 = arith.constant 0 : i32
    %20 = arith.addi %0, %c0_i32_15 : i32
    %c0_16 = arith.constant 0 : index
    %c0_17 = arith.constant 0 : index
    %21 = arith.index_cast %20 : i32 to index
    %c2 = arith.constant 2 : index
    %c0_18 = arith.constant 0 : index
    %22 = vector.load %arg2[%c0_16, %c0_17, %21, %c2, %c0_18] : memref<1x1x18x18x4xbf16, #tpu.memory_space<vmem>>, vector<1x1x16x16x4xbf16>
    %23 = vector.shape_cast %22 : vector<1x1x16x16x4xbf16> to vector<16x16x4xbf16>
    %24 = vector.shape_cast %23 : vector<16x16x4xbf16> to vector<256x4xbf16>
    %c2_19 = arith.constant 2 : index
    %c0_20 = arith.constant 0 : index
    %c0_21 = arith.constant 0 : index
    %25 = vector.load %arg3[%c2_19, %c0_20, %c0_21] : memref<9x4x8xbf16, #tpu.memory_space<vmem>>, vector<1x4x8xbf16>
    %26 = vector.shape_cast %25 : vector<1x4x8xbf16> to vector<4x8xbf16>
    %cst_22 = arith.constant dense<0.000000e+00> : vector<256x8xf32>
    %27 = tpu.matmul %24, %26, %cst_22 {dimension_numbers = #tpu.dot_dimension_numbers<[1], [0], [0], [1], [0, 0, 1, 1], [], []>} : vector<256x4xbf16>, vector<4x8xbf16>, vector<256x8xf32> -> vector<256x8xf32>
    %28 = arith.addf %19, %27 : vector<256x8xf32>
    %c1_i32 = arith.constant 1 : i32
    %29 = arith.addi %0, %c1_i32 : i32
    %c0_23 = arith.constant 0 : index
    %c0_24 = arith.constant 0 : index
    %30 = arith.index_cast %29 : i32 to index
    %c0_25 = arith.constant 0 : index
    %c0_26 = arith.constant 0 : index
    %31 = vector.load %arg2[%c0_23, %c0_24, %30, %c0_25, %c0_26] : memref<1x1x18x18x4xbf16, #tpu.memory_space<vmem>>, vector<1x1x16x16x4xbf16>
    %32 = vector.shape_cast %31 : vector<1x1x16x16x4xbf16> to vector<16x16x4xbf16>
    %33 = vector.shape_cast %32 : vector<16x16x4xbf16> to vector<256x4xbf16>
    %c3 = arith.constant 3 : index
    %c0_27 = arith.constant 0 : index
    %c0_28 = arith.constant 0 : index
    %34 = vector.load %arg3[%c3, %c0_27, %c0_28] : memref<9x4x8xbf16, #tpu.memory_space<vmem>>, vector<1x4x8xbf16>
    %35 = vector.shape_cast %34 : vector<1x4x8xbf16> to vector<4x8xbf16>
    %cst_29 = arith.constant dense<0.000000e+00> : vector<256x8xf32>
    %36 = tpu.matmul %33, %35, %cst_29 {dimension_numbers = #tpu.dot_dimension_numbers<[1], [0], [0], [1], [0, 0, 1, 1], [], []>} : vector<256x4xbf16>, vector<4x8xbf16>, vector<256x8xf32> -> vector<256x8xf32>
    %37 = arith.addf %28, %36 : vector<256x8xf32>
    %c1_i32_30 = arith.constant 1 : i32
    %38 = arith.addi %0, %c1_i32_30 : i32
    %c0_31 = arith.constant 0 : index
    %c0_32 = arith.constant 0 : index
    %39 = arith.index_cast %38 : i32 to index
    %c1_33 = arith.constant 1 : index
    %c0_34 = arith.constant 0 : index
    %40 = vector.load %arg2[%c0_31, %c0_32, %39, %c1_33, %c0_34] : memref<1x1x18x18x4xbf16, #tpu.memory_space<vmem>>, vector<1x1x16x16x4xbf16>
    %41 = vector.shape_cast %40 : vector<1x1x16x16x4xbf16> to vector<16x16x4xbf16>
    %42 = vector.shape_cast %41 : vector<16x16x4xbf16> to vector<256x4xbf16>
    %c4 = arith.constant 4 : index
    %c0_35 = arith.constant 0 : index
    %c0_36 = arith.constant 0 : index
    %43 = vector.load %arg3[%c4, %c0_35, %c0_36] : memref<9x4x8xbf16, #tpu.memory_space<vmem>>, vector<1x4x8xbf16>
    %44 = vector.shape_cast %43 : vector<1x4x8xbf16> to vector<4x8xbf16>
    %cst_37 = arith.constant dense<0.000000e+00> : vector<256x8xf32>
    %45 = tpu.matmul %42, %44, %cst_37 {dimension_numbers = #tpu.dot_dimension_numbers<[1], [0], [0], [1], [0, 0, 1, 1], [], []>} : vector<256x4xbf16>, vector<4x8xbf16>, vector<256x8xf32> -> vector<256x8xf32>
    %46 = arith.addf %37, %45 : vector<256x8xf32>
    %c1_i32_38 = arith.constant 1 : i32
    %47 = arith.addi %0, %c1_i32_38 : i32
    %c0_39 = arith.constant 0 : index
    %c0_40 = arith.constant 0 : index
    %48 = arith.index_cast %47 : i32 to index
    %c2_41 = arith.constant 2 : index
    %c0_42 = arith.constant 0 : index
    %49 = vector.load %arg2[%c0_39, %c0_40, %48, %c2_41, %c0_42] : memref<1x1x18x18x4xbf16, #tpu.memory_space<vmem>>, vector<1x1x16x16x4xbf16>
    %50 = vector.shape_cast %49 : vector<1x1x16x16x4xbf16> to vector<16x16x4xbf16>
    %51 = vector.shape_cast %50 : vector<16x16x4xbf16> to vector<256x4xbf16>
    %c5 = arith.constant 5 : index
    %c0_43 = arith.constant 0 : index
    %c0_44 = arith.constant 0 : index
    %52 = vector.load %arg3[%c5, %c0_43, %c0_44] : memref<9x4x8xbf16, #tpu.memory_space<vmem>>, vector<1x4x8xbf16>
    %53 = vector.shape_cast %52 : vector<1x4x8xbf16> to vector<4x8xbf16>
    %cst_45 = arith.constant dense<0.000000e+00> : vector<256x8xf32>
    %54 = tpu.matmul %51, %53, %cst_45 {dimension_numbers = #tpu.dot_dimension_numbers<[1], [0], [0], [1], [0, 0, 1, 1], [], []>} : vector<256x4xbf16>, vector<4x8xbf16>, vector<256x8xf32> -> vector<256x8xf32>
    %55 = arith.addf %46, %54 : vector<256x8xf32>
    %c2_i32 = arith.constant 2 : i32
    %56 = arith.addi %0, %c2_i32 : i32
    %c0_46 = arith.constant 0 : index
    %c0_47 = arith.constant 0 : index
    %57 = arith.index_cast %56 : i32 to index
    %c0_48 = arith.constant 0 : index
    %c0_49 = arith.constant 0 : index
    %58 = vector.load %arg2[%c0_46, %c0_47, %57, %c0_48, %c0_49] : memref<1x1x18x18x4xbf16, #tpu.memory_space<vmem>>, vector<1x1x16x16x4xbf16>
    %59 = vector.shape_cast %58 : vector<1x1x16x16x4xbf16> to vector<16x16x4xbf16>
    %60 = vector.shape_cast %59 : vector<16x16x4xbf16> to vector<256x4xbf16>
    %c6 = arith.constant 6 : index
    %c0_50 = arith.constant 0 : index
    %c0_51 = arith.constant 0 : index
    %61 = vector.load %arg3[%c6, %c0_50, %c0_51] : memref<9x4x8xbf16, #tpu.memory_space<vmem>>, vector<1x4x8xbf16>
    %62 = vector.shape_cast %61 : vector<1x4x8xbf16> to vector<4x8xbf16>
    %cst_52 = arith.constant dense<0.000000e+00> : vector<256x8xf32>
    %63 = tpu.matmul %60, %62, %cst_52 {dimension_numbers = #tpu.dot_dimension_numbers<[1], [0], [0], [1], [0, 0, 1, 1], [], []>} : vector<256x4xbf16>, vector<4x8xbf16>, vector<256x8xf32> -> vector<256x8xf32>
    %64 = arith.addf %55, %63 : vector<256x8xf32>
    %c2_i32_53 = arith.constant 2 : i32
    %65 = arith.addi %0, %c2_i32_53 : i32
    %c0_54 = arith.constant 0 : index
    %c0_55 = arith.constant 0 : index
    %66 = arith.index_cast %65 : i32 to index
    %c1_56 = arith.constant 1 : index
    %c0_57 = arith.constant 0 : index
    %67 = vector.load %arg2[%c0_54, %c0_55, %66, %c1_56, %c0_57] : memref<1x1x18x18x4xbf16, #tpu.memory_space<vmem>>, vector<1x1x16x16x4xbf16>
    %68 = vector.shape_cast %67 : vector<1x1x16x16x4xbf16> to vector<16x16x4xbf16>
    %69 = vector.shape_cast %68 : vector<16x16x4xbf16> to vector<256x4xbf16>
    %c7 = arith.constant 7 : index
    %c0_58 = arith.constant 0 : index
    %c0_59 = arith.constant 0 : index
    %70 = vector.load %arg3[%c7, %c0_58, %c0_59] : memref<9x4x8xbf16, #tpu.memory_space<vmem>>, vector<1x4x8xbf16>
    %71 = vector.shape_cast %70 : vector<1x4x8xbf16> to vector<4x8xbf16>
    %cst_60 = arith.constant dense<0.000000e+00> : vector<256x8xf32>
    %72 = tpu.matmul %69, %71, %cst_60 {dimension_numbers = #tpu.dot_dimension_numbers<[1], [0], [0], [1], [0, 0, 1, 1], [], []>} : vector<256x4xbf16>, vector<4x8xbf16>, vector<256x8xf32> -> vector<256x8xf32>
    %73 = arith.addf %64, %72 : vector<256x8xf32>
    %c2_i32_61 = arith.constant 2 : i32
    %74 = arith.addi %0, %c2_i32_61 : i32
    %c0_62 = arith.constant 0 : index
    %c0_63 = arith.constant 0 : index
    %75 = arith.index_cast %74 : i32 to index
    %c2_64 = arith.constant 2 : index
    %c0_65 = arith.constant 0 : index
    %76 = vector.load %arg2[%c0_62, %c0_63, %75, %c2_64, %c0_65] : memref<1x1x18x18x4xbf16, #tpu.memory_space<vmem>>, vector<1x1x16x16x4xbf16>
    %77 = vector.shape_cast %76 : vector<1x1x16x16x4xbf16> to vector<16x16x4xbf16>
    %78 = vector.shape_cast %77 : vector<16x16x4xbf16> to vector<256x4xbf16>
    %c8 = arith.constant 8 : index
    %c0_66 = arith.constant 0 : index
    %c0_67 = arith.constant 0 : index
    %79 = vector.load %arg3[%c8, %c0_66, %c0_67] : memref<9x4x8xbf16, #tpu.memory_space<vmem>>, vector<1x4x8xbf16>
    %80 = vector.shape_cast %79 : vector<1x4x8xbf16> to vector<4x8xbf16>
    %cst_68 = arith.constant dense<0.000000e+00> : vector<256x8xf32>
    %81 = tpu.matmul %78, %80, %cst_68 {dimension_numbers = #tpu.dot_dimension_numbers<[1], [0], [0], [1], [0, 0, 1, 1], [], []>} : vector<256x4xbf16>, vector<4x8xbf16>, vector<256x8xf32> -> vector<256x8xf32>
    %82 = arith.addf %73, %81 : vector<256x8xf32>
    %c0_69 = arith.constant 0 : index
    %c0_70 = arith.constant 0 : index
    %83 = vector.load %arg4[%c0_69, %c0_70] : memref<2x8xf32, #tpu.memory_space<vmem>>, vector<1x8xf32>
    %84 = vector.broadcast %83 : vector<1x8xf32> to vector<256x8xf32>
    %85 = arith.mulf %82, %84 : vector<256x8xf32>
    %c1_71 = arith.constant 1 : index
    %c0_72 = arith.constant 0 : index
    %86 = vector.load %arg4[%c1_71, %c0_72] : memref<2x8xf32, #tpu.memory_space<vmem>>, vector<1x8xf32>
    %87 = vector.broadcast %86 : vector<1x8xf32> to vector<256x8xf32>
    %88 = arith.addf %85, %87 : vector<256x8xf32>
    %cst_73 = arith.constant 0.000000e+00 : f32
    %89 = vector.broadcast %cst_73 : f32 to vector<256x8xf32>
    %90 = arith.maximumf %88, %89 : vector<256x8xf32>
    %91 = tpu.transpose %90, [1, 0] : vector<256x8xf32> -> vector<8x256xf32>
    %c0_74 = arith.constant 0 : index
    %c0_75 = arith.constant 0 : index
    %c0_76 = arith.constant 0 : index
    %92 = vector.load %arg5[%c0_74, %c0_75, %c0_76] : memref<1x8x256xf32, #tpu.memory_space<vmem>>, vector<1x8x256xf32>
    %93 = vector.shape_cast %92 : vector<1x8x256xf32> to vector<8x256xf32>
    %94 = vector.shape_cast %91 : vector<8x256xf32> to vector<1x8x256xf32>
    tpu.vector_store %arg5[%c0_74, %c0_75, %c0_76], %94 {strides = array<i32>} : memref<1x8x256xf32, #tpu.memory_space<vmem>>, vector<1x8x256xf32>,
    return
  }
  func.func @transform_0(%arg0: i32, %arg1: i32) -> (i32, i32, i32, i32, i32) {
    %c0_i32 = arith.constant 0 : i32
    %c0_i32_0 = arith.constant 0 : i32
    %c0_i32_1 = arith.constant 0 : i32
    %c0_i32_2 = arith.constant 0 : i32
    %c0_i32_3 = arith.constant 0 : i32
    return %c0_i32, %arg0, %c0_i32_0, %c0_i32_1, %c0_i32_2 : i32, i32, i32, i32, i32
  }
  func.func @transform_1(%arg0: i32, %arg1: i32) -> (i32, i32, i32) {
    %c0_i32 = arith.constant 0 : i32
    %c0_i32_0 = arith.constant 0 : i32
    %c0_i32_1 = arith.constant 0 : i32
    %c0_i32_2 = arith.constant 0 : i32
    return %c0_i32, %c0_i32_0, %c0_i32_1 : i32, i32, i32
  }
  func.func @transform_2(%arg0: i32, %arg1: i32) -> (i32, i32) {
    %c0_i32 = arith.constant 0 : i32
    %c0_i32_0 = arith.constant 0 : i32
    %c0_i32_1 = arith.constant 0 : i32
    return %c0_i32, %c0_i32_0 : i32, i32
  }
  func.func @transform_3(%arg0: i32, %arg1: i32) -> (i32, i32, i32) {
    %c0_i32 = arith.constant 0 : i32
    %c0_i32_0 = arith.constant 0 : i32
    return %arg0, %c0_i32, %arg1 : i32, i32, i32
  }
}

</mosaic_0001>

<bundles_post_ra>
// kernel: tpu_custom_call.1
= control target key start
LH: loop header
LB: loop body
LE: loop exit
PB: predicated region body
PF: predicated region fallthrough
CT: control target
= control target key end

     0   :  { %8 = vsyncpa [#allocation3], 0  ;;  %s6690_s0 = inlined_call_operand.vmem [shape: bf16[1,2,18,18,4], index: 0, kind: input, shape index: {}]   ;;  %s6691_s1 = inlined_call_operand.vmem [shape: bf16[9,4,8], index: 1, kind: input, shape index: {}]   ;;  %s6692_s2 = inlined_call_operand.vmem [shape: f32[2,8], index: 2, kind: input, shape index: {}]   ;;  %s6693_s3 = inlined_call_operand.hbm [shape: f32[2,8,256], index: 3, kind: output, shape index: {}]  }
   0x1   :  { %10 = vsyncpa [#allocation3 + $0x1], 0  ;;  %s5229_s12 = smov 0   ;;  %s5231_s13 = smov 0  }
   0x2   :  { %s5233_s14 = smov 0   ;;  %s5235_s15 = smov 0  }
   0x3   :  { %s5237_s16 = smov 0   ;;  %s5239_s17 = smov 0  }
   0x4 LB: > { %s4371_s18 = sadd.s32 4294967295, %s5207_s17   ;;  %s4372_s19 = sadd.s32 4294967294, %s5207_s17   ;;  %s5207_s17 = sphi %s5239_s17, %s16_s17   ;;  %s5203_s16 = sphi %s5237_s16, %s6710_s16   ;;  %s5199_s15 = sphi %s5235_s15, %s6709_s15   ;;  %s5195_s14 = sphi %s5233_s14, %s6708_s14   ;;  %s5191_s13 = sphi %s5231_s13, %s6707_s13   ;;  %s5187_s12 = sphi %s5229_s12, %s6706_s12  }
   0x5   : > { %s28_s20 = sadd.s32 1, %s5203_s16  ;;  %s105_s21 = sadd.s32 1, %s5195_s14 }
   0x6   : > { %p30_p0 = scmp.ge.s32.totalorder %s28_s20, 2  ;;  %p115_p1 = scmp.ne.s32.totalorder %s5195_s14, %s5191_s13 }
   0x7   : > { %p116_p2 = scmp.eq.s32.totalorder %s4371_s18, 1  ;;  %p121_p3 = scmp.ne.s32.totalorder %s5191_s13, %s5187_s12 }
   0x8   : > { %s6712_s20 = smov (%p30_p0, %s28_s20), 0  ;;  %p122_p5 = scmp.eq.s32.totalorder %s4372_s19, 1 }
   0x9   : > { %p5269_p4 = por %p116_p2, %p115_p1  ;;  %s100_s23 = ssub.s32 %s5203_s16, %s6712_s20 }
   0xa   : > { %p4375_p6 = scmp.ge.s32.totalorder %s5207_s17, 1  ;;  %p103_p7 = scmp.eq.s32.totalorder %s100_s23, 0 }
   0xb   : > { %p5276_p8 = por %p122_p5, %p121_p3  ;;  %p154_p9 = scmp.lt.s32.totalorder %s5207_s17, 3 }
   0xc   : > { %s5282_s25 = scalar_select %p103_p7, %s5195_s14, %s105_s21  }
   0xd   : > { %p155_p10 = pnand %p4375_p6, %p154_p9 }
   0xf   : > { %158 = sbr.rel (%p155_p10) target bundleno = 817 (0x331), region = 32 }
  0x14   : > { %v4378_v0 = vld [vmem:[%s6691_s1 + $0x2] sm:$0x3]  ;;  %vm724_vm0 = vcmask 1041408   ;;  %p178_p11 = scmp.lt.s32.totalorder %s5199_s15, 1  ;;  %v4491_v2 = vld [vmem:[%s6691_s1 + $0x4] sm:$0x3] }
  0x15   : > { %v726_v1 = vsel %vm724_vm0, %v4378_v0, 0  ;;  %v1299_v3 = vsel %vm724_vm0, %v4491_v2, 0  ;;  %v4540_v4 = vld [vmem:[%s6691_s1 + $0x6] sm:$0x3]  ;;  %v221_v5 = vld [vmem:[%s6691_s1] sm:$0x3] }
  0x16   : > { %5016 = vmatpush.bf16.msra.mxu1 %v726_v1  ;;  %5017 = vmatpush.bf16.msra.mxu2 %v726_v1  ;;  %s179_s30 = scalar_select %p178_p11, %s5199_s15, 1  ;;  %v4669_v6 = vld [vmem:[%s6691_s1 + $0x8] sm:$0x3]  ;;  %v1589_v7 = vsel %vm724_vm0, %v4540_v4, 0  ;;  %v946_v8 = vsel %vm724_vm0, %v221_v5, 0  ;;  %vm675_vm4 = vcmask 31744  }
  0x17   : > { %5018 = vmatpush.bf16.msra.mxu3 %v726_v1  ;;  %735 = vmatpush.bf16.msra.mxu0 %v726_v1  ;;  %v2243_v9 = vsel %vm724_vm0, %v4669_v6, 0  ;;  %vm238_vm1 = vsmask.f32 3328  ;;  %vm239_vm2 = vsmask.f32 7440  ;;  %vm1085_vm5 = vcmask 1042432  }
  0x18   : > { %s5019_s10 = smul.u32 216, %s179_s30  ;;  %vm5321_vm3 = vmor %vm238_vm1, %vm239_vm2  ;;  %vm1086_vm6 = vcmask 1046532   ;;  %s5015_s26 = sshll.u32 %s5199_s15, 4 }
  0x19   : > { %vm5495_vm7 = vmor %vm1085_vm5, %vm1086_vm6  ;;  %s4286_s29 = scalar_lea.hbm %s6693_s3, %s5015_s26  ;;  %s5149_s9 = scalar_lea.hbm %s6693_s3, 32 }
  0x1a   : > { %1308 = vmatpush.bf16.msrb.mxu2 %v1299_v3  ;;  %955 = vmatpush.bf16.msrb.mxu1 %v946_v8  ;;  %s5309_s19 = scalar_lea.vmem %s6690_s0, %s5019_s10  ;;  %s4290_s4 = sshll.u32 %s4286_s29, 4  ;;  %s4291_s4 = int_to_ptr.hbm [resolvable:$true] %s4290_s4 }
  0x1b   : > { %1598 = vmatpush.bf16.msrb.mxu3 %v1589_v7  ;;  %2252 = vmatpush.bf16.msrb.mxu0 %v2243_v9  ;;  %v197_v10 = vld [vmem:[%s5309_s19 + $0x30] sm:$0xf]  ;;  %v198_v11 = vld [vmem:[%s5309_s19 + $0x34] sm:$0xf]  ;;  %v226_v12 = vld [vmem:[%s5309_s19 + $0x38] sm:$0x1] }
  0x1c   : > { %v338_v13 = vshrl.u32 %v197_v10, 16  ;;  %v341_v14 = vshll.u32 %v197_v10, 16  ;;  %v347_v15 = vshll.u32 %v198_v11, 16  ;;  %v351_v16 = vshrl.u32 %v198_v11, 16  ;;  %v205_v17 = vld [vmem:[%s5309_s19 + $0x60] sm:$0xf] }
  0x1d   : > { %v357_v18 = vshll.u32 %v226_v12, 16  ;;  %v206_v19 = vld [vmem:[%s5309_s19 + $0x64] sm:$0xf]  ;;  %v230_v20 = vld [vmem:[%s5309_s19 + $0x68] sm:$0x1]  ;;  %v434_v21 = vshrl.u32 %v205_v17, 16 }
  0x1e   : > { %v340_v22 = vrot.slane %v338_v13, 4  ;;  %v343_v23 = vrot.slane %v341_v14, 5  ;;  %v349_v24 = vrot.slane %v347_v15, 5  ;;  %v353_v25 = vrot.slane %v351_v16, 4  ;;  %v213_v26 = vld [vmem:[%s5309_s19 + $0x90] sm:$0xf] }
  0x1f   : > { %v359_v27 = vrot.slane %v357_v18, 5  ;;  %v436_v28 = vrot.slane %v434_v21, 4  ;;  %v437_v29 = vshll.u32 %v205_v17, 16  ;;  %v443_v30 = vshll.u32 %v206_v19, 16  ;;  %v214_v35 = vld [vmem:[%s5309_s19 + $0x94] sm:$0xf] }
  0x20   : > { %v344_v31 = vor.u32 %v343_v23, %v340_v22  ;;  %v354_v32 = vor.u32 %v353_v25, %v349_v24  ;;  %v447_v33 = vshrl.u32 %v206_v19, 16  ;;  %v453_v34 = vshll.u32 %v230_v20, 16  ;;  %v234_v45 = vld [vmem:[%s5309_s19 + $0x98] sm:$0x1]  ;;  %v189_v61 = vld [vmem:[%s5309_s19] sm:$0xf] }
  0x21   : > { %v439_v37 = vrot.slane %v437_v29, 5  ;;  %v445_v38 = vrot.slane %v443_v30, 5  ;;  %v530_v39 = vshrl.u32 %v213_v26, 16  ;;  %v533_v47 = vshll.u32 %v213_v26, 16  ;;  %v5334_v1 = vld [vmem:[%s5309_s19 + $0x4] sm:$0xf] }
  0x22   : > { %v345_v40 = vrot.slane %v344_v31, 4  ;;  %v355_v41 = vrot.slane %v354_v32, 4  ;;  %v449_v42 = vrot.slane %v447_v33, 4  ;;  %v455_v43 = vrot.slane %v453_v34, 5  ;;  %v5337_v2 = vld [vmem:[%s5309_s19 + $0x8] sm:$0x1] }
  0x23   : > { %v440_v44 = vor.u32 %v439_v37, %v436_v28  ;;  %v532_v46 = vrot.slane %v530_v39, 4  ;;  %v539_v48 = vshll.u32 %v214_v35, 16  ;;  %v543_v52 = vshrl.u32 %v214_v35, 16  ;;  %v199_v19 = vld [vmem:[%s5309_s19 + $0x3c] sm:$0xf]  ;;  %s5143_s6 = sshra.s32 %s4291_s4, 4  ;;  %s5144_s6 = int_to_ptr.hbm [resolvable:$true] %s5143_s6 }
  0x24   : > { %v350_v49 = vsel %vm5321_vm3, %v345_v40, %v349_v24  ;;  %v360_v50 = vsel %vm5321_vm3, %v355_v41, %v359_v27  ;;  %v450_v51 = vor.u32 %v449_v42, %v445_v38  ;;  %v535_v56 = vrot.slane %v533_v47, 5  ;;  %v5349_v20 = vld [vmem:[%s5309_s19 + $0x40] sm:$0xf]  ;;  %v5354_v25 = vld [vmem:[%s5309_s19 + $0x44] sm:$0x1]  ;;  %s5145_s7 = scalar_lea.hbm %s5144_s6, 16  ;;  %p5150_p1 = scmp.lt.s32.totalorder %s5144_s6, %s6693_s3 }
  0x25   : > { %v635_v53 = vunpack.c.l.b16 %v350_v49  ;;  %v636_v54 = vunpack.c.l.b16 %v360_v50  ;;  %v441_v55 = vrot.slane %v440_v44, 4  ;;  %v541_v58 = vrot.slane %v539_v48, 5  ;;  %v207_v33 = vld [vmem:[%s5309_s19 + $0x6c] sm:$0xf]  ;;  %v231_v47 = vld [vmem:[%s5309_s19 + $0x74] sm:$0x1]  ;;  %p5146_p12 = scmp.ne.s32.totalorder %s5144_s6, %s5145_s7  ;;  %p5151_p2 = scmp.lt.s32.totalorder %s5149_s9, %s5145_s7 }
  0x26   : > { %v451_v57 = vrot.slane %v450_v51, 4  ;;  %v545_v59 = vrot.slane %v543_v52, 4  ;;  %v549_v60 = vshll.u32 %v234_v45, 16  ;;  %v536_v0 = vor.u32 %v535_v56, %v532_v46 }
  0x27   : > { %v663_v62 = vpack.c.b16 %v636_v54, %v635_v53  ;;  %v446_v63 = vsel %vm5321_vm3, %v441_v55, %v445_v38  ;;  %v242_v9 = vshrl.u32 %v189_v61, 16  ;;  %v245_v10 = vshll.u32 %v189_v61, 16  ;;  %v215_v61 = vld [vmem:[%s5309_s19 + $0x9c] sm:$0xf]  ;;  %p5147_p13 = pnand %p5146_p12, %p5269_p4  ;;  %p5152_p3 = por %p5151_p2, %p5150_p1 }
  0x28   : > { %v456_v3 = vsel %vm5321_vm3, %v451_v57, %v455_v43  ;;  %v643_v4 = vunpack.c.l.b16 %v446_v63  ;;  %v546_v5 = vor.u32 %v545_v59, %v541_v58  ;;  %v551_v6 = vrot.slane %v549_v60, 5  ;;  %v208_v43 = vld [vmem:[%s5309_s19 + $0x70] sm:$0xf] }
  0x29   : > { %4383 = vmatmul.msk.bf16.vlgmr.msra.gmra.mxu1 %vm675_vm4, %v663_v62  ;;  %v644_v7 = vunpack.c.l.b16 %v456_v3  ;;  %v537_v8 = vrot.slane %v536_v0, 4  ;;  %v251_v12 = vshll.u32 %v5334_v1, 16  ;;  %v255_v13 = vshrl.u32 %v5334_v1, 16  ;;  %v216_v3 = vld [vmem:[%s5309_s19 + $0xa0] sm:$0xf]  ;;  %p5148_p0 = pneg %p5147_p13 }
  0x2a   : > { %v547_v11 = vrot.slane %v546_v5, 4  ;;  %v261_v14 = vshll.u32 %v5337_v2, 16  ;;  %v244_v17 = vrot.slane %v242_v9, 4  ;;  %v247_v18 = vrot.slane %v245_v10, 5 }
  0x2b   : > { %v667_v15 = vpack.c.b16 %v644_v7, %v643_v4  ;;  %v542_v16 = vsel %vm5321_vm3, %v537_v8, %v541_v58  ;;  %v253_v23 = vrot.slane %v251_v12, 5  ;;  %v257_v24 = vrot.slane %v255_v13, 4  ;;  %v235_v8 = vld [vmem:[%s5309_s19 + $0xa4] sm:$0x1]  ;;  %p5153_p5 = pnand %p5152_p3, %p5148_p0 }
  0x2c   : > { %v552_v21 = vsel %vm5321_vm3, %v547_v11, %v551_v6  ;;  %v651_v22 = vunpack.c.l.b16 %v542_v16  ;;  %v248_v27 = vor.u32 %v247_v18, %v244_v17  ;;  %v263_v28 = vrot.slane %v261_v14, 5 }
  0x2d   : > { %4387 = vmatmul.msk.bf16.vlgmr.msra.gmra.mxu2 %vm675_vm4, %v667_v15  ;;  %v652_v26 = vunpack.c.l.b16 %v552_v21  ;;  %v258_v29 = vor.u32 %v257_v24, %v253_v23  ;;  %v362_v30 = vshrl.u32 %v199_v19, 16  ;;  %v365_v31 = vshll.u32 %v199_v19, 16 }
  0x2e   : > { %v371_v32 = vshll.u32 %v5349_v20, 16  ;;  %v249_v35 = vrot.slane %v248_v27, 4  ;;  %v375_v37 = vshrl.u32 %v5349_v20, 16  ;;  %v381_v38 = vshll.u32 %v5354_v25, 16 }
  0x2f   : > { %v671_v34 = vpack.c.b16 %v652_v26, %v651_v22  ;;  %v259_v39 = vrot.slane %v258_v29, 4  ;;  %v364_v40 = vrot.slane %v362_v30, 4  ;;  %v367_v41 = vrot.slane %v365_v31, 5  ;;  %v191_v22 = vld [vmem:[%s5309_s19 + $0xc] sm:$0xf] }
  0x30   : > { %v373_v42 = vrot.slane %v371_v32, 5  ;;  %v254_v44 = vsel %vm5321_vm3, %v249_v35, %v253_v23  ;;  %v377_v45 = vrot.slane %v375_v37, 4  ;;  %v383_v46 = vrot.slane %v381_v38, 5  ;;  %v5383_v32 = vld [vmem:[%s5309_s19 + $0x14] sm:$0x1] }
  0x31   : > { %4391 = vmatmul.msk.bf16.vlgmr.msra.gmra.mxu3 %vm675_vm4, %v671_v34  ;;  %v458_v48 = vshrl.u32 %v207_v33, 16  ;;  %v264_v49 = vsel %vm5321_vm3, %v259_v39, %v263_v28  ;;  %v627_v50 = vunpack.c.l.b16 %v254_v44  ;;  %v368_v51 = vor.u32 %v367_v41, %v364_v40  ;;  %v5380_v28 = vld [vmem:[%s5309_s19 + $0x10] sm:$0xf] }
  0x32   : > { %v461_v52 = vshll.u32 %v207_v33, 16  ;;  %v628_v53 = vunpack.c.l.b16 %v264_v49  ;;  %v378_v54 = vor.u32 %v377_v45, %v373_v42  ;;  %v467_v56 = vshll.u32 %v208_v43, 16 }
  0x33   : > { %v460_v55 = vrot.slane %v458_v48, 4  ;;  %v369_v57 = vrot.slane %v368_v51, 4  ;;  %v471_v59 = vshrl.u32 %v208_v43, 16  ;;  %v477_v60 = vshll.u32 %v231_v47, 16  ;;  %v5393_v47 = vld [vmem:[%s5309_s19 + $0x4c] sm:$0xf] }
  0x34   : > { %v463_v58 = vrot.slane %v461_v52, 5  ;;  %v659_v62 = vpack.c.b16 %v628_v53, %v627_v50  ;;  %v379_v63 = vrot.slane %v378_v54, 4  ;;  %v469_v0 = vrot.slane %v467_v56, 5  ;;  %v5398_v56 = vld [vmem:[%s5309_s19 + $0x50] sm:$0x1] }
  0x35   : > { %v374_v4 = vsel %vm5321_vm3, %v369_v57, %v373_v42  ;;  %v473_v6 = vrot.slane %v471_v59, 4  ;;  %v479_v7 = vrot.slane %v477_v60, 5  ;;  %v554_v11 = vshrl.u32 %v215_v61, 16  ;;  %v201_v42 = vld [vmem:[%s5309_s19 + $0x48] sm:$0xf] }
  0x36   : > { %v464_v5 = vor.u32 %v463_v58, %v460_v55  ;;  %4379 = vmatmul.msk.bf16.vlgmr.msra.gmra.mxu0 %vm675_vm4, %v659_v62  ;;  %v384_v9 = vsel %vm5321_vm3, %v379_v63, %v383_v46  ;;  %v637_v10 = vunpack.c.l.b16 %v374_v4  ;;  %v557_v12 = vshll.u32 %v215_v61, 16 }
  0x37   : > { %v638_v13 = vunpack.c.l.b16 %v384_v9  ;;  %v474_v15 = vor.u32 %v473_v6, %v469_v0  ;;  %v563_v16 = vshll.u32 %v216_v3, 16  ;;  %v556_v17 = vrot.slane %v554_v11, 4 }
  0x38   : > { %v465_v14 = vrot.slane %v464_v5, 4  ;;  %v559_v18 = vrot.slane %v557_v12, 5  ;;  %v567_v19 = vshrl.u32 %v216_v3, 16  ;;  %v573_v21 = vshll.u32 %v235_v8, 16  ;;  %v209_v3 = vld [vmem:[%s5309_s19 + $0x78] sm:$0xf] }
  0x39   : > { %v664_v23 = vpack.c.b16 %v638_v13, %v637_v10  ;;  %v475_v26 = vrot.slane %v474_v15, 4  ;;  %v565_v27 = vrot.slane %v563_v16, 5  ;;  %v266_v35 = vshrl.u32 %v191_v22, 16  ;;  %v210_v8 = vld [vmem:[%s5309_s19 + $0x7c] sm:$0xf] }
  0x3a   : > { %v470_v24 = vsel %vm5321_vm3, %v465_v14, %v469_v0  ;;  %v560_v30 = vor.u32 %v559_v18, %v556_v17  ;;  %v569_v31 = vrot.slane %v567_v19, 4  ;;  %v575_v34 = vrot.slane %v573_v21, 5  ;;  %v232_v16 = vld [vmem:[%s5309_s19 + $0x80] sm:$0x1] }
  0x3b   : > { %v645_v29 = vunpack.c.l.b16 %v470_v24  ;;  %4384 = vmatmul.msk.bf16.gmra.mxu1 %vm675_vm4, %v664_v23  ;;  %v480_v33 = vsel %vm5321_vm3, %v475_v26, %v479_v7  ;;  %v269_v37 = vshll.u32 %v191_v22, 16  ;;  %v275_v41 = vshll.u32 %v5380_v28, 16 }
  0x3c   : > { %v646_v38 = vunpack.c.l.b16 %v480_v33  ;;  %v561_v39 = vrot.slane %v560_v30, 4  ;;  %v570_v40 = vor.u32 %v569_v31, %v565_v27  ;;  %v268_v43 = vrot.slane %v266_v35, 4 }
  0x3d   : > { %v271_v44 = vrot.slane %v269_v37, 5  ;;  %v279_v45 = vshrl.u32 %v5380_v28, 16  ;;  %v285_v46 = vshll.u32 %v5383_v32, 16  ;;  %v277_v51 = vrot.slane %v275_v41, 5 }
  0x3e   : > { %v668_v48 = vpack.c.b16 %v646_v38, %v645_v29  ;;  %v566_v49 = vsel %vm5321_vm3, %v561_v39, %v565_v27  ;;  %v571_v50 = vrot.slane %v570_v40, 4  ;;  %v386_v58 = vshrl.u32 %v201_v42, 16  ;;  %v218_v39 = vld [vmem:[%s5309_s19 + $0xac] sm:$0xf]  ;;  %v236_v40 = vld [vmem:[%s5309_s19 + $0xb0] sm:$0x1] }
  0x3f   : > { %v653_v52 = vunpack.c.l.b16 %v566_v49  ;;  %v272_v53 = vor.u32 %v271_v44, %v268_v43  ;;  %v281_v54 = vrot.slane %v279_v45, 4  ;;  %v287_v55 = vrot.slane %v285_v46, 5 }
  0x40   : > { %4388 = vmatmul.msk.bf16.gmra.mxu2 %vm675_vm4, %v668_v48  ;;  %v576_v57 = vsel %vm5321_vm3, %v571_v50, %v575_v34  ;;  %v389_v59 = vshll.u32 %v201_v42, 16  ;;  %v395_v60 = vshll.u32 %v5393_v47, 16  ;;  %v399_v0 = vshrl.u32 %v5393_v47, 16  ;;  %v217_v34 = vld [vmem:[%s5309_s19 + $0xa8] sm:$0xf] }
  0x41   : > { %v654_v61 = vunpack.c.l.b16 %v576_v57  ;;  %v273_v62 = vrot.slane %v272_v53, 4  ;;  %v282_v63 = vor.u32 %v281_v54, %v277_v51  ;;  %v388_v4 = vrot.slane %v386_v58, 4 }
  0x42   : > { %v391_v5 = vrot.slane %v389_v59, 5  ;;  %v397_v6 = vrot.slane %v395_v60, 5  ;;  %v405_v7 = vshll.u32 %v5398_v56, 16  ;;  %v401_v12 = vrot.slane %v399_v0, 4  ;;  %v193_v59 = vld [vmem:[%s5309_s19 + $0x18] sm:$0xf] }
  0x43   : > { %v672_v9 = vpack.c.b16 %v654_v61, %v653_v52  ;;  %v278_v10 = vsel %vm5321_vm3, %v273_v62, %v277_v51  ;;  %v283_v11 = vrot.slane %v282_v63, 4  ;;  %v482_v17 = vshrl.u32 %v209_v3, 16  ;;  %v5426_v63 = vld [vmem:[%s5309_s19 + $0x1c] sm:$0xf]  ;;  %v5429_v0 = vld [vmem:[%s5309_s19 + $0x20] sm:$0x1] }
  0x44   : > { %v629_v13 = vunpack.c.l.b16 %v278_v10  ;;  %v392_v14 = vor.u32 %v391_v5, %v388_v4  ;;  %v407_v15 = vrot.slane %v405_v7, 5  ;;  %v402_v19 = vor.u32 %v401_v12, %v397_v6 }
  0x45   : > { %4392 = vmatmul.msk.bf16.gmra.mxu3 %vm675_vm4, %v672_v9  ;;  %v288_v18 = vsel %vm5321_vm3, %v283_v11, %v287_v55  ;;  %v485_v21 = vshll.u32 %v209_v3, 16  ;;  %v491_v22 = vshll.u32 %v210_v8, 16  ;;  %v484_v26 = vrot.slane %v482_v17, 4 }
  0x46   : > { %v630_v23 = vunpack.c.l.b16 %v288_v18  ;;  %v393_v24 = vrot.slane %v392_v14, 4  ;;  %v495_v27 = vshrl.u32 %v210_v8, 16  ;;  %v403_v29 = vrot.slane %v402_v19, 4 }
  0x47   : > { %v487_v30 = vrot.slane %v485_v21, 5  ;;  %v493_v31 = vrot.slane %v491_v22, 5  ;;  %v501_v33 = vshll.u32 %v232_v16, 16  ;;  %v578_v48 = vshrl.u32 %v217_v34, 16  ;;  %v5439_v21 = vld [vmem:[%s5309_s19 + $0x58] sm:$0xf] }
  0x48   : > { %v660_v35 = vpack.c.b16 %v630_v23, %v629_v13  ;;  %v398_v37 = vsel %vm5321_vm3, %v393_v24, %v397_v6  ;;  %v497_v38 = vrot.slane %v495_v27, 4  ;;  %v408_v41 = vsel %vm5321_vm3, %v403_v29, %v407_v15  ;;  %v203_v15 = vld [vmem:[%s5309_s19 + $0x54] sm:$0xf]  ;;  %v5444_v27 = vld [vmem:[%s5309_s19 + $0x5c] sm:$0x1] }
  0x49   : > { %v639_v42 = vunpack.c.l.b16 %v398_v37  ;;  %v488_v43 = vor.u32 %v487_v30, %v484_v26  ;;  %v503_v44 = vrot.slane %v501_v33, 5  ;;  %v640_v45 = vunpack.c.l.b16 %v408_v41 }
  0x4a   : > { %4380 = vmatmul.msk.bf16.gmra.mxu0 %vm675_vm4, %v660_v35  ;;  %v498_v46 = vor.u32 %v497_v38, %v493_v31  ;;  %v581_v49 = vshll.u32 %v217_v34, 16  ;;  %v587_v51 = vshll.u32 %v218_v39, 16  ;;  %v591_v52 = vshrl.u32 %v218_v39, 16  ;;  %v211_v39 = vld [vmem:[%s5309_s19 + $0x84] sm:$0xf] }
  0x4b   : > { %v489_v50 = vrot.slane %v488_v43, 4  ;;  %v597_v53 = vshll.u32 %v236_v40, 16  ;;  %v665_v54 = vpack.c.b16 %v640_v45, %v639_v42  ;;  %v580_v57 = vrot.slane %v578_v48, 4 }
  0x4c   : > { %v499_v55 = vrot.slane %v498_v46, 4  ;;  %v583_v58 = vrot.slane %v581_v49, 5  ;;  %v589_v61 = vrot.slane %v587_v51, 5  ;;  %v593_v62 = vrot.slane %v591_v52, 4  ;;  %v212_v49 = vld [vmem:[%s5309_s19 + $0x88] sm:$0xf] }
  0x4d   : > { %v494_v60 = vsel %vm5321_vm3, %v489_v50, %v493_v31  ;;  %4385 = vmatmul.msk.bf16.gmra.mxu1 %vm675_vm4, %v665_v54  ;;  %v599_v6 = vrot.slane %v597_v53, 5  ;;  %v290_v9 = vshrl.u32 %v193_v59, 16  ;;  %v293_v10 = vshll.u32 %v193_v59, 16  ;;  %v233_v53 = vld [vmem:[%s5309_s19 + $0x8c] sm:$0x1] }
  0x4e   : > { %v504_v3 = vsel %vm5321_vm3, %v499_v55, %v503_v44  ;;  %v647_v4 = vunpack.c.l.b16 %v494_v60  ;;  %v584_v5 = vor.u32 %v583_v58, %v580_v57  ;;  %v594_v8 = vor.u32 %v593_v62, %v589_v61 }
  0x4f   : > { %v648_v7 = vunpack.c.l.b16 %v504_v3  ;;  %v299_v12 = vshll.u32 %v5426_v63, 16  ;;  %v303_v13 = vshrl.u32 %v5426_v63, 16  ;;  %v309_v14 = vshll.u32 %v5429_v0, 16 }
  0x50   : > { %v585_v11 = vrot.slane %v584_v5, 4  ;;  %v595_v17 = vrot.slane %v594_v8, 4  ;;  %v292_v18 = vrot.slane %v290_v9, 4  ;;  %v295_v19 = vrot.slane %v293_v10, 5  ;;  %v219_v8 = vld [vmem:[%s5309_s19 + $0xb4] sm:$0xf] }
  0x51   : > { %v669_v16 = vpack.c.b16 %v648_v7, %v647_v4  ;;  %v301_v23 = vrot.slane %v299_v12, 5  ;;  %v305_v24 = vrot.slane %v303_v13, 4  ;;  %v311_v26 = vrot.slane %v309_v14, 5  ;;  %v220_v12 = vld [vmem:[%s5309_s19 + $0xb8] sm:$0xf] }
  0x52   : > { %v590_v22 = vsel %vm5321_vm3, %v585_v11, %v589_v61  ;;  %v600_v29 = vsel %vm5321_vm3, %v595_v17, %v599_v6  ;;  %v296_v31 = vor.u32 %v295_v19, %v292_v18  ;;  %v410_v33 = vshrl.u32 %v203_v15, 16  ;;  %v237_v17 = vld [vmem:[%s5309_s19 + $0xbc] sm:$0x1] }
  0x53   : > { %4389 = vmatmul.msk.bf16.gmra.mxu2 %vm675_vm4, %v669_v16  ;;  %v655_v30 = vunpack.c.l.b16 %v590_v22  ;;  %v656_v34 = vunpack.c.l.b16 %v600_v29  ;;  %v306_v35 = vor.u32 %v305_v24, %v301_v23  ;;  %v413_v37 = vshll.u32 %v203_v15, 16 }
  0x54   : > { %v419_v38 = vshll.u32 %v5439_v21, 16  ;;  %v297_v40 = vrot.slane %v296_v31, 4  ;;  %v412_v41 = vrot.slane %v410_v33, 4  ;;  %v423_v42 = vshrl.u32 %v5439_v21, 16 }
  0x55   : > { %v429_v43 = vshll.u32 %v5444_v27, 16  ;;  %v673_v44 = vpack.c.b16 %v656_v34, %v655_v30  ;;  %v307_v45 = vrot.slane %v306_v35, 4  ;;  %v415_v46 = vrot.slane %v413_v37, 5  ;;  %v195_v37 = vld [vmem:[%s5309_s19 + $0x24] sm:$0xf] }
  0x56   : > { %v421_v48 = vrot.slane %v419_v38, 5  ;;  %v302_v50 = vsel %vm5321_vm3, %v297_v40, %v301_v23  ;;  %v425_v51 = vrot.slane %v423_v42, 4  ;;  %v506_v54 = vshrl.u32 %v211_v39, 16  ;;  %v5472_v42 = vld [vmem:[%s5309_s19 + $0x28] sm:$0xf] }
  0x57   : > { %v431_v52 = vrot.slane %v429_v43, 5  ;;  %4393 = vmatmul.msk.bf16.gmra.mxu3 %vm675_vm4, %v673_v44  ;;  %v312_v55 = vsel %vm5321_vm3, %v307_v45, %v311_v26  ;;  %v631_v57 = vunpack.c.l.b16 %v302_v50  ;;  %v416_v58 = vor.u32 %v415_v46, %v412_v41 }
  0x58   : > { %v509_v59 = vshll.u32 %v211_v39, 16  ;;  %v632_v60 = vunpack.c.l.b16 %v312_v55  ;;  %v426_v61 = vor.u32 %v425_v51, %v421_v48  ;;  %v508_v62 = vrot.slane %v506_v54, 4 }
  0x59   : > { %v515_v3 = vshll.u32 %v212_v49, 16  ;;  %v417_v4 = vrot.slane %v416_v58, 4  ;;  %v519_v6 = vshrl.u32 %v212_v49, 16  ;;  %v525_v7 = vshll.u32 %v233_v53, 16 }
  0x5a   : > { %v511_v5 = vrot.slane %v509_v59, 5  ;;  %v661_v9 = vpack.c.b16 %v632_v60, %v631_v57  ;;  %v427_v10 = vrot.slane %v426_v61, 4  ;;  %v602_v22 = vshrl.u32 %v219_v8, 16  ;;  %v1037_v61 = vld [vmem:[%s5309_s19] sm:$0xe] }
  0x5b   : > { %v517_v11 = vrot.slane %v515_v3, 5  ;;  %v422_v13 = vsel %vm5321_vm3, %v417_v4, %v421_v48  ;;  %v521_v15 = vrot.slane %v519_v6, 4  ;;  %v527_v16 = vrot.slane %v525_v7, 5  ;;  %v5476_v48 = vld [vmem:[%s5309_s19 + $0x2c] sm:$0x1] }
  0x5c   : > { %v512_v14 = vor.u32 %v511_v5, %v508_v62  ;;  %4381 = vmatmul.msk.bf16.gmra.mxu0 %vm675_vm4, %v661_v9  ;;  %v432_v18 = vsel %vm5321_vm3, %v427_v10, %v431_v52  ;;  %v641_v19 = vunpack.c.l.b16 %v422_v13  ;;  %v605_v23 = vshll.u32 %v219_v8, 16  ;;  %v4621_v6 = vld [vmem:[%s5309_s19 + $0xc] sm:$0xf] }
  0x5d   : > { %v642_v24 = vunpack.c.l.b16 %v432_v18  ;;  %v522_v29 = vor.u32 %v521_v15, %v517_v11  ;;  %v611_v30 = vshll.u32 %v220_v12, 16  ;;  %v604_v31 = vrot.slane %v602_v22, 4 }
  0x5e   : > { %v513_v26 = vrot.slane %v512_v14, 4  ;;  %v607_v33 = vrot.slane %v605_v23, 5  ;;  %v615_v34 = vshrl.u32 %v220_v12, 16  ;;  %v621_v35 = vshll.u32 %v237_v17, 16  ;;  %v4622_v12 = vld [vmem:[%s5309_s19 + $0x10] sm:$0xf] }
  0x5f   : > { %v666_v38 = vpack.c.b16 %v642_v24, %v641_v19  ;;  %v523_v40 = vrot.slane %v522_v29, 4  ;;  %v613_v41 = vrot.slane %v611_v30, 5  ;;  %v1093_v43 = vrot.slane %v5337_v2, 5 }
  0x60   : > { %v518_v39 = vsel %vm5321_vm3, %v513_v26, %v517_v11  ;;  %v608_v45 = vor.u32 %v607_v33, %v604_v31  ;;  %v617_v46 = vrot.slane %v615_v34, 4  ;;  %v623_v50 = vrot.slane %v621_v35, 5  ;;  %v4767_v11 = vld [vmem:[%s6691_s1 + $0xc] sm:$0x3] }
  0x61   : > { %v649_v44 = vunpack.c.l.b16 %v518_v39  ;;  %4386 = vmatmul.msk.bf16.gmra.mxu1 %vm675_vm4, %v666_v38  ;;  %v528_v49 = vsel %vm5321_vm3, %v523_v40, %v527_v16  ;;  %v314_v51 = vshrl.u32 %v195_v37, 16  ;;  %v317_v52 = vshll.u32 %v195_v37, 16  ;;  %v4623_v38 = vld [vmem:[%s5309_s19 + $0x14] sm:$0x1] }
  0x62   : > { %v650_v53 = vunpack.c.l.b16 %v528_v49  ;;  %v609_v54 = vrot.slane %v608_v45, 4  ;;  %v618_v55 = vor.u32 %v617_v46, %v613_v41  ;;  %v323_v2 = vshll.u32 %v5472_v42, 16  ;;  %v4896_v45 = vld [vmem:[%s6691_s1 + $0xe] sm:$0x3] }
  0x63   : > { %v316_v57 = vrot.slane %v314_v51, 4  ;;  %v319_v58 = vrot.slane %v317_v52, 5  ;;  %v327_v59 = vshrl.u32 %v5472_v42, 16  ;;  %v333_v60 = vshll.u32 %v5476_v48, 16  ;;  %v4967_v51 = vld [vmem:[%s5309_s19] sm:$0xff] }
  0x64   : > { %v670_v62 = vpack.c.b16 %v650_v53, %v649_v44  ;;  %v614_v3 = vsel %vm5321_vm3, %v609_v54, %v613_v41  ;;  %v619_v4 = vrot.slane %v618_v55, 4  ;;  %v325_v5 = vrot.slane %v323_v2, 5  ;;  %v4945_v2 = vld [vmem:[%s6691_s1 + $0x10] sm:$0x3] }
  0x65   : > { %v657_v7 = vunpack.c.l.b16 %v614_v3  ;;  %v320_v8 = vor.u32 %v319_v58, %v316_v57  ;;  %v329_v9 = vrot.slane %v327_v59, 4  ;;  %v335_v10 = vrot.slane %v333_v60, 5 }
  0x66   : > { %4390 = vmatmul.msk.bf16.gmra.mxu2 %vm675_vm4, %v670_v62  ;;  %v624_v13 = vsel %vm5321_vm3, %v619_v4, %v623_v50  ;;  %v4475_v14 = vrot.slane %v1037_v61, 9  ;;  %v1090_v19 = vrot.slane %v5334_v1, 5  ;;  %v2931_v22 = vsel %vm724_vm0, %v4767_v11, 0  ;;  %v4718_v50 = vld [vmem:[%s6691_s1 + $0xa] sm:$0x3] }
  0x67   : > { %v658_v15 = vunpack.c.l.b16 %v624_v13  ;;  %v321_v16 = vrot.slane %v320_v8, 4  ;;  %v330_v17 = vor.u32 %v329_v9, %v325_v5  ;;  %v1761_v23 = vshrl.u32 %v4621_v6, 16  ;;  %2940 = vmatpush.bf16.msra.mxu2 %v2931_v22  ;;  %v1038_v8 = vld [vmem:[%s5309_s19 + $0xc] sm:$0xe] }
  0x68   : > { %v1764_v24 = vshll.u32 %v4621_v6, 16  ;;  %v1770_v26 = vshll.u32 %v4622_v12, 16  ;;  %v1091_v33 = vsel %vm5495_vm7, %v4475_v14, %v1090_v19  ;;  %v1092_v35 = vrot.slane %v1090_v19, 4  ;;  %v4625_v6 = vld [vmem:[%s5309_s19 + $0x1c] sm:$0xf] }
  0x69   : > { %v674_v29 = vpack.c.b16 %v658_v15, %v657_v7  ;;  %v326_v30 = vsel %vm5321_vm3, %v321_v16, %v325_v5  ;;  %v331_v31 = vrot.slane %v330_v17, 4  ;;  %v1202_v37 = vunpack.c.l.b16 %v1091_v33  ;;  %v4624_v5 = vld [vmem:[%s5309_s19 + $0x18] sm:$0xf]  ;;  %v4983_v15 = vld [vmem:[%s5309_s19 + $0xc] sm:$0xff] }
  0x6a   : > { %v633_v34 = vunpack.c.l.b16 %v326_v30  ;;  %v1763_v1 = vrot.slane %v1761_v23, 4  ;;  %v1766_v40 = vrot.slane %v1764_v24, 5  ;;  %v1772_v41 = vrot.slane %v1770_v26, 5  ;;  %v4626_v30 = vld [vmem:[%s5309_s19 + $0x20] sm:$0x1] }
  0x6b   : > { %4394 = vmatmul.msk.bf16.gmra.mxu3 %vm675_vm4, %v674_v29  ;;  %v336_v39 = vsel %vm5321_vm3, %v331_v31, %v335_v10  ;;  %v1774_v44 = vshrl.u32 %v4622_v12, 16  ;;  %v1094_v49 = vsel %vm5495_vm7, %v1092_v35, %v1093_v43  ;;  %v1780_v55 = vshll.u32 %v4623_v38, 16 }
  0x6c   : > { %v634_v46 = vunpack.c.l.b16 %v336_v39  ;;  %v1203_v52 = vunpack.c.l.b16 %v1094_v49  ;;  %v1767_v53 = vor.u32 %v1766_v40, %v1763_v1  ;;  %v3585_v58 = vsel %vm724_vm0, %v4896_v45, 0  ;;  %v4627_v45 = vld [vmem:[%s5309_s19 + $0x24] sm:$0xf]  ;;  %v4628_v49 = vld [vmem:[%s5309_s19 + $0x28] sm:$0xf] }
  0x6d   : > { %v1776_v54 = vrot.slane %v1774_v44, 4  ;;  %3594 = vmatpush.bf16.msra.mxu3 %v3585_v58  ;;  %v2641_v60 = vsel %vm724_vm0, %v4718_v50, 0  ;;  %v3983_v61 = vsel %vm724_vm0, %v4945_v2, 0  ;;  %v1782_v4 = vrot.slane %v1780_v55, 5  ;;  %v4984_v58 = vld [vmem:[%s5309_s19 + $0x18] sm:$0xff] }
  0x6e   : > { %v662_v57 = vpack.c.b16 %v634_v46, %v633_v34  ;;  %v1234_v43 = vpack.c.b16 %v1203_v52, %v1202_v37  ;;  %2650 = vmatpush.bf16.msra.mxu1 %v2641_v60  ;;  %v1768_v62 = vrot.slane %v1767_v53, 4  ;;  %3992 = vmatpush.bf16.msra.mxu0 %v3983_v61  ;;  %v1097_v7 = vrot.slane %v5380_v28, 5  ;;  %v1039_v52 = vld [vmem:[%s5309_s19 + $0x18] sm:$0xe] }
  0x6f   : > { %v1777_v59 = vor.u32 %v1776_v54, %v1772_v41  ;;  %v1785_v9 = vshrl.u32 %v4624_v5, 16  ;;  %v1788_v10 = vshll.u32 %v4624_v5, 16  ;;  %v1794_v13 = vshll.u32 %v4625_v6, 16 }
  0x70   : > { %4382 = vmatmul.msk.bf16.gmra.mxu0 %vm675_vm4, %v662_v57  ;;  %v1773_v11 = vsel %vm5321_vm3, %v1768_v62, %v1772_v41  ;;  %v1798_v14 = vshrl.u32 %v4625_v6, 16  ;;  %v4476_v16 = vrot.slane %v1038_v8, 9  ;;  %v1099_v17 = vrot.slane %v1097_v7, 4  ;;  %v4629_v6 = vld [vmem:[%s5309_s19 + $0x2c] sm:$0x1] }
  0x71   : > { %4459 = vmatmul.msk.bf16.vlgmr.msrb.gmra.mxu1 %vm675_vm4, %v4967_v51  ;;  %v1778_v3 = vrot.slane %v1777_v59, 4  ;;  %v1100_v28 = vrot.slane %v5383_v32, 5  ;;  %v2146_v19 = vunpack.c.l.b16 %v1773_v11  ;;  %v1787_v23 = vrot.slane %v1785_v9, 4  ;;  %v4968_v32 = vld [vmem:[%s5309_s19 + $0xc] sm:$0xff] }
  0x72   : > { %v1790_v24 = vrot.slane %v1788_v10, 5  ;;  %v1796_v26 = vrot.slane %v1794_v13, 5  ;;  %v1800_v29 = vrot.slane %v1798_v14, 4  ;;  %v1098_v31 = vsel %vm5495_vm7, %v4476_v16, %v1097_v7  ;;  %v4631_v16 = vld [vmem:[%s5309_s19 + $0x34] sm:$0xf] }
  0x73   : > { %v1783_v12 = vsel %vm5321_vm3, %v1778_v3, %v1782_v4  ;;  %v1101_v33 = vsel %vm5495_vm7, %v1099_v17, %v1100_v28  ;;  %v1804_v38 = vshll.u32 %v4626_v30, 16  ;;  %v1204_v1 = vunpack.c.l.b16 %v1098_v31 }
  0x74   : > { %v2147_v22 = vunpack.c.l.b16 %v1783_v12  ;;  %v1791_v35 = vor.u32 %v1790_v24, %v1787_v23  ;;  %v1801_v37 = vor.u32 %v1800_v29, %v1796_v26  ;;  %v1205_v39 = vunpack.c.l.b16 %v1101_v33  ;;  %v1040_v24 = vld [vmem:[%s5309_s19 + $0x24] sm:$0xe] }
  0x75   : > { %v1806_v44 = vrot.slane %v1804_v38, 5  ;;  %v1104_v50 = vrot.slane %v5426_v63, 5  ;;  %v1809_v53 = vshrl.u32 %v4627_v45, 16  ;;  %v1812_v55 = vshll.u32 %v4627_v45, 16  ;;  %v4632_v45 = vld [vmem:[%s5309_s19 + $0x38] sm:$0x1] }
  0x76   : > { %4492 = vmatmul.msk.bf16.vlgmr.msrb.gmra.mxu2 %vm675_vm4, %v1234_v43  ;;  %v2178_v34 = vpack.c.b16 %v2147_v22, %v2146_v19  ;;  %v1792_v40 = vrot.slane %v1791_v35, 4  ;;  %v1802_v41 = vrot.slane %v1801_v37, 4  ;;  %v1235_v46 = vpack.c.b16 %v1205_v39, %v1204_v1 }
  0x77   : > { %v1818_v2 = vshll.u32 %v4628_v49, 16  ;;  %v1822_v57 = vshrl.u32 %v4628_v49, 16  ;;  %v4477_v43 = vrot.slane %v1039_v52, 9  ;;  %v1106_v59 = vrot.slane %v1104_v50, 4 }
  0x78   : > { %v1797_v51 = vsel %vm5321_vm3, %v1792_v40, %v1796_v26  ;;  %v1807_v54 = vsel %vm5321_vm3, %v1802_v41, %v1806_v44  ;;  %v1107_v63 = vrot.slane %v5429_v0, 5  ;;  %v1811_v62 = vrot.slane %v1809_v53, 4  ;;  %v4969_v0 = vld [vmem:[%s5309_s19 + $0x18] sm:$0xff]  ;;  %v4970_v53 = vld [vmem:[%s5309_s19 + $0x24] sm:$0xff] }
  0x79   : > { %v2148_v60 = vunpack.c.l.b16 %v1797_v51  ;;  %v2149_v61 = vunpack.c.l.b16 %v1807_v54  ;;  %v1814_v3 = vrot.slane %v1812_v55, 5  ;;  %v1820_v4 = vrot.slane %v1818_v2, 5 }
  0x7a   : > { %v1824_v5 = vrot.slane %v1822_v57, 4  ;;  %v1105_v7 = vsel %vm5495_vm7, %v4477_v43, %v1104_v50  ;;  %v1108_v8 = vsel %vm5495_vm7, %v1106_v59, %v1107_v63  ;;  %v1828_v12 = vshll.u32 %v4629_v6, 16  ;;  %v4633_v43 = vld [vmem:[%s5309_s19 + $0x3c] sm:$0xf]  ;;  %v4634_v59 = vld [vmem:[%s5309_s19 + $0x40] sm:$0xf] }
  0x7b   : > { %4605 = vmatmul.msk.bf16.vlgmr.msrb.gmra.mxu3 %vm675_vm4, %v4983_v15  ;;  %v2179_v9 = vpack.c.b16 %v2149_v61, %v2148_v60  ;;  %v1815_v10 = vor.u32 %v1814_v3, %v1811_v62  ;;  %v1206_v13 = vunpack.c.l.b16 %v1105_v7  ;;  %v1207_v14 = vunpack.c.l.b16 %v1108_v8  ;;  %v4630_v15 = vld [vmem:[%s5309_s19 + $0x30] sm:$0xf]  ;;  %v5077_v62 = vld [vmem:[%s5309_s19 + $0x34] sm:$0xf] }
  0x7c   : > { %v1825_v11 = vor.u32 %v1824_v5, %v1820_v4  ;;  %v1830_v19 = vrot.slane %v1828_v12, 5  ;;  %v1111_v23 = vrot.slane %v5472_v42, 5  ;;  %v1833_v26 = vshrl.u32 %v4630_v15, 16  ;;  %v4985_v42 = vld [vmem:[%s5309_s19 + $0x24] sm:$0xff]  ;;  %v1041_v5 = vld [vmem:[%s5309_s19 + $0x30] sm:$0xe] }
  0x7d   : > { %v1816_v17 = vrot.slane %v1815_v10, 4  ;;  %v1236_v22 = vpack.c.b16 %v1207_v14, %v1206_v13  ;;  %v1836_v29 = vshll.u32 %v4630_v15, 16  ;;  %v1842_v30 = vshll.u32 %v4631_v16, 16  ;;  %v4986_v10 = vld [vmem:[%s5309_s19 + $0x30] sm:$0xff]  ;;  %v5078_v14 = vld [vmem:[%s5309_s19 + $0x38] sm:$0x1] }
  0x7e   : > { %v1826_v28 = vrot.slane %v1825_v11, 4  ;;  %v1846_v31 = vshrl.u32 %v4631_v16, 16  ;;  %v4478_v35 = vrot.slane %v1040_v24, 9  ;;  %v1114_v37 = vrot.slane %v5476_v48, 5 }
  0x7f   : > { %v1821_v33 = vsel %vm5321_vm3, %v1816_v17, %v1820_v4  ;;  %v1835_v38 = vrot.slane %v1833_v26, 4  ;;  %v1838_v1 = vrot.slane %v1836_v29, 5  ;;  %v1844_v39 = vrot.slane %v1842_v30, 5 }
  0x80   : > { %4670 = vmatmul.msk.bf16.vlgmr.msrb.gmra.mxu0 %vm675_vm4, %v2178_v34  ;;  %v1831_v34 = vsel %vm5321_vm3, %v1826_v28, %v1830_v19  ;;  %v1848_v40 = vrot.slane %v1846_v31, 4  ;;  %v2150_v41 = vunpack.c.l.b16 %v1821_v33  ;;  %v1852_v51 = vshll.u32 %v4632_v45, 16  ;;  %v4971_v33 = vld [vmem:[%s5309_s19 + $0x30] sm:$0xff] }
  0x81   : > { %4460 = vmatmul.msk.bf16.gmra.mxu1 %vm675_vm4, %v4968_v32  ;;  %v1113_v32 = vrot.slane %v1111_v23, 4  ;;  %v2151_v44 = vunpack.c.l.b16 %v1831_v34  ;;  %v1839_v48 = vor.u32 %v1838_v1, %v1835_v38  ;;  %v1118_v3 = vrot.slane %v5077_v62, 5 }
  0x82   : > { %v1849_v50 = vor.u32 %v1848_v40, %v1844_v39  ;;  %v1857_v6 = vshrl.u32 %v4633_v43, 16  ;;  %v1860_v7 = vshll.u32 %v4633_v43, 16  ;;  %v1866_v8 = vshll.u32 %v4634_v59, 16 }
  0x83   : > { %v1115_v49 = vsel %vm5495_vm7, %v1113_v32, %v1114_v37  ;;  %v2180_v52 = vpack.c.b16 %v2151_v44, %v2150_v41  ;;  %v1840_v2 = vrot.slane %v1839_v48, 4  ;;  %v4479_v12 = vrot.slane %v1041_v5, 9  ;;  %v4636_v41 = vld [vmem:[%s5309_s19 + $0x48] sm:$0xf]  ;;  %v4637_v44 = vld [vmem:[%s5309_s19 + $0x4c] sm:$0xf] }
  0x84   : > { %v1209_v55 = vunpack.c.l.b16 %v1115_v49  ;;  %v1850_v57 = vrot.slane %v1849_v50, 4  ;;  %v1120_v13 = vrot.slane %v1118_v3, 4  ;;  %v1121_v15 = vrot.slane %v5078_v14, 5  ;;  %v1042_v50 = vld [vmem:[%s5309_s19 + $0x3c] sm:$0xe] }
  0x85   : > { %v1845_v60 = vsel %vm5321_vm3, %v1840_v2, %v1844_v39  ;;  %v1859_v16 = vrot.slane %v1857_v6, 4  ;;  %v1862_v17 = vrot.slane %v1860_v7, 5  ;;  %v1868_v28 = vrot.slane %v1866_v8, 5  ;;  %v4638_v5 = vld [vmem:[%s5309_s19 + $0x50] sm:$0x1] }
  0x86   : > { %4493 = vmatmul.msk.bf16.gmra.mxu2 %vm675_vm4, %v1235_v46  ;;  %v1112_v46 = vsel %vm5495_vm7, %v4478_v35, %v1111_v23  ;;  %v1119_v23 = vsel %vm5495_vm7, %v4479_v12, %v1118_v3  ;;  %v1122_v24 = vsel %vm5495_vm7, %v1120_v13, %v1121_v15  ;;  %v1900_v12 = vshll.u32 %v4638_v5, 16  ;;  %v4639_v15 = vld [vmem:[%s5309_s19 + $0x54] sm:$0xf] }
  0x87   : > { %v1208_v54 = vunpack.c.l.b16 %v1112_v46  ;;  %v1863_v29 = vor.u32 %v1862_v17, %v1859_v16  ;;  %v1210_v35 = vunpack.c.l.b16 %v1119_v23  ;;  %v1211_v32 = vunpack.c.l.b16 %v1122_v24  ;;  %v4640_v16 = vld [vmem:[%s5309_s19 + $0x58] sm:$0xf] }
  0x88   : > { %v1125_v46 = vrot.slane %v5349_v20, 5  ;;  %v1128_v20 = vrot.slane %v5354_v25, 5 }
  0x89   : > { %v1237_v63 = vpack.c.b16 %v1209_v55, %v1208_v54  ;;  %v1238_v40 = vpack.c.b16 %v1211_v32, %v1210_v35  ;;  %v1894_v54 = vshrl.u32 %v4637_v44, 16  ;;  %v4987_v55 = vld [vmem:[%s5309_s19 + $0x3c] sm:$0xff]  ;;  %v1043_v35 = vld [vmem:[%s5309_s19 + $0x48] sm:$0xe] }
  0x8b   : > { %4606 = vmatmul.msk.bf16.gmra.mxu3 %vm675_vm4, %v4984_v58  ;;  %v1854_v58 = vrot.slane %v1852_v51, 5  ;;  %v1881_v51 = vshrl.u32 %v4636_v41, 16  ;;  %v1896_v3 = vrot.slane %v1894_v54, 4 }
  0x8d   : > { %v1855_v61 = vsel %vm5321_vm3, %v1850_v57, %v1854_v58  ;;  %v4480_v57 = vrot.slane %v1042_v50, 9  ;;  %v1127_v58 = vrot.slane %v1125_v46, 4 }
  0x8e   : > { %v2153_v11 = vunpack.c.l.b16 %v1855_v61 }
  0x8f   : > { %v1126_v6 = vsel %vm5495_vm7, %v4480_v57, %v1125_v46  ;;  %v1129_v7 = vsel %vm5495_vm7, %v1127_v58, %v1128_v20 }
  0x90   : > { %4671 = vmatmul.msk.bf16.gmra.mxu0 %vm675_vm4, %v2179_v9  ;;  %v1870_v9 = vshrl.u32 %v4634_v59, 16  ;;  %v1212_v13 = vunpack.c.l.b16 %v1126_v6  ;;  %v1213_v14 = vunpack.c.l.b16 %v1129_v7 }
  0x91   : > { %4461 = vmatmul.msk.bf16.gmra.mxu1 %vm675_vm4, %v4969_v0  ;;  %v2152_v0 = vunpack.c.l.b16 %v1845_v60  ;;  %v1883_v60 = vrot.slane %v1881_v51, 4 }
  0x92   : > { %v1872_v19 = vrot.slane %v1870_v9, 4  ;;  %v1239_v23 = vpack.c.b16 %v1213_v14, %v1212_v13  ;;  %v1139_v14 = vrot.slane %v5439_v21, 5  ;;  %v1142_v21 = vrot.slane %v5444_v27, 5 }
  0x93   : > { %v2181_v26 = vpack.c.b16 %v2153_v11, %v2152_v0  ;;  %v4972_v0 = vld [vmem:[%s5309_s19 + $0x3c] sm:$0xff] }
  0x94   : > { %v1873_v30 = vor.u32 %v1872_v19, %v1868_v28 }
  0x96   : > { %4494 = vmatmul.msk.bf16.gmra.mxu2 %vm675_vm4, %v1236_v22  ;;  %v4635_v22 = vld [vmem:[%s5309_s19 + $0x44] sm:$0x1]  ;;  %v1874_v38 = vrot.slane %v1873_v30, 4  ;;  %v1914_v30 = vshll.u32 %v4640_v16, 16 }
  0x97   : > { %v1876_v31 = vshll.u32 %v4635_v22, 16  ;;  %v1902_v22 = vrot.slane %v1900_v12, 5 }
  0x99   : > { %v1878_v1 = vrot.slane %v1876_v31, 5  ;;  %v1132_v31 = vrot.slane %v5393_v47, 5  ;;  %v4481_v47 = vrot.slane %v1043_v35, 9  ;;  %v1141_v35 = vrot.slane %v1139_v14, 4 }
  0x9b   : > { %4607 = vmatmul.msk.bf16.gmra.mxu3 %vm675_vm4, %v4985_v42  ;;  %v1864_v42 = vrot.slane %v1863_v29, 4  ;;  %v1879_v48 = vsel %vm5321_vm3, %v1874_v38, %v1878_v1  ;;  %v1908_v29 = vshll.u32 %v4639_v15, 16  ;;  %v1133_v58 = vsel %vm5495_vm7, %v4481_v47, %v1132_v31 }
  0x9c   : > { %v2155_v59 = vunpack.c.l.b16 %v1879_v48  ;;  %v1135_v48 = vrot.slane %v5398_v56, 5 }
  0x9d   : > { %v1869_v49 = vsel %vm5321_vm3, %v1864_v42, %v1868_v28 }
  0x9e   : > { %v2154_v43 = vunpack.c.l.b16 %v1869_v49  ;;  %v1134_v49 = vrot.slane %v1132_v31, 4 }
  0xa0   : > { %4672 = vmatmul.msk.bf16.gmra.mxu0 %vm675_vm4, %v2180_v52  ;;  %v1884_v52 = vshll.u32 %v4636_v41, 16  ;;  %v2182_v25 = vpack.c.b16 %v2155_v59, %v2154_v43  ;;  %v1916_v41 = vrot.slane %v1914_v30, 5  ;;  %v1136_v20 = vsel %vm5495_vm7, %v1134_v49, %v1135_v48  ;;  %v4989_v30 = vld [vmem:[%s5309_s19 + $0x54] sm:$0xff] }
  0xa1   : > { %4462 = vmatmul.msk.bf16.gmra.mxu1 %vm675_vm4, %v4970_v53  ;;  %v1890_v53 = vshll.u32 %v4637_v44, 16  ;;  %v4988_v44 = vld [vmem:[%s5309_s19 + $0x48] sm:$0xff]  ;;  %v1143_v48 = vsel %vm5495_vm7, %v1141_v35, %v1142_v21 }
  0xa2   : > { %v1886_v61 = vrot.slane %v1884_v52, 5 }
  0xa3   : > { %v1892_v62 = vrot.slane %v1890_v53, 5  ;;  %v4641_v53 = vld [vmem:[%s5309_s19 + $0x5c] sm:$0x1] }
  0xa4   : > { %v1924_v43 = vshll.u32 %v4641_v53, 16  ;;  %v4974_v53 = vld [vmem:[%s5309_s19 + $0x54] sm:$0xff] }
  0xa5   : > { %v1897_v11 = vor.u32 %v1896_v3, %v1892_v62 }
  0xa6   : > { %v5593_v4 = vpop.f32.mrf.mxu1  ;;  %4495 = vmatmul.msk.bf16.gmra.mxu2 %vm675_vm4, %v1237_v63  ;;  %v1926_v7 = vrot.slane %v1924_v43, 5 }
  0xa7   : > { %v1898_v19 = vrot.slane %v1897_v11, 4 }
  0xa9   : > { %v1903_v42 = vsel %vm5321_vm3, %v1898_v19, %v1902_v22 }
  0xaa   : > { %v2157_v52 = vunpack.c.l.b16 %v1903_v42 }
  0xab   : > { %4608 = vmatmul.msk.bf16.gmra.mxu3 %vm675_vm4, %v4986_v10  ;;  %v1887_v10 = vor.u32 %v1886_v61, %v1883_v60  ;;  %v4973_v60 = vld [vmem:[%s5309_s19 + $0x48] sm:$0xff]  ;;  %v1214_v61 = vunpack.c.l.b16 %v1133_v58 }
  0xad   : > { %v1888_v28 = vrot.slane %v1887_v10, 4  ;;  %v4643_v10 = vld [vmem:[%s5309_s19 + $0x64] sm:$0xf] }
  0xae   : > { %v5606_v34 = vpop.f32.mrf.mxu1  ;;  %v1938_v22 = vshll.u32 %v4643_v10, 16 }
  0xaf   : > { %v1893_v32 = vsel %vm5321_vm3, %v1888_v28, %v1892_v62  ;;  %v1215_v62 = vunpack.c.l.b16 %v1136_v20  ;;  %v1217_v20 = vunpack.c.l.b16 %v1143_v48 }
  0xb0   : > { %v5608_v37 = vpop.f32.mrf.mxu2  ;;  %4673 = vmatmul.msk.bf16.gmra.mxu0 %vm675_vm4, %v2181_v26  ;;  %v1905_v26 = vshrl.u32 %v4639_v15, 16  ;;  %v2156_v51 = vunpack.c.l.b16 %v1893_v32 }
  0xb1   : > { %4463 = vmatmul.msk.bf16.gmra.mxu1 %vm675_vm4, %v4971_v33  ;;  %v1918_v33 = vshrl.u32 %v4640_v16, 16  ;;  %v1240_v11 = vpack.c.b16 %v1215_v62, %v1214_v61  ;;  %v1044_v16 = vld [vmem:[%s5309_s19 + $0x54] sm:$0xe]  ;;  %v4645_v62 = vld [vmem:[%s5309_s19 + $0x6c] sm:$0xf] }
  0xb2   : > { %v1907_v1 = vrot.slane %v1905_v26, 4  ;;  %v2183_v59 = vpack.c.b16 %v2157_v52, %v2156_v51 }
  0xb3   : > { %v5612_v39 = vpop.f32.mrf.mxu0  ;;  %v1920_v50 = vrot.slane %v1918_v33, 4  ;;  %v4482_v33 = vrot.slane %v1044_v16, 9  ;;  %v1956_v16 = vshll.u32 %v4645_v62, 16 }
  0xb4   : > { %v5616_v45 = vpop.f32.mrf.mxu3 }
  0xb5   : > { %v1921_v56 = vor.u32 %v1920_v50, %v1916_v41  ;;  %v1140_v49 = vsel %vm5495_vm7, %v4482_v33, %v1139_v14  ;;  %v1953_v14 = vshrl.u32 %v4645_v62, 16 }
  0xb6   : > { %4496 = vmatmul.msk.bf16.gmra.mxu2 %vm675_vm4, %v1238_v40  ;;  %v1910_v40 = vrot.slane %v1908_v29, 5  ;;  %v1216_v58 = vunpack.c.l.b16 %v1140_v49  ;;  %v4647_v49 = vld [vmem:[%s5309_s19 + $0x74] sm:$0x1] }
  0xb7   : > { %v1922_v6 = vrot.slane %v1921_v56, 4 }
  0xb8   : > { %v5626_v2 = vpop.f32.mrf.mxu1  ;;  %v5629_v63 = vpop.f32.mrf.mxu2  ;;  %v1241_v61 = vpack.c.b16 %v1217_v20, %v1216_v58  ;;  %v1972_v20 = vshll.u32 %v4647_v49, 16  ;;  %v4991_v49 = vld [vmem:[%s5309_s19 + $0x6c] sm:$0xff] }
  0xb9   : > { %v1927_v13 = vsel %vm5321_vm3, %v1922_v6, %v1926_v7  ;;  %v5079_v7 = vld [vmem:[%s5309_s19 + $0x64] sm:$0xf] }
  0xba   : > { %v2159_v31 = vunpack.c.l.b16 %v1927_v13  ;;  %v1045_v13 = vld [vmem:[%s5309_s19 + $0x60] sm:$0xe] }
  0xbb   : > { %4609 = vmatmul.msk.bf16.gmra.mxu3 %vm675_vm4, %v4987_v55  ;;  %v5637_v8 = vpop.f32.mrf.mxu0  ;;  %v1911_v55 = vor.u32 %v1910_v40, %v1907_v1  ;;  %v1940_v1 = vrot.slane %v1938_v22, 5 }
  0xbc   : > { %v5639_v9 = vpop.f32.mrf.mxu3 }
  0xbd   : > { %v1912_v5 = vrot.slane %v1911_v55, 4 }
  0xbf   : > { %v1917_v12 = vsel %vm5321_vm3, %v1912_v5, %v1916_v41  ;;  %v4646_v5 = vld [vmem:[%s5309_s19 + $0x70] sm:$0xf] }
  0xc0   : > { %4674 = vmatmul.msk.bf16.gmra.mxu0 %vm675_vm4, %v2182_v25  ;;  %v5645_v17 = vpop.f32.mrf.mxu1  ;;  %v2158_v29 = vunpack.c.l.b16 %v1917_v12 }
  0xc1   : > { %4464 = vmatmul.msk.bf16.gmra.mxu1 %vm675_vm4, %v4972_v0  ;;  %v4642_v0 = vld [vmem:[%s5309_s19 + $0x60] sm:$0xf] }
  0xc2   : > { %v1929_v28 = vshrl.u32 %v4642_v0, 16  ;;  %v1932_v19 = vshll.u32 %v4642_v0, 16  ;;  %v2184_v50 = vpack.c.b16 %v2159_v31, %v2158_v29  ;;  %v1146_v0 = vrot.slane %v5079_v7, 5 }
  0xc3   : > { %v5648_v24 = vpop.f32.mrf.mxu2  ;;  %v4483_v31 = vrot.slane %v1045_v13, 9 }
  0xc4   : > { %v1931_v32 = vrot.slane %v1929_v28, 4  ;;  %v1934_v42 = vrot.slane %v1932_v19, 5  ;;  %v1962_v28 = vshll.u32 %v4646_v5, 16  ;;  %v1966_v19 = vshrl.u32 %v4646_v5, 16 }
  0xc5   : > { %v1148_v33 = vrot.slane %v1146_v0, 4  ;;  %v1147_v48 = vsel %vm5495_vm7, %v4483_v31, %v1146_v0 }
  0xc6   : > { %4497 = vmatmul.msk.bf16.gmra.mxu2 %vm675_vm4, %v1239_v23  ;;  %v1942_v23 = vshrl.u32 %v4643_v10, 16  ;;  %v1935_v27 = vor.u32 %v1934_v42, %v1931_v32  ;;  %v1955_v42 = vrot.slane %v1953_v14, 4  ;;  %v4649_v14 = vld [vmem:[%s5309_s19 + $0x7c] sm:$0xf] }
  0xc7   : > { %v5656_v38 = vpop.f32.mrf.mxu0 }
  0xc8   : > { %v5660_v46 = vpop.f32.mrf.mxu3  ;;  %v1944_v40 = vrot.slane %v1942_v23, 4  ;;  %v1936_v43 = vrot.slane %v1935_v27, 4  ;;  %v5080_v23 = vld [vmem:[%s5309_s19 + $0x68] sm:$0x1] }
  0xc9   : > { %v1149_v29 = vrot.slane %v5080_v23, 5 }
  0xca   : > { %v5664_v54 = vpop.f32.mrf.mxu1  ;;  %v1945_v51 = vor.u32 %v1944_v40, %v1940_v1  ;;  %v1964_v40 = vrot.slane %v1962_v28, 5 }
  0xcb   : > { %4610 = vmatmul.msk.bf16.gmra.mxu3 %vm675_vm4, %v4988_v44  ;;  %v5667_v57 = vpop.f32.mrf.mxu2  ;;  %v4644_v44 = vld [vmem:[%s5309_s19 + $0x68] sm:$0x1] }
  0xcc   : > { %v1948_v52 = vshll.u32 %v4644_v44, 16  ;;  %v1968_v44 = vrot.slane %v1966_v19, 4  ;;  %v1046_v19 = vld [vmem:[%s5309_s19 + $0x6c] sm:$0xe] }
  0xce   : > { %v1969_v58 = vor.u32 %v1968_v44, %v1964_v40 }
  0xcf   : > { %v5674_v3 = vpop.f32.mrf.mxu0 }
  0xd0   : > { %4675 = vmatmul.msk.bf16.gmra.mxu0 %vm675_vm4, %v2183_v59  ;;  %v5677_v25 = vpop.f32.mrf.mxu3  ;;  %v1946_v59 = vrot.slane %v1945_v51, 4  ;;  %v1970_v0 = vrot.slane %v1969_v58, 4 }
  0xd1   : > { %4465 = vmatmul.msk.bf16.gmra.mxu1 %vm675_vm4, %v4973_v60  ;;  %v1950_v60 = vrot.slane %v1948_v52, 5  ;;  %v4975_v52 = vld [vmem:[%s5309_s19 + $0x60] sm:$0xff] }
  0xd2   : > { %v5687_v15 = vpop.f32.mrf.mxu1 }
  0xd3   : > { %v1951_v12 = vsel %vm5321_vm3, %v1946_v59, %v1950_v60  ;;  %v1218_v60 = vunpack.c.l.b16 %v1147_v48 }
  0xd4   : > { %v2161_v21 = vunpack.c.l.b16 %v1951_v12  ;;  %v4648_v12 = vld [vmem:[%s5309_s19 + $0x78] sm:$0xf] }
  0xd5   : > { %v1977_v23 = vshrl.u32 %v4648_v12, 16 }
  0xd6   : > { %v5690_v26 = vpop.f32.mrf.mxu2  ;;  %4498 = vmatmul.msk.bf16.gmra.mxu2 %vm675_vm4, %v1240_v11  ;;  %v1941_v11 = vsel %vm5321_vm3, %v1936_v43, %v1940_v1  ;;  %v1958_v1 = vrot.slane %v1956_v16, 5  ;;  %v5081_v16 = vld [vmem:[%s5309_s19 + $0x70] sm:$0xf] }
  0xd7   : > { %v2160_v35 = vunpack.c.l.b16 %v1941_v11  ;;  %v1974_v11 = vrot.slane %v1972_v20, 5  ;;  %v1153_v28 = vrot.slane %v5081_v16, 5 }
  0xd9   : > { %v5695_v41 = vpop.f32.mrf.mxu0  ;;  %v2185_v27 = vpack.c.b16 %v2161_v21, %v2160_v35  ;;  %v1975_v31 = vsel %vm5321_vm3, %v1970_v0, %v1974_v11  ;;  %v1990_v35 = vshrl.u32 %v4649_v14, 16 }
  0xda   : > { %v5698_v47 = vpop.f32.mrf.mxu3 }
  0xdb   : > { %4611 = vmatmul.msk.bf16.gmra.mxu3 %vm675_vm4, %v4989_v30  ;;  %v4990_v30 = vld [vmem:[%s5309_s19 + $0x60] sm:$0xff] }
  0xde   : > { %v5706_v55 = vpop.f32.mrf.mxu1  ;;  %v5708_v56 = vpop.f32.mrf.mxu2 }
  0xe0   : > { %4676 = vmatmul.msk.bf16.gmra.mxu0 %vm675_vm4, %v2184_v50  ;;  %v1150_v50 = vsel %vm5495_vm7, %v1148_v33, %v1149_v29  ;;  %v1980_v29 = vshll.u32 %v4648_v12, 16  ;;  %v1986_v33 = vshll.u32 %v4649_v14, 16  ;;  %v4976_v14 = vld [vmem:[%s5309_s19 + $0x6c] sm:$0xff] }
  0xe1   : > { %4466 = vmatmul.msk.bf16.gmra.mxu1 %vm675_vm4, %v4974_v53  ;;  %v5714_v6 = vpop.f32.mrf.mxu0  ;;  %v1959_v53 = vor.u32 %v1958_v1, %v1955_v42  ;;  %v5082_v1 = vld [vmem:[%s5309_s19 + $0x74] sm:$0x1] }
  0xe2   : > { %v5717_v10 = vpop.f32.mrf.mxu3  ;;  %v1156_v44 = vrot.slane %v5082_v1, 5  ;;  %v1982_v58 = vrot.slane %v1980_v29, 5 }
  0xe3   : > { %v1960_v7 = vrot.slane %v1959_v53, 4  ;;  %v1979_v53 = vrot.slane %v1977_v23, 4 }
  0xe5   : > { %v1983_v12 = vor.u32 %v1982_v58, %v1979_v53  ;;  %v1047_v58 = vld [vmem:[%s5309_s19 + $0x78] sm:$0xe] }
  0xe6   : > { %4499 = vmatmul.msk.bf16.gmra.mxu2 %vm675_vm4, %v1241_v61  ;;  %v5725_v22 = vpop.f32.mrf.mxu1  ;;  %v1219_v61 = vunpack.c.l.b16 %v1150_v50  ;;  %v4484_v50 = vrot.slane %v1046_v19, 9 }
  0xe8   : > { %v1242_v13 = vpack.c.b16 %v1219_v61, %v1218_v60  ;;  %v1992_v60 = vrot.slane %v1990_v35, 4  ;;  %v1154_v0 = vsel %vm5495_vm7, %v4484_v50, %v1153_v28 }
  0xe9   : > { %v5729_v32 = vpop.f32.mrf.mxu2 }
  0xeb   : > { %4612 = vmatmul.msk.bf16.gmra.mxu3 %vm675_vm4, %v4990_v30  ;;  %v1965_v30 = vsel %vm5321_vm3, %v1960_v7, %v1964_v40  ;;  %v4650_v7 = vld [vmem:[%s5309_s19 + $0x80] sm:$0x1] }
  0xec   : > { %v2162_v40 = vunpack.c.l.b16 %v1965_v30  ;;  %v1996_v19 = vshll.u32 %v4650_v7, 16 }
  0xed   : > { %v5737_v51 = vpop.f32.mrf.mxu0 }
  0xee   : > { %v5740_v43 = vpop.f32.mrf.mxu3  ;;  %v957_v59 = vpop.f32.mrf.mxu1  ;;  %v1998_v1 = vrot.slane %v1996_v19, 5  ;;  %v4485_v19 = vrot.slane %v1047_v58, 9 }
  0xef   : > { %v958_v62 = vadd.f32 %v957_v59, %v5612_v39  ;;  %v1988_v59 = vrot.slane %v1986_v33, 5  ;;  %v1984_v33 = vrot.slane %v1983_v12, 4 }
  0xf0   : > { %4677 = vmatmul.msk.bf16.gmra.mxu0 %vm675_vm4, %v2185_v27  ;;  %v1155_v27 = vrot.slane %v1153_v28, 4 }
  0xf1   : > { %v5744_v5 = vpop.f32.mrf.mxu2  ;;  %4467 = vmatmul.msk.bf16.gmra.mxu1 %vm675_vm4, %v4975_v52  ;;  %v2163_v52 = vunpack.c.l.b16 %v1975_v31  ;;  %v1993_v16 = vor.u32 %v1992_v60, %v1988_v59 }
  0xf3   : > { %v2186_v11 = vpack.c.b16 %v2163_v52, %v2162_v40  ;;  %v4652_v40 = vld [vmem:[%s5309_s19 + $0x88] sm:$0xf]  ;;  %v5083_v52 = vld [vmem:[%s5309_s19 + $0x7c] sm:$0xf] }
  0xf4   : > { %v1160_v53 = vrot.slane %v5083_v52, 5 }
  0xf5   : > { %v5751_v39 = vpop.f32.mrf.mxu0 }
  0xf6   : > { %v5757_v21 = vpop.f32.mrf.mxu3  ;;  %4500 = vmatmul.msk.bf16.gmra.mxu2 %vm675_vm4, %v1242_v13  ;;  %v959_v42 = vpop.f32.mrf.mxu1 }
  0xf7   : > { %v960_v48 = vadd.f32 %v959_v42, %v5637_v8  ;;  %v1157_v8 = vsel %vm5495_vm7, %v1155_v27, %v1156_v44  ;;  %v1994_v42 = vrot.slane %v1993_v16, 4  ;;  %v4651_v44 = vld [vmem:[%s5309_s19 + $0x84] sm:$0xf]  ;;  %v4992_v16 = vld [vmem:[%s5309_s19 + $0x78] sm:$0xff] }
  0xf8   : > { %v1221_v30 = vunpack.c.l.b16 %v1157_v8  ;;  %v2004_v7 = vshll.u32 %v4651_v44, 16  ;;  %v2014_v8 = vshrl.u32 %v4652_v40, 16 }
  0xf9   : > { %v1310_v20 = vpop.f32.mrf.mxu2 }
  0xfa   : > { %v1390_v61 = vadd.f32 %v1310_v20, %v958_v62  ;;  %v1220_v62 = vunpack.c.l.b16 %v1154_v0  ;;  %v2001_v20 = vshrl.u32 %v4651_v44, 16  ;;  %v2010_v0 = vshll.u32 %v4652_v40, 16 }
  0xfb   : > { %4613 = vmatmul.msk.bf16.gmra.mxu3 %vm675_vm4, %v4991_v49 }
  0xfc   : > { %v1243_v27 = vpack.c.b16 %v1221_v30, %v1220_v62  ;;  %v2003_v30 = vrot.slane %v2001_v20, 4 }
  0xfd   : > { %v2254_v13 = vpop.f32.mrf.mxu0 }
  0xfe   : > { %v1600_v23 = vpop.f32.mrf.mxu3  ;;  %v962_v29 = vpop.f32.mrf.mxu1 }
  0xff   : > { %v1680_v31 = vadd.f32 %v1600_v23, %v1390_v61  ;;  %v963_v28 = vadd.f32 %v962_v29, %v5656_v38  ;;  %v1989_v38 = vsel %vm5321_vm3, %v1984_v33, %v1988_v59  ;;  %v1999_v61 = vsel %vm5321_vm3, %v1994_v42, %v1998_v1 }
 0x100   : > { %4678 = vmatmul.msk.bf16.gmra.mxu0 %vm675_vm4, %v2186_v11  ;;  %v5084_v11 = vld [vmem:[%s5309_s19 + $0x80] sm:$0x1]  ;;  %v1162_v23 = vrot.slane %v1160_v53, 4  ;;  %v2164_v29 = vunpack.c.l.b16 %v1989_v38  ;;  %v2165_v62 = vunpack.c.l.b16 %v1999_v61  ;;  %v2006_v33 = vrot.slane %v2004_v7, 5  ;;  %v4977_v38 = vld [vmem:[%s5309_s19 + $0x78] sm:$0xff] }
 0x101   : > { %v1312_v35 = vpop.f32.mrf.mxu2  ;;  %4468 = vmatmul.msk.bf16.gmra.mxu1 %vm675_vm4, %v4976_v14  ;;  %v5774_v49 = vadd.f32 %v2254_v13, %v1680_v31  ;;  %v1163_v12 = vrot.slane %v5084_v11, 5  ;;  %v2016_v42 = vrot.slane %v2014_v8, 4 }
 0x102   : > { %v1391_v50 = vadd.f32 %v1312_v35, %v960_v48  ;;  %v2012_v35 = vrot.slane %v2010_v0, 5  ;;  %v2187_v40 = vpack.c.b16 %v2165_v62, %v2164_v29  ;;  %v2007_v58 = vor.u32 %v2006_v33, %v2003_v30  ;;  %v4655_v29 = vld [vmem:[%s5309_s19 + $0x94] sm:$0xf]  ;;  %v5085_v62 = vld [vmem:[%s5309_s19 + $0x88] sm:$0xf] }
 0x103   : > { %v1167_v30 = vrot.slane %v5085_v62, 5 }
 0x104   : > { %v2017_v20 = vor.u32 %v2016_v42, %v2012_v35 }
 0x105   : > { %v2256_v60 = vpop.f32.mrf.mxu0 }
 0x106   : > { %v1602_v48 = vpop.f32.mrf.mxu3  ;;  %4501 = vmatmul.msk.bf16.gmra.mxu2 %vm675_vm4, %v1243_v27  ;;  %v964_v13 = vpop.f32.mrf.mxu1  ;;  %v4653_v27 = vld [vmem:[%s5309_s19 + $0x8c] sm:$0x1] }
 0x107   : > { %v1681_v14 = vadd.f32 %v1602_v48, %v1391_v50  ;;  %v965_v59 = vadd.f32 %v964_v13, %v5674_v3  ;;  %v1161_v50 = vsel %vm5495_vm7, %v4485_v19, %v1160_v53  ;;  %v1164_v3 = vsel %vm5495_vm7, %v1162_v23, %v1163_v12 }
 0x108   : > { %v2020_v61 = vshll.u32 %v4653_v27, 16  ;;  %v1223_v0 = vunpack.c.l.b16 %v1164_v3  ;;  %v2008_v12 = vrot.slane %v2007_v58, 4  ;;  %v2018_v48 = vrot.slane %v2017_v20, 4  ;;  %v4993_v20 = vld [vmem:[%s5309_s19 + $0x84] sm:$0xff] }
 0x109   : > { %v1315_v31 = vpop.f32.mrf.mxu2  ;;  %v5787_v1 = vadd.f32 %v2256_v60, %v1681_v14  ;;  %v4654_v14 = vld [vmem:[%s5309_s19 + $0x90] sm:$0xf]  ;;  %v2038_v3 = vshrl.u32 %v4655_v29, 16 }
 0x10a   : > { %v1392_v44 = vadd.f32 %v1315_v31, %v963_v28  ;;  %v1222_v28 = vunpack.c.l.b16 %v1161_v50  ;;  %v2022_v13 = vrot.slane %v2020_v61, 5  ;;  %v1048_v31 = vld [vmem:[%s5309_s19 + $0x84] sm:$0xe]  ;;  %v2028_v33 = vshll.u32 %v4654_v14, 16 }
 0x10b   : > { %4614 = vmatmul.msk.bf16.gmra.mxu3 %vm675_vm4, %v4992_v16  ;;  %v2034_v50 = vshll.u32 %v4655_v29, 16 }
 0x10c   : > { %v1244_v23 = vpack.c.b16 %v1223_v0, %v1222_v28  ;;  %v2023_v27 = vsel %vm5321_vm3, %v2018_v48, %v2022_v13  ;;  %v2040_v48 = vrot.slane %v2038_v3, 4 }
 0x10d   : > { %v2259_v52 = vpop.f32.mrf.mxu0 }
 0x10e   : > { %v1605_v7 = vpop.f32.mrf.mxu3  ;;  %v967_v60 = vpop.f32.mrf.mxu1 }
 0x10f   : > { %v1682_v8 = vadd.f32 %v1605_v7, %v1392_v44  ;;  %v968_v53 = vadd.f32 %v967_v60, %v5695_v41  ;;  %v2025_v41 = vshrl.u32 %v4654_v14, 16  ;;  %v2013_v44 = vsel %vm5321_vm3, %v2008_v12, %v2012_v35 }
 0x110   : > { %4679 = vmatmul.msk.bf16.gmra.mxu0 %vm675_vm4, %v2187_v40  ;;  %v5086_v40 = vld [vmem:[%s5309_s19 + $0x8c] sm:$0x1]  ;;  %v4486_v7 = vrot.slane %v1048_v31, 9  ;;  %v1169_v60 = vrot.slane %v1167_v30, 4  ;;  %v2166_v28 = vunpack.c.l.b16 %v2013_v44  ;;  %v2167_v35 = vunpack.c.l.b16 %v2023_v27 }
 0x111   : > { %v1317_v11 = vpop.f32.mrf.mxu2  ;;  %4469 = vmatmul.msk.bf16.gmra.mxu1 %vm675_vm4, %v4977_v38  ;;  %v5800_v16 = vadd.f32 %v2259_v52, %v1682_v8  ;;  %v1170_v52 = vrot.slane %v5086_v40, 5  ;;  %v2027_v0 = vrot.slane %v2025_v41, 4  ;;  %v2030_v8 = vrot.slane %v2028_v33, 5  ;;  %v4978_v41 = vld [vmem:[%s5309_s19 + $0x84] sm:$0xff] }
 0x112   : > { %v1393_v19 = vadd.f32 %v1317_v11, %v965_v59  ;;  %v2036_v12 = vrot.slane %v2034_v50, 5  ;;  %v2188_v29 = vpack.c.b16 %v2167_v35, %v2166_v28  ;;  %v4658_v28 = vld [vmem:[%s5309_s19 + $0xa0] sm:$0xf]  ;;  %v5087_v35 = vld [vmem:[%s5309_s19 + $0x94] sm:$0xf] }
 0x113   : > { %v2031_v62 = vor.u32 %v2030_v8, %v2027_v0  ;;  %v1174_v0 = vrot.slane %v5087_v35, 5  ;;  %v1049_v8 = vld [vmem:[%s5309_s19 + $0x90] sm:$0xe] }
 0x114   : > { %v2041_v33 = vor.u32 %v2040_v48, %v2036_v12 }
 0x115   : > { %v2261_v42 = vpop.f32.mrf.mxu0  ;;  %v2032_v40 = vrot.slane %v2031_v62, 4 }
 0x116   : > { %v1607_v59 = vpop.f32.mrf.mxu3  ;;  %4502 = vmatmul.msk.bf16.gmra.mxu2 %vm675_vm4, %v1244_v23  ;;  %v969_v38 = vpop.f32.mrf.mxu1  ;;  %v4656_v23 = vld [vmem:[%s5309_s19 + $0x98] sm:$0x1] }
 0x117   : > { %v1683_v58 = vadd.f32 %v1607_v59, %v1393_v19  ;;  %v970_v61 = vadd.f32 %v969_v38, %v5714_v6  ;;  %v1168_v19 = vsel %vm5495_vm7, %v4486_v7, %v1167_v30  ;;  %v1171_v6 = vsel %vm5495_vm7, %v1169_v60, %v1170_v52 }
 0x118   : > { %v2044_v44 = vshll.u32 %v4656_v23, 16  ;;  %v1225_v50 = vunpack.c.l.b16 %v1171_v6  ;;  %v2042_v59 = vrot.slane %v2041_v33, 4  ;;  %v2062_v6 = vshrl.u32 %v4658_v28, 16  ;;  %v4994_v33 = vld [vmem:[%s5309_s19 + $0x90] sm:$0xff] }
 0x119   : > { %v1320_v11 = vpop.f32.mrf.mxu2  ;;  %v5813_v13 = vadd.f32 %v2261_v42, %v1683_v58  ;;  %v4657_v58 = vld [vmem:[%s5309_s19 + $0x9c] sm:$0xf] }
 0x11a   : > { %v1394_v14 = vadd.f32 %v1320_v11, %v968_v53  ;;  %v1224_v53 = vunpack.c.l.b16 %v1168_v19  ;;  %v2046_v38 = vrot.slane %v2044_v44, 5  ;;  %v2049_v11 = vshrl.u32 %v4657_v58, 16 }
 0x11b   : > { %4615 = vmatmul.msk.bf16.gmra.mxu3 %vm675_vm4, %v4993_v20  ;;  %v2052_v23 = vshll.u32 %v4657_v58, 16  ;;  %v2058_v19 = vshll.u32 %v4658_v28, 16  ;;  %v4487_v44 = vrot.slane %v1049_v8, 9 }
 0x11c   : > { %v1245_v60 = vpack.c.b16 %v1225_v50, %v1224_v53  ;;  %v2051_v50 = vrot.slane %v2049_v11, 4 }
 0x11d   : > { %v2264_v31 = vpop.f32.mrf.mxu0 }
 0x11e   : > { %v1610_v27 = vpop.f32.mrf.mxu3  ;;  %v972_v42 = vpop.f32.mrf.mxu1 }
 0x11f   : > { %v1684_v3 = vadd.f32 %v1610_v27, %v1394_v14  ;;  %v973_v30 = vadd.f32 %v972_v42, %v5737_v51  ;;  %v2037_v51 = vsel %vm5321_vm3, %v2032_v40, %v2036_v12  ;;  %v2047_v14 = vsel %vm5321_vm3, %v2042_v59, %v2046_v38 }
 0x120   : > { %4680 = vmatmul.msk.bf16.gmra.mxu0 %vm675_vm4, %v2188_v29  ;;  %v5088_v29 = vld [vmem:[%s5309_s19 + $0x98] sm:$0x1]  ;;  %v1176_v27 = vrot.slane %v1174_v0, 4  ;;  %v2168_v42 = vunpack.c.l.b16 %v2037_v51  ;;  %v2169_v53 = vunpack.c.l.b16 %v2047_v14  ;;  %v2054_v40 = vrot.slane %v2052_v23, 5  ;;  %v4979_v51 = vld [vmem:[%s5309_s19 + $0x90] sm:$0xff] }
 0x121   : > { %v1322_v52 = vpop.f32.mrf.mxu2  ;;  %4470 = vmatmul.msk.bf16.gmra.mxu1 %vm675_vm4, %v4978_v41  ;;  %v5826_v20 = vadd.f32 %v2264_v31, %v1684_v3  ;;  %v1177_v62 = vrot.slane %v5088_v29, 5  ;;  %v2064_v59 = vrot.slane %v2062_v6, 4  ;;  %v4660_v29 = vld [vmem:[%s5309_s19 + $0xa8] sm:$0xf] }
 0x122   : > { %v1395_v7 = vadd.f32 %v1322_v52, %v970_v61  ;;  %v2060_v52 = vrot.slane %v2058_v19, 5  ;;  %v2189_v28 = vpack.c.b16 %v2169_v53, %v2168_v42  ;;  %v2055_v8 = vor.u32 %v2054_v40, %v2051_v50  ;;  %v5089_v53 = vld [vmem:[%s5309_s19 + $0xa0] sm:$0xf]  ;;  %v1050_v40 = vld [vmem:[%s5309_s19 + $0x9c] sm:$0xe] }
 0x123   : > { %v2073_v42 = vshrl.u32 %v4660_v29, 16  ;;  %v1181_v50 = vrot.slane %v5089_v53, 5 }
 0x124   : > { %v2065_v11 = vor.u32 %v2064_v59, %v2060_v52 }
 0x125   : > { %v2266_v48 = vpop.f32.mrf.mxu0 }
 0x126   : > { %v1612_v61 = vpop.f32.mrf.mxu3  ;;  %4503 = vmatmul.msk.bf16.gmra.mxu2 %vm675_vm4, %v1245_v60  ;;  %v974_v31 = vpop.f32.mrf.mxu1  ;;  %v4659_v60 = vld [vmem:[%s5309_s19 + $0xa4] sm:$0x1] }
 0x127   : > { %v1685_v41 = vadd.f32 %v1612_v61, %v1395_v7  ;;  %v975_v12 = vadd.f32 %v974_v31, %v5751_v39  ;;  %v1175_v39 = vsel %vm5495_vm7, %v4487_v44, %v1174_v0  ;;  %v1178_v7 = vsel %vm5495_vm7, %v1176_v27, %v1177_v62  ;;  %v4661_v27 = vld [vmem:[%s5309_s19 + $0xac] sm:$0xf] }
 0x128   : > { %v2068_v14 = vshll.u32 %v4659_v60, 16  ;;  %v1227_v19 = vunpack.c.l.b16 %v1178_v7  ;;  %v2056_v62 = vrot.slane %v2055_v8, 4  ;;  %v2066_v61 = vrot.slane %v2065_v11, 4 }
 0x129   : > { %v1325_v3 = vpop.f32.mrf.mxu2  ;;  %v5839_v38 = vadd.f32 %v2266_v48, %v1685_v41  ;;  %v2086_v7 = vshrl.u32 %v4661_v27, 16  ;;  %v2075_v8 = vrot.slane %v2073_v42, 4 }
 0x12a   : > { %v1396_v58 = vadd.f32 %v1325_v3, %v973_v30  ;;  %v1226_v30 = vunpack.c.l.b16 %v1175_v39  ;;  %v2070_v31 = vrot.slane %v2068_v14, 5  ;;  %v2076_v3 = vshll.u32 %v4660_v29, 16  ;;  %v4995_v14 = vld [vmem:[%s5309_s19 + $0x9c] sm:$0xff] }
 0x12b   : > { %4616 = vmatmul.msk.bf16.gmra.mxu3 %vm675_vm4, %v4994_v33  ;;  %v2082_v39 = vshll.u32 %v4661_v27, 16 }
 0x12c   : > { %v1246_v44 = vpack.c.b16 %v1227_v19, %v1226_v30  ;;  %v2071_v60 = vsel %vm5321_vm3, %v2066_v61, %v2070_v31  ;;  %v1183_v30 = vrot.slane %v1181_v50, 4  ;;  %v2078_v19 = vrot.slane %v2076_v3, 5  ;;  %v4980_v3 = vld [vmem:[%s5309_s19 + $0x9c] sm:$0xff] }
 0x12d   : > { %v2269_v35 = vpop.f32.mrf.mxu0  ;;  %v2171_v29 = vunpack.c.l.b16 %v2071_v60  ;;  %v2088_v61 = vrot.slane %v2086_v7, 4 }
 0x12e   : > { %v1615_v48 = vpop.f32.mrf.mxu3  ;;  %v977_v23 = vpop.f32.mrf.mxu1  ;;  %v2079_v53 = vor.u32 %v2078_v19, %v2075_v8 }
 0x12f   : > { %v1686_v6 = vadd.f32 %v1615_v48, %v1396_v58  ;;  %v2061_v58 = vsel %vm5321_vm3, %v2056_v62, %v2060_v52  ;;  %v4488_v48 = vrot.slane %v1050_v40, 9  ;;  %v978_v52 = vadd.f32 %v977_v23, %v5593_v4 }
 0x130   : > { %4681 = vmatmul.msk.bf16.gmra.mxu0 %vm675_vm4, %v2189_v28  ;;  %v5090_v28 = vld [vmem:[%s5309_s19 + $0xa4] sm:$0x1]  ;;  %v2084_v62 = vrot.slane %v2082_v39, 5 }
 0x131   : > { %v1327_v0 = vpop.f32.mrf.mxu2  ;;  %4471 = vmatmul.msk.bf16.gmra.mxu1 %vm675_vm4, %v4979_v51  ;;  %v5851_v41 = vadd.f32 %v2269_v35, %v1686_v6  ;;  %v1184_v35 = vrot.slane %v5090_v28, 5  ;;  %v2170_v6 = vunpack.c.l.b16 %v2061_v58 }
 0x132   : > { %v1397_v33 = vadd.f32 %v1327_v0, %v975_v12  ;;  %v2089_v40 = vor.u32 %v2088_v61, %v2084_v62 }
 0x133   : > { %v1185_v42 = vsel %vm5495_vm7, %v1183_v30, %v1184_v35  ;;  %v2190_v4 = vpack.c.b16 %v2171_v29, %v2170_v6 }
 0x134   : > { %v1229_v7 = vunpack.c.l.b16 %v1185_v42  ;;  %v2090_v8 = vrot.slane %v2089_v40, 4 }
 0x135   : > { %v2271_v59 = vpop.f32.mrf.mxu0 }
 0x136   : > { %v1617_v12 = vpop.f32.mrf.mxu3  ;;  %4504 = vmatmul.msk.bf16.gmra.mxu2 %vm675_vm4, %v1246_v44  ;;  %v979_v51 = vpop.f32.mrf.mxu1  ;;  %v4662_v44 = vld [vmem:[%s5309_s19 + $0xb0] sm:$0x1] }
 0x137   : > { %v1687_v11 = vadd.f32 %v1617_v12, %v1397_v33  ;;  %v1182_v33 = vsel %vm5495_vm7, %v4488_v48, %v1181_v50  ;;  %v2092_v58 = vshll.u32 %v4662_v44, 16  ;;  %v2080_v12 = vrot.slane %v2079_v53, 4  ;;  %v4664_v48 = vld [vmem:[%s5309_s19 + $0xb8] sm:$0xf]  ;;  %v5092_v53 = vld [vmem:[%s5309_s19 + $0xb0] sm:$0x1] }
 0x138   : > { %v1228_v39 = vunpack.c.l.b16 %v1182_v33  ;;  %v980_v50 = vadd.f32 %v979_v51, %v5606_v34  ;;  %v1051_v34 = vld [vmem:[%s5309_s19 + $0xa8] sm:$0xe]  ;;  %v2106_v51 = vshll.u32 %v4664_v48, 16  ;;  %v2110_v44 = vshrl.u32 %v4664_v48, 16 }
 0x139   : > { %v1330_v0 = vpop.f32.mrf.mxu2  ;;  %v5864_v31 = vadd.f32 %v2271_v59, %v1687_v11  ;;  %v4663_v11 = vld [vmem:[%s5309_s19 + $0xb4] sm:$0xf]  ;;  %v2085_v29 = vsel %vm5321_vm3, %v2080_v12, %v2084_v62 }
 0x13a   : > { %v1398_v27 = vadd.f32 %v1330_v0, %v978_v52  ;;  %v1247_v52 = vpack.c.b16 %v1229_v7, %v1228_v39  ;;  %v2097_v6 = vshrl.u32 %v4663_v11, 16  ;;  %v5091_v0 = vld [vmem:[%s5309_s19 + $0xac] sm:$0xf]  ;;  %v4489_v39 = vrot.slane %v1051_v34, 9 }
 0x13b   : > { %4617 = vmatmul.msk.bf16.gmra.mxu3 %vm675_vm4, %v4995_v14  ;;  %v2094_v14 = vrot.slane %v2092_v58, 5  ;;  %v1188_v61 = vrot.slane %v5091_v0, 5  ;;  %v4981_v34 = vld [vmem:[%s5309_s19 + $0xa8] sm:$0xff] }
 0x13c   : > { %v2099_v62 = vrot.slane %v2097_v6, 4 }
 0x13d   : > { %v2274_v23 = vpop.f32.mrf.mxu0  ;;  %v2095_v42 = vsel %vm5321_vm3, %v2090_v8, %v2094_v14  ;;  %v1190_v7 = vrot.slane %v1188_v61, 4  ;;  %v4665_v14 = vld [vmem:[%s5309_s19 + $0xbc] sm:$0x1] }
 0x13e   : > { %v1620_v59 = vpop.f32.mrf.mxu3  ;;  %v982_v60 = vpop.f32.mrf.mxu1 }
 0x13f   : > { %v1688_v28 = vadd.f32 %v1620_v59, %v1398_v27  ;;  %v2100_v27 = vshll.u32 %v4663_v11, 16  ;;  %v4996_v59 = vld [vmem:[%s5309_s19 + $0xa8] sm:$0xff]  ;;  %v983_v12 = vadd.f32 %v982_v60, %v5626_v2  ;;  %v2173_v11 = vunpack.c.l.b16 %v2095_v42 }
 0x140   : > { %4682 = vmatmul.msk.bf16.gmra.mxu0 %vm675_vm4, %v2190_v4  ;;  %v1191_v4 = vrot.slane %v5092_v53, 5 }
 0x141   : > { %v1332_v35 = vpop.f32.mrf.mxu2  ;;  %4472 = vmatmul.msk.bf16.gmra.mxu1 %vm675_vm4, %v4980_v3  ;;  %v5878_v30 = vadd.f32 %v2274_v23, %v1688_v28  ;;  %v2172_v3 = vunpack.c.l.b16 %v2085_v29  ;;  %v2102_v28 = vrot.slane %v2100_v27, 5  ;;  %v2116_v29 = vshll.u32 %v4665_v14, 16 }
 0x142   : > { %v1399_v19 = vadd.f32 %v1332_v35, %v980_v50  ;;  %v2108_v50 = vrot.slane %v2106_v51, 5  ;;  %v2112_v35 = vrot.slane %v2110_v44, 4 }
 0x143   : > { %v2103_v6 = vor.u32 %v2102_v28, %v2099_v62  ;;  %v2191_v2 = vpack.c.b16 %v2173_v11, %v2172_v3  ;;  %v2118_v3 = vrot.slane %v2116_v29, 5  ;;  %v5093_v62 = vld [vmem:[%s5309_s19 + $0x10] sm:$0xf]  ;;  %v1052_v11 = vld [vmem:[%s5309_s19 + $0xb4] sm:$0xe] }
 0x144   : > { %v2113_v60 = vor.u32 %v2112_v35, %v2108_v50  ;;  %v5094_v35 = vld [vmem:[%s5309_s19 + $0xb8] sm:$0xf] }
 0x145   : > { %v2276_v33 = vpop.f32.mrf.mxu0 }
 0x146   : > { %v1622_v23 = vpop.f32.mrf.mxu3  ;;  %4505 = vmatmul.msk.bf16.gmra.mxu2 %vm675_vm4, %v1247_v52  ;;  %v984_v40 = vpop.f32.mrf.mxu1  ;;  %v1192_v52 = vsel %vm5495_vm7, %v1190_v7, %v1191_v4  ;;  %v4667_v7 = vld [vmem:[%s5309_s19 + $0xc4] sm:$0xf] }
 0x147   : > { %v1689_v58 = vadd.f32 %v1622_v23, %v1399_v19  ;;  %v1189_v19 = vsel %vm5495_vm7, %v4489_v39, %v1188_v61  ;;  %v1231_v42 = vunpack.c.l.b16 %v1192_v52  ;;  %v2104_v61 = vrot.slane %v2103_v6, 4  ;;  %v4666_v39 = vld [vmem:[%s5309_s19 + $0xc0] sm:$0xf] }
 0x148   : > { %v985_v4 = vadd.f32 %v984_v40, %v5645_v17  ;;  %v2114_v23 = vrot.slane %v2113_v60, 4  ;;  %v2130_v52 = vshll.u32 %v4667_v7, 16 }
 0x149   : > { %v1335_v8 = vpop.f32.mrf.mxu2  ;;  %v5891_v48 = vadd.f32 %v2276_v33, %v1689_v58  ;;  %v1230_v33 = vunpack.c.l.b16 %v1189_v19  ;;  %v2432_v58 = vrot.slane %v5093_v62, 5  ;;  %v2109_v17 = vsel %vm5321_vm3, %v2104_v61, %v2108_v50  ;;  %v4686_v61 = vld [vmem:[%s5309_s19 + $0xc] sm:$0xe] }
 0x14a   : > { %v1400_v0 = vadd.f32 %v1335_v8, %v983_v12  ;;  %v1195_v8 = vrot.slane %v5094_v35, 5  ;;  %v2119_v40 = vsel %vm5321_vm3, %v2114_v23, %v2118_v3  ;;  %v2124_v19 = vshll.u32 %v4666_v39, 16  ;;  %v4997_v23 = vld [vmem:[%s5309_s19 + $0xb4] sm:$0xff] }
 0x14b   : > { %4618 = vmatmul.msk.bf16.gmra.mxu3 %vm675_vm4, %v4996_v59  ;;  %v1248_v12 = vpack.c.b16 %v1231_v42, %v1230_v33  ;;  %v2434_v6 = vrot.slane %v2432_v58, 4  ;;  %v5096_v33 = vld [vmem:[%s5309_s19 + $0xbc] sm:$0x1]  ;;  %v2174_v3 = vunpack.c.l.b16 %v2109_v17  ;;  %v2175_v62 = vunpack.c.l.b16 %v2119_v40 }
 0x14d   : > { %v2279_v27 = vpop.f32.mrf.mxu0 }
 0x14e   : > { %v1625_v51 = vpop.f32.mrf.mxu3  ;;  %v987_v44 = vpop.f32.mrf.mxu1 }
 0x14f   : > { %v1690_v53 = vadd.f32 %v1625_v51, %v1400_v0  ;;  %v2121_v0 = vshrl.u32 %v4666_v39, 16  ;;  %v2134_v51 = vshrl.u32 %v4667_v7, 16  ;;  %v988_v39 = vadd.f32 %v987_v44, %v5664_v54  ;;  %v4668_v54 = vld [vmem:[%s5309_s19 + $0xc8] sm:$0x1] }
 0x150   : > { %4683 = vmatmul.msk.bf16.gmra.mxu0 %vm675_vm4, %v2191_v2  ;;  %v5095_v2 = vld [vmem:[%s5309_s19 + $0x14] sm:$0x1]  ;;  %v2132_v7 = vrot.slane %v2130_v52, 5 }
 0x151   : > { %v1337_v59 = vpop.f32.mrf.mxu2  ;;  %4473 = vmatmul.msk.bf16.gmra.mxu1 %vm675_vm4, %v4981_v34  ;;  %v5907_v14 = vadd.f32 %v2279_v27, %v1690_v53  ;;  %v2435_v60 = vrot.slane %v5095_v2, 5  ;;  %v4490_v34 = vrot.slane %v1052_v11, 9  ;;  %v1198_v27 = vrot.slane %v5096_v33, 5 }
 0x152   : > { %v1401_v28 = vadd.f32 %v1337_v59, %v985_v4  ;;  %v1197_v53 = vrot.slane %v1195_v8, 4  ;;  %v4702_v59 = vrot.slane %v4686_v61, 9  ;;  %v2123_v35 = vrot.slane %v2121_v0, 4  ;;  %v4982_v61 = vld [vmem:[%s5309_s19 + $0xb4] sm:$0xff] }
 0x153   : > { %v2126_v11 = vrot.slane %v2124_v19, 5  ;;  %v1196_v33 = vsel %vm5495_vm7, %v4490_v34, %v1195_v8  ;;  %v2436_v17 = vsel %vm5495_vm7, %v2434_v6, %v2435_v60  ;;  %v4848_v19 = vld [vmem:[%s5309_s19 + $0x18] sm:$0xf]  ;;  %v2192_v8 = vpack.c.b16 %v2175_v62, %v2174_v3 }
 0x154   : > { %v2545_v0 = vunpack.c.l.b16 %v2436_v17  ;;  %v1232_v6 = vunpack.c.l.b16 %v1196_v33  ;;  %v3106_v17 = vshll.u32 %v4848_v19, 16 }
 0x155   : > { %v2281_v29 = vpop.f32.mrf.mxu0  ;;  %v2127_v52 = vor.u32 %v2126_v11, %v2123_v35 }
 0x156   : > { %v1627_v42 = vpop.f32.mrf.mxu3  ;;  %4506 = vmatmul.msk.bf16.gmra.mxu2 %vm675_vm4, %v1248_v12  ;;  %v989_v50 = vpop.f32.mrf.mxu1  ;;  %v2136_v12 = vrot.slane %v2134_v51, 4 }
 0x157   : > { %v1691_v4 = vadd.f32 %v1627_v42, %v1401_v28  ;;  %v2433_v28 = vsel %vm5495_vm7, %v4702_v59, %v2432_v58  ;;  %v1199_v42 = vsel %vm5495_vm7, %v1197_v53, %v1198_v27  ;;  %v5936_v27 = vld [vmem:[%s5309_s19 + $0x1c] sm:$0xf]  ;;  %v990_v3 = vadd.f32 %v989_v50, %v5687_v15 }
 0x158   : > { %v2544_v44 = vunpack.c.l.b16 %v2433_v28  ;;  %v1233_v60 = vunpack.c.l.b16 %v1199_v42  ;;  %v2137_v59 = vor.u32 %v2136_v12, %v2132_v7  ;;  %v3103_v28 = vshrl.u32 %v4848_v19, 16 }
 0x159   : > { %v1340_v2 = vpop.f32.mrf.mxu2  ;;  %v5932_v51 = vadd.f32 %v2281_v29, %v1691_v4  ;;  %v2128_v62 = vrot.slane %v2127_v52, 4  ;;  %v3112_v29 = vshll.u32 %v5936_v27, 16  ;;  %v3116_v4 = vshrl.u32 %v5936_v27, 16  ;;  %v4850_v52 = vld [vmem:[%s5309_s19 + $0x20] sm:$0x1] }
 0x15a   : > { %v1402_v40 = vadd.f32 %v1340_v2, %v988_v39  ;;  %v5930_v34 = vpack.c.b16 %v2545_v0, %v2544_v44  ;;  %v2140_v39 = vshll.u32 %v4668_v54, 16  ;;  %v1249_v11 = vpack.c.b16 %v1233_v60, %v1232_v6 }
 0x15b   : > { %4619 = vmatmul.msk.bf16.gmra.mxu3 %vm675_vm4, %v4997_v23  ;;  %v2138_v33 = vrot.slane %v2137_v59, 4  ;;  %v3105_v54 = vrot.slane %v3103_v28, 4  ;;  %v2133_v15 = vsel %vm5321_vm3, %v2128_v62, %v2132_v7  ;;  %v3114_v50 = vrot.slane %v3112_v29, 5 }
 0x15c   : > { %v2142_v12 = vrot.slane %v2140_v39, 5  ;;  %v3118_v0 = vrot.slane %v3116_v4, 4  ;;  %v2176_v39 = vunpack.c.l.b16 %v2133_v15 }
 0x15d   : > { %v2284_v58 = vpop.f32.mrf.mxu0 }
 0x15e   : > { %v1630_v53 = vpop.f32.mrf.mxu3  ;;  %v992_v2 = vpop.f32.mrf.mxu1  ;;  %v3119_v28 = vor.u32 %v3118_v0, %v3114_v50  ;;  %v5097_v0 = vld [vmem:[%s5309_s19 + $0x1c] sm:$0xf] }
 0x15f   : > { %v1692_v23 = vadd.f32 %v1630_v53, %v1402_v40  ;;  %v3108_v40 = vrot.slane %v3106_v17, 5  ;;  %v993_v53 = vadd.f32 %v992_v2, %v5706_v55  ;;  %v3122_v17 = vshll.u32 %v4850_v52, 16  ;;  %v5960_v2 = vld [vmem:[%s5309_s19 + $0x28] sm:$0xf] }
 0x160   : > { %4684 = vmatmul.msk.bf16.gmra.mxu0 %vm675_vm4, %v2192_v8  ;;  %v2143_v8 = vsel %vm5321_vm3, %v2138_v33, %v2142_v12  ;;  %v3120_v4 = vrot.slane %v3119_v28, 4  ;;  %v4851_v33 = vld [vmem:[%s5309_s19 + $0x24] sm:$0xf]  ;;  %v3774_v55 = vrot.slane %v5936_v27, 5 }
 0x161   : > { %v1342_v35 = vpop.f32.mrf.mxu2  ;;  %4474 = vmatmul.msk.bf16.gmra.mxu1 %vm675_vm4, %v4982_v61  ;;  %v5943_v44 = vadd.f32 %v2284_v58, %v1692_v23  ;;  %v3109_v60 = vor.u32 %v3108_v40, %v3105_v54  ;;  %v4998_v58 = vld [vmem:[%s5309_s19 + $0xc0] sm:$0xff]  ;;  %v2177_v7 = vunpack.c.l.b16 %v2143_v8  ;;  %v2439_v8 = vrot.slane %v5097_v0, 5 }
 0x162   : > { %v1403_v42 = vadd.f32 %v1342_v35, %v990_v3  ;;  %v3124_v35 = vrot.slane %v3122_v17, 5 }
 0x163   : > { %6700 = vst [vmem:[#allocation5_spill] sm:$0xff] %v5943_v44  ;;  %v3110_v62 = vrot.slane %v3109_v60, 4  ;;  %v2193_v29 = vpack.c.b16 %v2177_v7, %v2176_v39  ;;  %v3127_v39 = vshrl.u32 %v4851_v33, 16  ;;  %v3140_v7 = vshrl.u32 %v5960_v2, 16 }
 0x165   : > { %v2286_v19 = vpop.f32.mrf.mxu0  ;;  %v3115_v15 = vsel %vm5321_vm3, %v3110_v62, %v3114_v50  ;;  %v5098_v50 = vld [vmem:[%s5309_s19 + $0x20] sm:$0x1] }
 0x166   : > { %v1632_v61 = vpop.f32.mrf.mxu3  ;;  %4507 = vmatmul.msk.bf16.gmra.mxu2 %vm675_vm4, %v1249_v11  ;;  %v994_v6 = vpop.f32.mrf.mxu1  ;;  %v4913_v11 = vld [vmem:[%s5309_s19 + $0x18] sm:$0xe]  ;;  %v2442_v28 = vrot.slane %v5098_v50, 5 }
 0x167   : > { %v1693_v59 = vadd.f32 %v1632_v61, %v1403_v42  ;;  %v4929_v60 = vrot.slane %v4913_v11, 9  ;;  %v995_v27 = vadd.f32 %v994_v6, %v5725_v22  ;;  %v2441_v22 = vrot.slane %v2439_v8, 4 }
 0x169   : > { %v1345_v23 = vpop.f32.mrf.mxu2  ;;  %v5956_v12 = vadd.f32 %v2286_v19, %v1693_v59  ;;  %v3130_v19 = vshll.u32 %v4851_v33, 16  ;;  %v3125_v59 = vsel %vm5321_vm3, %v3120_v4, %v3124_v35  ;;  %v3488_v4 = vunpack.c.l.b16 %v3115_v15 }
 0x16a   : > { %v1404_v3 = vadd.f32 %v1345_v23, %v993_v53  ;;  %v3136_v53 = vshll.u32 %v5960_v2, 16  ;;  %v3776_v23 = vrot.slane %v3774_v55, 4  ;;  %v3489_v35 = vunpack.c.l.b16 %v3125_v59 }
 0x16b   : > { %4620 = vmatmul.msk.bf16.gmra.mxu3 %vm675_vm4, %v4998_v58  ;;  %6701 = vst [vmem:[#allocation6_spill] sm:$0xff] %v5956_v12  ;;  %v4687_v58 = vld [vmem:[%s5309_s19 + $0x18] sm:$0xe]  ;;  %v3129_v33 = vrot.slane %v3127_v39, 4  ;;  %v3775_v0 = vsel %vm5495_vm7, %v4929_v60, %v3774_v55  ;;  %v3142_v12 = vrot.slane %v3140_v7, 4 }
 0x16c   : > { %v4703_v11 = vrot.slane %v4687_v58, 9  ;;  %v3138_v50 = vrot.slane %v3136_v53, 5  ;;  %v3520_v60 = vpack.c.b16 %v3489_v35, %v3488_v4  ;;  %v3886_v58 = vunpack.c.l.b16 %v3775_v0  ;;  %v4854_v4 = vld [vmem:[%s5309_s19 + $0x30] sm:$0xf] }
 0x16d   : > { %v2289_v42 = vpop.f32.mrf.mxu0  ;;  %v3781_v35 = vrot.slane %v5960_v2, 5 }
 0x16e   : > { %v1635_v54 = vpop.f32.mrf.mxu3  ;;  %v997_v40 = vpop.f32.mrf.mxu1  ;;  %v2440_v15 = vsel %vm5495_vm7, %v4703_v11, %v2439_v8  ;;  %v3143_v53 = vor.u32 %v3142_v12, %v3138_v50 }
 0x16f   : > { %v1694_v61 = vadd.f32 %v1635_v54, %v1404_v3  ;;  %v3777_v3 = vrot.slane %v4850_v52, 5  ;;  %v3132_v54 = vrot.slane %v3130_v19, 5  ;;  %v5983_v52 = vld [vmem:[%s5309_s19 + $0x2c] sm:$0x1]  ;;  %v998_v19 = vadd.f32 %v997_v40, %v5608_v37 }
 0x170   : > { %4685 = vmatmul.msk.bf16.gmra.mxu0 %vm675_vm4, %v2193_v29  ;;  %v4999_v29 = vld [vmem:[%s5309_s19 + $0x18] sm:$0xff]  ;;  %v3146_v7 = vshll.u32 %v5983_v52, 16  ;;  %v3144_v11 = vrot.slane %v3143_v53, 4  ;;  %v5100_v53 = vld [vmem:[%s5309_s19 + $0x2c] sm:$0x1] }
 0x171   : > { %v1347_v17 = vpop.f32.mrf.mxu2  ;;  %4719 = vmatmul.msk.bf16.vlgmr.msra.gmra.mxu1 %vm675_vm4, %v5930_v34  ;;  %v5976_v6 = vadd.f32 %v2289_v42, %v1694_v61  ;;  %v3778_v34 = vsel %vm5495_vm7, %v3776_v23, %v3777_v3  ;;  %v2443_v61 = vsel %vm5495_vm7, %v2441_v22, %v2442_v28  ;;  %v3133_v39 = vor.u32 %v3132_v54, %v3129_v33  ;;  %v5999_v33 = vld [vmem:[%s5309_s19 + $0x34] sm:$0xf] }
 0x172   : > { %v1405_v62 = vadd.f32 %v1347_v17, %v995_v27  ;;  %v3887_v59 = vunpack.c.l.b16 %v3778_v34  ;;  %v2546_v23 = vunpack.c.l.b16 %v2440_v15  ;;  %v2547_v3 = vunpack.c.l.b16 %v2443_v61 }
 0x173   : > { %v3134_v28 = vrot.slane %v3133_v39, 4  ;;  %v3148_v22 = vrot.slane %v3146_v7, 5  ;;  %v2449_v7 = vrot.slane %v5100_v53, 5 }
 0x174   : > { %v2577_v40 = vpack.c.b16 %v2547_v3, %v2546_v23  ;;  %v3784_v23 = vrot.slane %v5983_v52, 5  ;;  %v6022_v52 = vld [vmem:[%s5309_s19 + $0x38] sm:$0x1] }
 0x175   : > { %v2291_v44 = vpop.f32.mrf.mxu0  ;;  %v3149_v39 = vsel %vm5321_vm3, %v3144_v11, %v3148_v22 }
 0x176   : > { %v1637_v27 = vpop.f32.mrf.mxu3  ;;  %4832 = vmatmul.msk.bf16.vlgmr.msra.gmra.mxu2 %vm675_vm4, %v4999_v29  ;;  %v999_v42 = vpop.f32.mrf.mxu1  ;;  %v3918_v29 = vpack.c.b16 %v3887_v59, %v3886_v58  ;;  %v4688_v58 = vld [vmem:[%s5309_s19 + $0x24] sm:$0xe]  ;;  %v3164_v59 = vshrl.u32 %v5999_v33, 16 }
 0x177   : > { %v1695_v55 = vadd.f32 %v1637_v27, %v1405_v62  ;;  %v4914_v62 = vld [vmem:[%s5309_s19 + $0x24] sm:$0xe]  ;;  %v5099_v27 = vld [vmem:[%s5309_s19 + $0x28] sm:$0xf]  ;;  %v1000_v2 = vadd.f32 %v999_v42, %v5629_v63 }
 0x178   : > { %v4930_v34 = vrot.slane %v4914_v62, 9  ;;  %v2446_v15 = vrot.slane %v5099_v27, 5  ;;  %v3166_v27 = vrot.slane %v3164_v59, 4  ;;  %v3170_v59 = vshll.u32 %v6022_v52, 16 }
 0x179   : > { %v1350_v17 = vpop.f32.mrf.mxu2  ;;  %v5995_v37 = vadd.f32 %v2291_v44, %v1695_v55  ;;  %v3151_v44 = vshrl.u32 %v4854_v4, 16  ;;  %v3154_v55 = vshll.u32 %v4854_v4, 16 }
 0x17a   : > { %v1406_v8 = vadd.f32 %v1350_v17, %v998_v19  ;;  %v3160_v19 = vshll.u32 %v5999_v33, 16  ;;  %v2448_v63 = vrot.slane %v2446_v15, 4  ;;  %v3782_v4 = vsel %vm5495_vm7, %v4930_v34, %v3781_v35 }
 0x17b   : > { %4897 = vmatmul.msk.bf16.vlgmr.msra.gmra.mxu3 %vm675_vm4, %v3520_v60  ;;  %v3139_v60 = vsel %vm5321_vm3, %v3134_v28, %v3138_v50  ;;  %v3783_v50 = vrot.slane %v3781_v35, 4  ;;  %v4704_v28 = vrot.slane %v4688_v58, 9  ;;  %v3153_v11 = vrot.slane %v3151_v44, 4 }
 0x17c   : > { %v3490_v62 = vunpack.c.l.b16 %v3139_v60  ;;  %v3156_v22 = vrot.slane %v3154_v55, 5  ;;  %v2450_v60 = vsel %vm5495_vm7, %v2448_v63, %v2449_v7  ;;  %v3888_v58 = vunpack.c.l.b16 %v3782_v4 }
 0x17d   : > { %v2294_v12 = vpop.f32.mrf.mxu0  ;;  %v3785_v53 = vsel %vm5495_vm7, %v3783_v50, %v3784_v23  ;;  %v2549_v23 = vunpack.c.l.b16 %v2450_v60  ;;  %v3172_v63 = vrot.slane %v3170_v59, 5 }
 0x17e   : > { %v1640_v54 = vpop.f32.mrf.mxu3  ;;  %v1002_v0 = vpop.f32.mrf.mxu1  ;;  %v3157_v44 = vor.u32 %v3156_v22, %v3153_v11  ;;  %v3788_v11 = vrot.slane %v5999_v33, 5  ;;  %v6038_v22 = vld [vmem:[%s5309_s19 + $0x40] sm:$0xf] }
 0x17f   : > { %v1696_v61 = vadd.f32 %v1640_v54, %v1406_v8  ;;  %v5000_v8 = vld [vmem:[%s5309_s19 + $0x24] sm:$0xff]  ;;  %v3162_v54 = vrot.slane %v3160_v19, 5  ;;  %v1003_v55 = vadd.f32 %v1002_v0, %v5648_v24 }
 0x180   : > { %4946 = vmatmul.msk.bf16.vlgmr.msra.gmra.mxu0 %vm675_vm4, %v3918_v29  ;;  %v3491_v29 = vunpack.c.l.b16 %v3149_v39  ;;  %v3889_v39 = vunpack.c.l.b16 %v3785_v53  ;;  %v3158_v7 = vrot.slane %v3157_v44, 4 }
 0x181   : > { %v1352_v17 = vpop.f32.mrf.mxu2  ;;  %4720 = vmatmul.msk.bf16.gmra.mxu1 %vm675_vm4, %v2577_v40  ;;  %v6015_v42 = vadd.f32 %v2294_v12, %v1696_v61  ;;  %v2447_v61 = vsel %vm5495_vm7, %v4704_v28, %v2446_v15  ;;  %v3167_v19 = vor.u32 %v3166_v27, %v3162_v54 }
 0x182   : > { %v1407_v3 = vadd.f32 %v1352_v17, %v1000_v2  ;;  %v3521_v34 = vpack.c.b16 %v3491_v29, %v3490_v62  ;;  %v2548_v50 = vunpack.c.l.b16 %v2447_v61  ;;  %v4857_v62 = vld [vmem:[%s5309_s19 + $0x3c] sm:$0xf] }
 0x183   : > { %v3168_v28 = vrot.slane %v3167_v19, 4  ;;  %v5102_v19 = vld [vmem:[%s5309_s19 + $0x38] sm:$0x1] }
 0x184   : > { %v2578_v29 = vpack.c.b16 %v2549_v23, %v2548_v50  ;;  %v2456_v59 = vrot.slane %v5102_v19, 5  ;;  %v3791_v50 = vrot.slane %v6022_v52, 5  ;;  %v6061_v52 = vld [vmem:[%s5309_s19 + $0x44] sm:$0x1] }
 0x185   : > { %v2296_v40 = vpop.f32.mrf.mxu0  ;;  %v3173_v44 = vsel %vm5321_vm3, %v3168_v28, %v3172_v63 }
 0x186   : > { %v1642_v2 = vpop.f32.mrf.mxu3  ;;  %4833 = vmatmul.msk.bf16.gmra.mxu2 %vm675_vm4, %v5000_v8  ;;  %v1004_v12 = vpop.f32.mrf.mxu1  ;;  %v3919_v8 = vpack.c.b16 %v3889_v39, %v3888_v58  ;;  %v4689_v58 = vld [vmem:[%s5309_s19 + $0x30] sm:$0xe]  ;;  %v3188_v39 = vshrl.u32 %v6038_v22, 16 }
 0x187   : > { %v1697_v35 = vadd.f32 %v1642_v2, %v1407_v3  ;;  %v4915_v3 = vld [vmem:[%s5309_s19 + $0x30] sm:$0xe]  ;;  %v5101_v2 = vld [vmem:[%s5309_s19 + $0x34] sm:$0xf]  ;;  %v1005_v33 = vadd.f32 %v1004_v12, %v5667_v57 }
 0x188   : > { %v4931_v53 = vrot.slane %v4915_v3, 9  ;;  %v2453_v61 = vrot.slane %v5101_v2, 5  ;;  %v3190_v2 = vrot.slane %v3188_v39, 4  ;;  %v3194_v39 = vshll.u32 %v6061_v52, 16 }
 0x189   : > { %v1355_v17 = vpop.f32.mrf.mxu2  ;;  %v6034_v24 = vadd.f32 %v2296_v40, %v1697_v35  ;;  %v3175_v40 = vshrl.u32 %v4857_v62, 16  ;;  %v3178_v35 = vshll.u32 %v4857_v62, 16 }
 0x18a   : > { %v1408_v15 = vadd.f32 %v1355_v17, %v1003_v55  ;;  %v3184_v55 = vshll.u32 %v6038_v22, 16  ;;  %v2455_v57 = vrot.slane %v2453_v61, 4  ;;  %v3789_v62 = vsel %vm5495_vm7, %v4931_v53, %v3788_v11 }
 0x18b   : > { %4898 = vmatmul.msk.bf16.gmra.mxu3 %vm675_vm4, %v3521_v34  ;;  %v3163_v34 = vsel %vm5321_vm3, %v3158_v7, %v3162_v54  ;;  %v3790_v54 = vrot.slane %v3788_v11, 4  ;;  %v4705_v7 = vrot.slane %v4689_v58, 9  ;;  %v3177_v28 = vrot.slane %v3175_v40, 4 }
 0x18c   : > { %v3492_v3 = vunpack.c.l.b16 %v3163_v34  ;;  %v3180_v63 = vrot.slane %v3178_v35, 5  ;;  %v2457_v34 = vsel %vm5495_vm7, %v2455_v57, %v2456_v59  ;;  %v3890_v58 = vunpack.c.l.b16 %v3789_v62 }
 0x18d   : > { %v2299_v0 = vpop.f32.mrf.mxu0  ;;  %v3792_v19 = vsel %vm5495_vm7, %v3790_v54, %v3791_v50  ;;  %v2551_v50 = vunpack.c.l.b16 %v2457_v34  ;;  %v3196_v57 = vrot.slane %v3194_v39, 5 }
 0x18e   : > { %v1645_v4 = vpop.f32.mrf.mxu3  ;;  %v1007_v27 = vpop.f32.mrf.mxu1  ;;  %v3181_v40 = vor.u32 %v3180_v63, %v3177_v28  ;;  %v3795_v28 = vrot.slane %v6038_v22, 5  ;;  %v6077_v63 = vld [vmem:[%s5309_s19 + $0x4c] sm:$0xf] }
 0x18f   : > { %v1698_v60 = vadd.f32 %v1645_v4, %v1408_v15  ;;  %v5001_v15 = vld [vmem:[%s5309_s19 + $0x30] sm:$0xff]  ;;  %v3186_v4 = vrot.slane %v3184_v55, 5  ;;  %v1008_v35 = vadd.f32 %v1007_v27, %v5690_v26 }
 0x190   : > { %4947 = vmatmul.msk.bf16.gmra.mxu0 %vm675_vm4, %v3919_v8  ;;  %v3493_v8 = vunpack.c.l.b16 %v3173_v44  ;;  %v3891_v44 = vunpack.c.l.b16 %v3792_v19  ;;  %v3182_v59 = vrot.slane %v3181_v40, 4 }
 0x191   : > { %v1357_v17 = vpop.f32.mrf.mxu2  ;;  %4721 = vmatmul.msk.bf16.gmra.mxu1 %vm675_vm4, %v2578_v29  ;;  %v6054_v12 = vadd.f32 %v2299_v0, %v1698_v60  ;;  %v2454_v60 = vsel %vm5495_vm7, %v4705_v7, %v2453_v61  ;;  %v3191_v55 = vor.u32 %v3190_v2, %v3186_v4 }
 0x192   : > { %v1409_v23 = vadd.f32 %v1357_v17, %v1005_v33  ;;  %v3522_v53 = vpack.c.b16 %v3493_v8, %v3492_v3  ;;  %v2550_v54 = vunpack.c.l.b16 %v2454_v60  ;;  %v4860_v3 = vld [vmem:[%s5309_s19 + $0x48] sm:$0xf] }
 0x193   : > { %v3192_v7 = vrot.slane %v3191_v55, 4  ;;  %v5104_v55 = vld [vmem:[%s5309_s19 + $0x44] sm:$0x1] }
 0x194   : > { %v2579_v8 = vpack.c.b16 %v2551_v50, %v2550_v54  ;;  %v2463_v39 = vrot.slane %v5104_v55, 5  ;;  %v3798_v54 = vrot.slane %v6061_v52, 5  ;;  %v6100_v52 = vld [vmem:[%s5309_s19 + $0x50] sm:$0x1] }
 0x195   : > { %v2301_v29 = vpop.f32.mrf.mxu0  ;;  %v3197_v40 = vsel %vm5321_vm3, %v3192_v7, %v3196_v57 }
 0x196   : > { %v1647_v33 = vpop.f32.mrf.mxu3  ;;  %4834 = vmatmul.msk.bf16.gmra.mxu2 %vm675_vm4, %v5001_v15  ;;  %v1009_v0 = vpop.f32.mrf.mxu1  ;;  %v3920_v15 = vpack.c.b16 %v3891_v44, %v3890_v58  ;;  %v4690_v58 = vld [vmem:[%s5309_s19 + $0x3c] sm:$0xe]  ;;  %v3212_v44 = vshrl.u32 %v6077_v63, 16 }
 0x197   : > { %v1699_v11 = vadd.f32 %v1647_v33, %v1409_v23  ;;  %v4916_v23 = vld [vmem:[%s5309_s19 + $0x3c] sm:$0xe]  ;;  %v5103_v33 = vld [vmem:[%s5309_s19 + $0x40] sm:$0xf]  ;;  %v1010_v22 = vadd.f32 %v1009_v0, %v5708_v56 }
 0x198   : > { %v4932_v19 = vrot.slane %v4916_v23, 9  ;;  %v2460_v60 = vrot.slane %v5103_v33, 5  ;;  %v3214_v33 = vrot.slane %v3212_v44, 4  ;;  %v3218_v44 = vshll.u32 %v6100_v52, 16 }
 0x199   : > { %v1360_v17 = vpop.f32.mrf.mxu2  ;;  %v6073_v26 = vadd.f32 %v2301_v29, %v1699_v11  ;;  %v3199_v29 = vshrl.u32 %v4860_v3, 16  ;;  %v3202_v11 = vshll.u32 %v4860_v3, 16 }
 0x19a   : > { %v1410_v61 = vadd.f32 %v1360_v17, %v1008_v35  ;;  %v3208_v35 = vshll.u32 %v6077_v63, 16  ;;  %v2462_v56 = vrot.slane %v2460_v60, 4  ;;  %v3796_v3 = vsel %vm5495_vm7, %v4932_v19, %v3795_v28 }
 0x19b   : > { %4899 = vmatmul.msk.bf16.gmra.mxu3 %vm675_vm4, %v3522_v53  ;;  %v3187_v53 = vsel %vm5321_vm3, %v3182_v59, %v3186_v4  ;;  %v3797_v4 = vrot.slane %v3795_v28, 4  ;;  %v4706_v59 = vrot.slane %v4690_v58, 9  ;;  %v3201_v7 = vrot.slane %v3199_v29, 4 }
 0x19c   : > { %v3494_v23 = vunpack.c.l.b16 %v3187_v53  ;;  %v3204_v57 = vrot.slane %v3202_v11, 5  ;;  %v2464_v53 = vsel %vm5495_vm7, %v2462_v56, %v2463_v39  ;;  %v3892_v58 = vunpack.c.l.b16 %v3796_v3 }
 0x19d   : > { %v2304_v27 = vpop.f32.mrf.mxu0  ;;  %v3799_v55 = vsel %vm5495_vm7, %v3797_v4, %v3798_v54  ;;  %v2553_v54 = vunpack.c.l.b16 %v2464_v53  ;;  %v3220_v56 = vrot.slane %v3218_v44, 5 }
 0x19e   : > { %v1650_v62 = vpop.f32.mrf.mxu3  ;;  %v1012_v2 = vpop.f32.mrf.mxu1  ;;  %v3205_v29 = vor.u32 %v3204_v57, %v3201_v7  ;;  %v3802_v7 = vrot.slane %v6077_v63, 5  ;;  %v6116_v57 = vld [vmem:[%s5309_s19 + $0x58] sm:$0xf] }
 0x19f   : > { %v1700_v34 = vadd.f32 %v1650_v62, %v1410_v61  ;;  %v5002_v61 = vld [vmem:[%s5309_s19 + $0x3c] sm:$0xff]  ;;  %v3210_v62 = vrot.slane %v3208_v35, 5  ;;  %v1013_v11 = vadd.f32 %v1012_v2, %v5729_v32 }
 0x1a0   : > { %4948 = vmatmul.msk.bf16.gmra.mxu0 %vm675_vm4, %v3920_v15  ;;  %v3495_v15 = vunpack.c.l.b16 %v3197_v40  ;;  %v3893_v40 = vunpack.c.l.b16 %v3799_v55  ;;  %v3206_v39 = vrot.slane %v3205_v29, 4 }
 0x1a1   : > { %v1362_v17 = vpop.f32.mrf.mxu2  ;;  %4722 = vmatmul.msk.bf16.gmra.mxu1 %vm675_vm4, %v2579_v8  ;;  %v6093_v0 = vadd.f32 %v2304_v27, %v1700_v34  ;;  %v2461_v34 = vsel %vm5495_vm7, %v4706_v59, %v2460_v60  ;;  %v3215_v35 = vor.u32 %v3214_v33, %v3210_v62 }
 0x1a2   : > { %v1411_v50 = vadd.f32 %v1362_v17, %v1010_v22  ;;  %v3523_v19 = vpack.c.b16 %v3495_v15, %v3494_v23  ;;  %v2552_v4 = vunpack.c.l.b16 %v2461_v34  ;;  %v4863_v23 = vld [vmem:[%s5309_s19 + $0x54] sm:$0xf] }
 0x1a3   : > { %v3216_v59 = vrot.slane %v3215_v35, 4  ;;  %v5106_v35 = vld [vmem:[%s5309_s19 + $0x50] sm:$0x1] }
 0x1a4   : > { %v2580_v15 = vpack.c.b16 %v2553_v54, %v2552_v4  ;;  %v2470_v44 = vrot.slane %v5106_v35, 5  ;;  %v3805_v4 = vrot.slane %v6100_v52, 5  ;;  %v6139_v52 = vld [vmem:[%s5309_s19 + $0x5c] sm:$0x1] }
 0x1a5   : > { %v2306_v8 = vpop.f32.mrf.mxu0  ;;  %v3221_v29 = vsel %vm5321_vm3, %v3216_v59, %v3220_v56 }
 0x1a6   : > { %v1652_v22 = vpop.f32.mrf.mxu3  ;;  %4835 = vmatmul.msk.bf16.gmra.mxu2 %vm675_vm4, %v5002_v61  ;;  %v1014_v27 = vpop.f32.mrf.mxu1  ;;  %v3921_v61 = vpack.c.b16 %v3893_v40, %v3892_v58  ;;  %v4691_v58 = vld [vmem:[%s5309_s19 + $0x48] sm:$0xe]  ;;  %v3236_v40 = vshrl.u32 %v6116_v57, 16 }
 0x1a7   : > { %v1701_v28 = vadd.f32 %v1652_v22, %v1411_v50  ;;  %v4917_v50 = vld [vmem:[%s5309_s19 + $0x48] sm:$0xe]  ;;  %v5105_v22 = vld [vmem:[%s5309_s19 + $0x4c] sm:$0xf]  ;;  %v1015_v63 = vadd.f32 %v1014_v27, %v5744_v5 }
 0x1a8   : > { %v4933_v55 = vrot.slane %v4917_v50, 9  ;;  %v2467_v34 = vrot.slane %v5105_v22, 5  ;;  %v3238_v22 = vrot.slane %v3236_v40, 4  ;;  %v3242_v40 = vshll.u32 %v6139_v52, 16 }
 0x1a9   : > { %v1365_v17 = vpop.f32.mrf.mxu2  ;;  %v6112_v32 = vadd.f32 %v2306_v8, %v1701_v28  ;;  %v3223_v8 = vshrl.u32 %v4863_v23, 16  ;;  %v3226_v28 = vshll.u32 %v4863_v23, 16 }
 0x1aa   : > { %v1412_v60 = vadd.f32 %v1365_v17, %v1013_v11  ;;  %v3232_v11 = vshll.u32 %v6116_v57, 16  ;;  %v2469_v5 = vrot.slane %v2467_v34, 4  ;;  %v3803_v23 = vsel %vm5495_vm7, %v4933_v55, %v3802_v7 }
 0x1ab   : > { %4900 = vmatmul.msk.bf16.gmra.mxu3 %vm675_vm4, %v3523_v19  ;;  %v3211_v19 = vsel %vm5321_vm3, %v3206_v39, %v3210_v62  ;;  %v3804_v62 = vrot.slane %v3802_v7, 4  ;;  %v4707_v39 = vrot.slane %v4691_v58, 9  ;;  %v3225_v59 = vrot.slane %v3223_v8, 4 }
 0x1ac   : > { %v3496_v50 = vunpack.c.l.b16 %v3211_v19  ;;  %v3228_v56 = vrot.slane %v3226_v28, 5  ;;  %v2471_v19 = vsel %vm5495_vm7, %v2469_v5, %v2470_v44  ;;  %v3894_v58 = vunpack.c.l.b16 %v3803_v23 }
 0x1ad   : > { %v2309_v2 = vpop.f32.mrf.mxu0  ;;  %v3806_v35 = vsel %vm5495_vm7, %v3804_v62, %v3805_v4  ;;  %v2555_v4 = vunpack.c.l.b16 %v2471_v19  ;;  %v3244_v5 = vrot.slane %v3242_v40, 5 }
 0x1ae   : > { %v1655_v3 = vpop.f32.mrf.mxu3  ;;  %v1017_v33 = vpop.f32.mrf.mxu1  ;;  %v3229_v8 = vor.u32 %v3228_v56, %v3225_v59  ;;  %v3809_v59 = vrot.slane %v6116_v57, 5  ;;  %v6155_v56 = vld [vmem:[%s5309_s19 + $0x64] sm:$0xf] }
 0x1af   : > { %v1702_v53 = vadd.f32 %v1655_v3, %v1412_v60  ;;  %v5003_v60 = vld [vmem:[%s5309_s19 + $0x48] sm:$0xff]  ;;  %v3234_v3 = vrot.slane %v3232_v11, 5  ;;  %v1018_v28 = vadd.f32 %v1017_v33, %v5616_v45 }
 0x1b0   : > { %4949 = vmatmul.msk.bf16.gmra.mxu0 %vm675_vm4, %v3921_v61  ;;  %v3497_v61 = vunpack.c.l.b16 %v3221_v29  ;;  %v3895_v29 = vunpack.c.l.b16 %v3806_v35  ;;  %v3230_v44 = vrot.slane %v3229_v8, 4 }
 0x1b1   : > { %v1367_v17 = vpop.f32.mrf.mxu2  ;;  %4723 = vmatmul.msk.bf16.gmra.mxu1 %vm675_vm4, %v2580_v15  ;;  %v6132_v27 = vadd.f32 %v2309_v2, %v1702_v53  ;;  %v2468_v53 = vsel %vm5495_vm7, %v4707_v39, %v2467_v34  ;;  %v3239_v11 = vor.u32 %v3238_v22, %v3234_v3 }
 0x1b2   : > { %v1413_v54 = vadd.f32 %v1367_v17, %v1015_v63  ;;  %v3524_v55 = vpack.c.b16 %v3497_v61, %v3496_v50  ;;  %v2554_v62 = vunpack.c.l.b16 %v2468_v53  ;;  %v4866_v50 = vld [vmem:[%s5309_s19 + $0x60] sm:$0xf] }
 0x1b3   : > { %v3240_v39 = vrot.slane %v3239_v11, 4  ;;  %v5108_v11 = vld [vmem:[%s5309_s19 + $0x5c] sm:$0x1] }
 0x1b4   : > { %v2581_v61 = vpack.c.b16 %v2555_v4, %v2554_v62  ;;  %v2477_v40 = vrot.slane %v5108_v11, 5  ;;  %v3812_v62 = vrot.slane %v6139_v52, 5  ;;  %v6178_v52 = vld [vmem:[%s5309_s19 + $0x68] sm:$0x1] }
 0x1b5   : > { %v2311_v15 = vpop.f32.mrf.mxu0  ;;  %v3245_v8 = vsel %vm5321_vm3, %v3240_v39, %v3244_v5 }
 0x1b6   : > { %v1657_v63 = vpop.f32.mrf.mxu3  ;;  %4836 = vmatmul.msk.bf16.gmra.mxu2 %vm675_vm4, %v5003_v60  ;;  %v1019_v2 = vpop.f32.mrf.mxu1  ;;  %v3922_v60 = vpack.c.b16 %v3895_v29, %v3894_v58  ;;  %v4692_v58 = vld [vmem:[%s5309_s19 + $0x54] sm:$0xe]  ;;  %v3260_v29 = vshrl.u32 %v6155_v56, 16 }
 0x1b7   : > { %v1703_v7 = vadd.f32 %v1657_v63, %v1413_v54  ;;  %v4918_v54 = vld [vmem:[%s5309_s19 + $0x54] sm:$0xe]  ;;  %v5107_v63 = vld [vmem:[%s5309_s19 + $0x58] sm:$0xf]  ;;  %v1020_v57 = vadd.f32 %v1019_v2, %v5639_v9 }
 0x1b8   : > { %v4934_v35 = vrot.slane %v4918_v54, 9  ;;  %v2474_v53 = vrot.slane %v5107_v63, 5  ;;  %v3262_v63 = vrot.slane %v3260_v29, 4  ;;  %v3266_v29 = vshll.u32 %v6178_v52, 16 }
 0x1b9   : > { %v1370_v17 = vpop.f32.mrf.mxu2  ;;  %v6151_v45 = vadd.f32 %v2311_v15, %v1703_v7  ;;  %v3247_v15 = vshrl.u32 %v4866_v50, 16  ;;  %v3250_v7 = vshll.u32 %v4866_v50, 16 }
 0x1ba   : > { %v1414_v34 = vadd.f32 %v1370_v17, %v1018_v28  ;;  %v3256_v28 = vshll.u32 %v6155_v56, 16  ;;  %v2476_v9 = vrot.slane %v2474_v53, 4  ;;  %v3810_v50 = vsel %vm5495_vm7, %v4934_v35, %v3809_v59 }
 0x1bb   : > { %4901 = vmatmul.msk.bf16.gmra.mxu3 %vm675_vm4, %v3524_v55  ;;  %v3235_v55 = vsel %vm5321_vm3, %v3230_v44, %v3234_v3  ;;  %v3811_v3 = vrot.slane %v3809_v59, 4  ;;  %v4708_v44 = vrot.slane %v4692_v58, 9  ;;  %v3249_v39 = vrot.slane %v3247_v15, 4 }
 0x1bc   : > { %v3498_v54 = vunpack.c.l.b16 %v3235_v55  ;;  %v3252_v5 = vrot.slane %v3250_v7, 5  ;;  %v2478_v55 = vsel %vm5495_vm7, %v2476_v9, %v2477_v40  ;;  %v3896_v58 = vunpack.c.l.b16 %v3810_v50 }
 0x1bd   : > { %v2314_v33 = vpop.f32.mrf.mxu0  ;;  %v3813_v11 = vsel %vm5495_vm7, %v3811_v3, %v3812_v62  ;;  %v2557_v62 = vunpack.c.l.b16 %v2478_v55  ;;  %v3268_v9 = vrot.slane %v3266_v29, 5 }
 0x1be   : > { %v1660_v23 = vpop.f32.mrf.mxu3  ;;  %v1022_v22 = vpop.f32.mrf.mxu1  ;;  %v3253_v15 = vor.u32 %v3252_v5, %v3249_v39  ;;  %v3816_v39 = vrot.slane %v6155_v56, 5  ;;  %v6194_v5 = vld [vmem:[%s5309_s19 + $0x70] sm:$0xf] }
 0x1bf   : > { %v1704_v19 = vadd.f32 %v1660_v23, %v1414_v34  ;;  %v5004_v34 = vld [vmem:[%s5309_s19 + $0x54] sm:$0xff]  ;;  %v3258_v23 = vrot.slane %v3256_v28, 5  ;;  %v1023_v7 = vadd.f32 %v1022_v22, %v5660_v46 }
 0x1c0   : > { %4950 = vmatmul.msk.bf16.gmra.mxu0 %vm675_vm4, %v3922_v60  ;;  %v3499_v60 = vunpack.c.l.b16 %v3245_v8  ;;  %v3897_v8 = vunpack.c.l.b16 %v3813_v11  ;;  %v3254_v40 = vrot.slane %v3253_v15, 4 }
 0x1c1   : > { %v1372_v17 = vpop.f32.mrf.mxu2  ;;  %4724 = vmatmul.msk.bf16.gmra.mxu1 %vm675_vm4, %v2581_v61  ;;  %v6171_v2 = vadd.f32 %v2314_v33, %v1704_v19  ;;  %v2475_v19 = vsel %vm5495_vm7, %v4708_v44, %v2474_v53  ;;  %v3263_v28 = vor.u32 %v3262_v63, %v3258_v23 }
 0x1c2   : > { %v1415_v4 = vadd.f32 %v1372_v17, %v1020_v57  ;;  %v3525_v35 = vpack.c.b16 %v3499_v60, %v3498_v54  ;;  %v2556_v3 = vunpack.c.l.b16 %v2475_v19  ;;  %v4869_v54 = vld [vmem:[%s5309_s19 + $0x6c] sm:$0xf] }
 0x1c3   : > { %v3264_v44 = vrot.slane %v3263_v28, 4  ;;  %v5110_v28 = vld [vmem:[%s5309_s19 + $0x68] sm:$0x1] }
 0x1c4   : > { %v2582_v60 = vpack.c.b16 %v2557_v62, %v2556_v3  ;;  %v2484_v29 = vrot.slane %v5110_v28, 5  ;;  %v3819_v3 = vrot.slane %v6178_v52, 5  ;;  %v6217_v52 = vld [vmem:[%s5309_s19 + $0x74] sm:$0x1] }
 0x1c5   : > { %v2316_v61 = vpop.f32.mrf.mxu0  ;;  %v3269_v15 = vsel %vm5321_vm3, %v3264_v44, %v3268_v9 }
 0x1c6   : > { %v1662_v57 = vpop.f32.mrf.mxu3  ;;  %4837 = vmatmul.msk.bf16.gmra.mxu2 %vm675_vm4, %v5004_v34  ;;  %v1024_v33 = vpop.f32.mrf.mxu1  ;;  %v3923_v34 = vpack.c.b16 %v3897_v8, %v3896_v58  ;;  %v4693_v58 = vld [vmem:[%s5309_s19 + $0x60] sm:$0xe]  ;;  %v3284_v8 = vshrl.u32 %v6194_v5, 16 }
 0x1c7   : > { %v1705_v59 = vadd.f32 %v1662_v57, %v1415_v4  ;;  %v4919_v4 = vld [vmem:[%s5309_s19 + $0x60] sm:$0xe]  ;;  %v5109_v57 = vld [vmem:[%s5309_s19 + $0x64] sm:$0xf]  ;;  %v1025_v56 = vadd.f32 %v1024_v33, %v5677_v25 }
 0x1c8   : > { %v4935_v11 = vrot.slane %v4919_v4, 9  ;;  %v2481_v19 = vrot.slane %v5109_v57, 5  ;;  %v3286_v57 = vrot.slane %v3284_v8, 4  ;;  %v3290_v8 = vshll.u32 %v6217_v52, 16 }
 0x1c9   : > { %v1375_v17 = vpop.f32.mrf.mxu2  ;;  %v6190_v46 = vadd.f32 %v2316_v61, %v1705_v59  ;;  %v3271_v61 = vshrl.u32 %v4869_v54, 16  ;;  %v3274_v59 = vshll.u32 %v4869_v54, 16 }
 0x1ca   : > { %v1416_v53 = vadd.f32 %v1375_v17, %v1023_v7  ;;  %v3280_v7 = vshll.u32 %v6194_v5, 16  ;;  %v2483_v25 = vrot.slane %v2481_v19, 4  ;;  %v3817_v54 = vsel %vm5495_vm7, %v4935_v11, %v3816_v39 }
 0x1cb   : > { %4902 = vmatmul.msk.bf16.gmra.mxu3 %vm675_vm4, %v3525_v35  ;;  %v3259_v35 = vsel %vm5321_vm3, %v3254_v40, %v3258_v23  ;;  %v3818_v23 = vrot.slane %v3816_v39, 4  ;;  %v4709_v40 = vrot.slane %v4693_v58, 9  ;;  %v3273_v44 = vrot.slane %v3271_v61, 4 }
 0x1cc   : > { %v3500_v4 = vunpack.c.l.b16 %v3259_v35  ;;  %v3276_v9 = vrot.slane %v3274_v59, 5  ;;  %v2485_v35 = vsel %vm5495_vm7, %v2483_v25, %v2484_v29  ;;  %v3898_v58 = vunpack.c.l.b16 %v3817_v54 }
 0x1cd   : > { %v2319_v22 = vpop.f32.mrf.mxu0  ;;  %v3820_v28 = vsel %vm5495_vm7, %v3818_v23, %v3819_v3  ;;  %v2559_v3 = vunpack.c.l.b16 %v2485_v35  ;;  %v3292_v25 = vrot.slane %v3290_v8, 5  ;;  %v5111_v35 = vld [vmem:[%s5309_s19 + $0x70] sm:$0xf] }
 0x1ce   : > { %v1665_v50 = vpop.f32.mrf.mxu3  ;;  %v1027_v63 = vpop.f32.mrf.mxu1  ;;  %v3277_v61 = vor.u32 %v3276_v9, %v3273_v44  ;;  %v3823_v44 = vrot.slane %v6194_v5, 5  ;;  %v6233_v9 = vld [vmem:[%s5309_s19 + $0x7c] sm:$0xf] }
 0x1cf   : > { %v1706_v55 = vadd.f32 %v1665_v50, %v1416_v53  ;;  %v5005_v53 = vld [vmem:[%s5309_s19 + $0x60] sm:$0xff]  ;;  %v3282_v50 = vrot.slane %v3280_v7, 5  ;;  %v1028_v59 = vadd.f32 %v1027_v63, %v5698_v47 }
 0x1d0   : > { %4951 = vmatmul.msk.bf16.gmra.mxu0 %vm675_vm4, %v3923_v34  ;;  %v3501_v34 = vunpack.c.l.b16 %v3269_v15  ;;  %v3899_v15 = vunpack.c.l.b16 %v3820_v28  ;;  %v3278_v29 = vrot.slane %v3277_v61, 4 }
 0x1d1   : > { %v1377_v17 = vpop.f32.mrf.mxu2  ;;  %4725 = vmatmul.msk.bf16.gmra.mxu1 %vm675_vm4, %v2582_v60  ;;  %v6210_v33 = vadd.f32 %v2319_v22, %v1706_v55  ;;  %v2482_v55 = vsel %vm5495_vm7, %v4709_v40, %v2481_v19  ;;  %v3287_v7 = vor.u32 %v3286_v57, %v3282_v50  ;;  %v4872_v19 = vld [vmem:[%s5309_s19 + $0x78] sm:$0xf] }
 0x1d2   : > { %v1417_v62 = vadd.f32 %v1377_v17, %v1025_v56  ;;  %v3526_v11 = vpack.c.b16 %v3501_v34, %v3500_v4  ;;  %v2558_v23 = vunpack.c.l.b16 %v2482_v55  ;;  %v4920_v4 = vld [vmem:[%s5309_s19 + $0x6c] sm:$0xe]  ;;  %v3295_v54 = vshrl.u32 %v4872_v19, 16 }
 0x1d3   : > { %v3288_v40 = vrot.slane %v3287_v7, 4  ;;  %v3298_v57 = vshll.u32 %v4872_v19, 16  ;;  %v4694_v55 = vld [vmem:[%s5309_s19 + $0x6c] sm:$0xe]  ;;  %v3308_v7 = vshrl.u32 %v6233_v9, 16 }
 0x1d4   : > { %v2583_v34 = vpack.c.b16 %v2559_v3, %v2558_v23  ;;  %v3297_v23 = vrot.slane %v3295_v54, 4  ;;  %v6256_v54 = vld [vmem:[%s5309_s19 + $0x80] sm:$0x1] }
 0x1d5   : > { %v2321_v60 = vpop.f32.mrf.mxu0  ;;  %v3300_v3 = vrot.slane %v3298_v57, 5 }
 0x1d6   : > { %v1667_v56 = vpop.f32.mrf.mxu3  ;;  %4838 = vmatmul.msk.bf16.gmra.mxu2 %vm675_vm4, %v5005_v53  ;;  %v1029_v22 = vpop.f32.mrf.mxu1 }
 0x1d7   : > { %v1707_v39 = vadd.f32 %v1667_v56, %v1417_v62  ;;  %v3924_v62 = vpack.c.b16 %v3899_v15, %v3898_v58  ;;  %v3283_v58 = vsel %vm5321_vm3, %v3278_v29, %v3282_v50  ;;  %v1030_v5 = vadd.f32 %v1029_v22, %v5717_v10  ;;  %v5112_v29 = vld [vmem:[%s5309_s19 + $0x74] sm:$0x1] }
 0x1d8   : > { %v3304_v15 = vshll.u32 %v6233_v9, 16  ;;  %v4710_v50 = vrot.slane %v4694_v55, 9  ;;  %v2491_v10 = vrot.slane %v5112_v29, 5  ;;  %v3301_v57 = vor.u32 %v3300_v3, %v3297_v23  ;;  %v4875_v29 = vld [vmem:[%s5309_s19 + $0x84] sm:$0xf] }
 0x1d9   : > { %v1380_v17 = vpop.f32.mrf.mxu2  ;;  %v6229_v47 = vadd.f32 %v2321_v60, %v1707_v39  ;;  %v4936_v60 = vrot.slane %v4920_v4, 9  ;;  %v3826_v39 = vrot.slane %v6217_v52, 5 }
 0x1da   : > { %v1418_v53 = vadd.f32 %v1380_v17, %v1028_v59  ;;  %v3293_v59 = vsel %vm5321_vm3, %v3288_v40, %v3292_v25  ;;  %v3825_v17 = vrot.slane %v3823_v44, 4  ;;  %v3306_v4 = vrot.slane %v3304_v15, 5 }
 0x1db   : > { %4903 = vmatmul.msk.bf16.gmra.mxu3 %vm675_vm4, %v3526_v11  ;;  %v2488_v11 = vrot.slane %v5111_v35, 5  ;;  %v3503_v40 = vunpack.c.l.b16 %v3293_v59  ;;  %v3824_v25 = vsel %vm5495_vm7, %v4936_v60, %v3823_v44  ;;  %v3302_v3 = vrot.slane %v3301_v57, 4 }
 0x1dc   : > { %v3827_v55 = vsel %vm5495_vm7, %v3825_v17, %v3826_v39 }
 0x1dd   : > { %v2324_v63 = vpop.f32.mrf.mxu0  ;;  %v2490_v19 = vrot.slane %v2488_v11, 4  ;;  %v3901_v59 = vunpack.c.l.b16 %v3827_v55  ;;  %v3322_v55 = vshll.u32 %v4875_v29, 16 }
 0x1de   : > { %v1670_v28 = vpop.f32.mrf.mxu3  ;;  %v1032_v56 = vpop.f32.mrf.mxu1 }
 0x1df   : > { %v1708_v61 = vadd.f32 %v1670_v28, %v1418_v53  ;;  %v5006_v53 = vld [vmem:[%s5309_s19 + $0x6c] sm:$0xff]  ;;  %v3310_v28 = vrot.slane %v3308_v7, 4  ;;  %v2492_v44 = vsel %vm5495_vm7, %v2490_v19, %v2491_v10  ;;  %v1033_v39 = vadd.f32 %v1032_v56, %v5740_v43 }
 0x1e0   : > { %4952 = vmatmul.msk.bf16.gmra.mxu0 %vm675_vm4, %v3924_v62  ;;  %v3502_v62 = vunpack.c.l.b16 %v3283_v58  ;;  %v3314_v7 = vshll.u32 %v6256_v54, 16  ;;  %v2561_v23 = vunpack.c.l.b16 %v2492_v44  ;;  %v3830_v43 = vrot.slane %v6233_v9, 5  ;;  %v4695_v44 = vld [vmem:[%s5309_s19 + $0x78] sm:$0xe] }
 0x1e1   : > { %v1382_v8 = vpop.f32.mrf.mxu2  ;;  %4726 = vmatmul.msk.bf16.gmra.mxu1 %vm675_vm4, %v2583_v34  ;;  %v6249_v22 = vadd.f32 %v2324_v63, %v1708_v61  ;;  %v2489_v61 = vsel %vm5495_vm7, %v4710_v50, %v2488_v11  ;;  %v3311_v15 = vor.u32 %v3310_v28, %v3306_v4  ;;  %v3307_v28 = vsel %vm5321_vm3, %v3302_v3, %v3306_v4 }
 0x1e2   : > { %v1419_v52 = vadd.f32 %v1382_v8, %v1030_v5  ;;  %v3527_v60 = vpack.c.b16 %v3503_v40, %v3502_v62  ;;  %v3900_v5 = vunpack.c.l.b16 %v3824_v25  ;;  %v2560_v17 = vunpack.c.l.b16 %v2489_v61  ;;  %v6272_v62 = vld [vmem:[%s5309_s19 + $0x88] sm:$0xf] }
 0x1e3   : > { %v3316_v19 = vrot.slane %v3314_v7, 5  ;;  %v3833_v61 = vrot.slane %v6256_v54, 5  ;;  %v3504_v7 = vunpack.c.l.b16 %v3307_v28  ;;  %v3324_v3 = vrot.slane %v3322_v55, 5  ;;  %v4877_v28 = vld [vmem:[%s5309_s19 + $0x8c] sm:$0x1] }
 0x1e4   : > { %v3925_v56 = vpack.c.b16 %v3901_v59, %v3900_v5  ;;  %v2584_v25 = vpack.c.b16 %v2561_v23, %v2560_v17  ;;  %v3832_v5 = vrot.slane %v3830_v43, 4  ;;  %v3332_v59 = vshrl.u32 %v6272_v62, 16 }
 0x1e5   : > { %v2326_v34 = vpop.f32.mrf.mxu0  ;;  %v4711_v17 = vrot.slane %v4695_v44, 9 }
 0x1e6   : > { %v1672_v35 = vpop.f32.mrf.mxu3  ;;  %4839 = vmatmul.msk.bf16.gmra.mxu2 %vm675_vm4, %v5006_v53  ;;  %v1034_v63 = vpop.f32.mrf.mxu1  ;;  %v4921_v53 = vld [vmem:[%s5309_s19 + $0x78] sm:$0xe] }
 0x1e7   : > { %v1709_v58 = vadd.f32 %v1672_v35, %v1419_v52  ;;  %v3312_v52 = vrot.slane %v3311_v15, 4  ;;  %v4937_v10 = vrot.slane %v4921_v53, 9  ;;  %v1035_v4 = vadd.f32 %v1034_v63, %v5757_v21 }
 0x1e9   : > { %v1385_v8 = vpop.f32.mrf.mxu2  ;;  %v6266_v11 = vadd.f32 %v2326_v34, %v1709_v58  ;;  %v3319_v34 = vshrl.u32 %v4875_v29, 16  ;;  %v5113_v58 = vld [vmem:[%s5309_s19 + $0x7c] sm:$0xf]  ;;  %v3317_v15 = vsel %vm5321_vm3, %v3312_v52, %v3316_v19  ;;  %v3834_v52 = vsel %vm5495_vm7, %v3832_v5, %v3833_v61 }
 0x1ea   : > { %v1420_v50 = vadd.f32 %v1385_v8, %v1033_v39  ;;  %v2495_v9 = vrot.slane %v5113_v58, 5  ;;  %v3328_v39 = vshll.u32 %v6272_v62, 16  ;;  %v3831_v8 = vsel %vm5495_vm7, %v4937_v10, %v3830_v43 }
 0x1eb   : > { %4904 = vmatmul.msk.bf16.gmra.mxu3 %vm675_vm4, %v3527_v60  ;;  %v3321_v23 = vrot.slane %v3319_v34, 4  ;;  %v3505_v63 = vunpack.c.l.b16 %v3317_v15  ;;  %v3902_v43 = vunpack.c.l.b16 %v3831_v8  ;;  %v3903_v34 = vunpack.c.l.b16 %v3834_v52  ;;  %v4878_v52 = vld [vmem:[%s5309_s19 + $0x90] sm:$0xf] }
 0x1ec   : > { %v2497_v29 = vrot.slane %v2495_v9, 4  ;;  %v6294_v19 = vrot.slane %v3328_v39, 5 }
 0x1ed   : > { %v2329_v40 = vpop.f32.mrf.mxu0  ;;  %v3325_v44 = vor.u32 %v3324_v3, %v3321_v23  ;;  %v3528_v5 = vpack.c.b16 %v3505_v63, %v3504_v7 }
 0x1ee   : > { %v1675_v57 = vpop.f32.mrf.mxu3  ;;  %v2652_v35 = vpop.f32.mrf.mxu1 }
 0x1ef   : > { %v1710_v60 = vadd.f32 %v1675_v57, %v1420_v50  ;;  %v5007_v50 = vld [vmem:[%s5309_s19 + $0x78] sm:$0xff]  ;;  %v2732_v15 = vadd.f32 %v2652_v35, %v5774_v49  ;;  %v3343_v49 = vshrl.u32 %v4878_v52, 16 }
 0x1f0   : > { %4953 = vmatmul.msk.bf16.gmra.mxu0 %vm675_vm4, %v3925_v56  ;;  %v5114_v56 = vld [vmem:[%s5309_s19 + $0x80] sm:$0x1] }
 0x1f1   : > { %v1387_v54 = vpop.f32.mrf.mxu2  ;;  %4727 = vmatmul.msk.bf16.gmra.mxu1 %vm675_vm4, %v2584_v25  ;;  %v2498_v57 = vrot.slane %v5114_v56, 5  ;;  %v6290_v21 = vadd.f32 %v2329_v40, %v1710_v60  ;;  %v3334_v25 = vrot.slane %v3332_v59, 4  ;;  %v2496_v40 = vsel %vm5495_vm7, %v4711_v17, %v2495_v9  ;;  %v4922_v56 = vld [vmem:[%s5309_s19 + $0x84] sm:$0xe] }
 0x1f2   : > { %v1421_v53 = vadd.f32 %v1387_v54, %v1035_v4  ;;  %v3338_v59 = vshll.u32 %v4877_v28, 16  ;;  %v3837_v4 = vrot.slane %v6272_v62, 5  ;;  %v2562_v8 = vunpack.c.l.b16 %v2496_v40  ;;  %v5115_v40 = vld [vmem:[%s5309_s19 + $0x88] sm:$0xf] }
 0x1f3   : > { %6702 = vst [vmem:[#allocation7_spill] sm:$0xff] %v6290_v21  ;;  %v2499_v61 = vsel %vm5495_vm7, %v2497_v29, %v2498_v57  ;;  %v3335_v39 = vor.u32 %v3334_v25, %v6294_v19  ;;  %v3926_v9 = vpack.c.b16 %v3903_v34, %v3902_v43  ;;  %v3326_v17 = vrot.slane %v3325_v44, 4  ;;  %v6308_v21 = vld [vmem:[%s5309_s19 + $0x94] sm:$0xf] }
 0x1f4   : > { %v3340_v3 = vrot.slane %v3338_v59, 5  ;;  %v4938_v29 = vrot.slane %v4922_v56, 9  ;;  %v3839_v62 = vrot.slane %v3837_v4, 4  ;;  %v3346_v25 = vshll.u32 %v4878_v52, 16  ;;  %v6337_v56 = vld [vmem:[%s6692_s2 + $0x1] ss:$0 sm:$0xff] }
 0x1f5   : > { %v2331_v58 = vpop.f32.mrf.mxu0  ;;  %v3336_v23 = vrot.slane %v3335_v39, 4  ;;  %v3352_v43 = vshll.u32 %v6308_v21, 16  ;;  %v3356_v44 = vshrl.u32 %v6308_v21, 16 }
 0x1f6   : > { %v1677_v10 = vpop.f32.mrf.mxu3  ;;  %4840 = vmatmul.msk.bf16.gmra.mxu2 %vm675_vm4, %v5007_v50  ;;  %v2654_v55 = vpop.f32.mrf.mxu1  ;;  %v2563_v50 = vunpack.c.l.b16 %v2499_v61  ;;  %v2502_v61 = vrot.slane %v5115_v40, 5  ;;  %v3838_v59 = vsel %vm5495_vm7, %v4938_v29, %v3837_v4  ;;  %v3348_v52 = vrot.slane %v3346_v25, 5  ;;  %v5008_v4 = vld [vmem:[%s5309_s19 + $0x84] sm:$0xff] }
 0x1f7   : > { %v1711_v60 = vadd.f32 %v1677_v10, %v1421_v53  ;;  %v3840_v53 = vrot.slane %v4877_v28, 5  ;;  %v3331_v28 = vsel %vm5321_vm3, %v3326_v17, %v6294_v19  ;;  %v3341_v39 = vsel %vm5321_vm3, %v3336_v23, %v3340_v3  ;;  %v5116_v23 = vld [vmem:[%s5309_s19 + $0x8c] sm:$0x1] }
 0x1f8   : > { %v2585_v63 = vpack.c.b16 %v2563_v50, %v2562_v8  ;;  %v2733_v8 = vadd.f32 %v2654_v55, %v5787_v1  ;;  %v2505_v3 = vrot.slane %v5116_v23, 5  ;;  %v3506_v1 = vunpack.c.l.b16 %v3331_v28 }
 0x1f9   : > { %v2942_v54 = vpop.f32.mrf.mxu2  ;;  %v6311_v35 = vadd.f32 %v2331_v58, %v1711_v60  ;;  %v6322_v58 = vld [vmem:[%s6692_s2] ss:$0 sm:$0xff]  ;;  %v4696_v60 = vld [vmem:[%s5309_s19 + $0x84] sm:$0xe]  ;;  %v3507_v55 = vunpack.c.l.b16 %v3341_v39 }
 0x1fa   : > { %v3022_v7 = vadd.f32 %v2942_v54, %v2732_v15  ;;  %v3841_v15 = vsel %vm5495_vm7, %v3839_v62, %v3840_v53  ;;  %v3345_v54 = vrot.slane %v3343_v49, 4  ;;  %v4712_v17 = vrot.slane %v4696_v60, 9  ;;  %v6345_v49 = vld [vmem:[%s5309_s19 + $0x98] sm:$0x1] }
 0x1fb   : > { %4905 = vmatmul.msk.bf16.gmra.mxu3 %vm675_vm4, %v3528_v5  ;;  %v3358_v53 = vrot.slane %v3356_v44, 4  ;;  %v3905_v25 = vunpack.c.l.b16 %v3841_v15 }
 0x1fc   : > { %v2503_v44 = vsel %vm5495_vm7, %v4712_v17, %v2502_v61  ;;  %v3349_v28 = vor.u32 %v3348_v52, %v3345_v54  ;;  %v6358_v17 = vld [vmem:[%s5309_s19 + $0xa0] sm:$0xf] }
 0x1fd   : > { %v3994_v57 = vpop.f32.mrf.mxu0  ;;  %v2564_v23 = vunpack.c.l.b16 %v2503_v44 }
 0x1fe   : > { %v3596_v10 = vpop.f32.mrf.mxu3  ;;  %v2657_v34 = vpop.f32.mrf.mxu1  ;;  %v3350_v54 = vrot.slane %v3349_v28, 4 }
 0x1ff   : > { %v3676_v5 = vadd.f32 %v3596_v10, %v3022_v7  ;;  %v2504_v7 = vrot.slane %v2502_v61, 4  ;;  %v3904_v10 = vunpack.c.l.b16 %v3838_v59  ;;  %v3362_v59 = vshll.u32 %v6345_v49, 16  ;;  %v4881_v61 = vld [vmem:[%s5309_s19 + $0x9c] sm:$0xf] }
 0x200   : > { %4954 = vmatmul.msk.bf16.gmra.mxu0 %vm675_vm4, %v3926_v9  ;;  %v6339_v9 = vrot.slane %v3352_v43, 5 }
 0x201   : > { %v4074_v19 = vadd.f32 %v3994_v57, %v3676_v5  ;;  %v2944_v50 = vpop.f32.mrf.mxu2  ;;  %4728 = vmatmul.msk.bf16.gmra.mxu1 %vm675_vm4, %v2585_v63  ;;  %v2506_v5 = vsel %vm5495_vm7, %v2504_v7, %v2505_v3  ;;  %v3927_v7 = vpack.c.b16 %v3905_v25, %v3904_v10 }
 0x202   : > { %v3023_v29 = vadd.f32 %v2944_v50, %v2733_v8  ;;  %v3359_v60 = vor.u32 %v3358_v53, %v6339_v9  ;;  %v2734_v50 = vadd.f32 %v2657_v34, %v5800_v16  ;;  %v3844_v16 = vrot.slane %v6308_v21, 5  ;;  %v4697_v21 = vld [vmem:[%s5309_s19 + $0x90] sm:$0xe] }
 0x203   : > { %v4108_v62 = vmul.f32 %v6322_v58, %v4074_v19  ;;  %v3529_v19 = vpack.c.b16 %v3507_v55, %v3506_v1  ;;  %v4923_v1 = vld [vmem:[%s5309_s19 + $0x90] sm:$0xe]  ;;  %v3367_v34 = vshrl.u32 %v4881_v61, 16  ;;  %v3370_v55 = vshll.u32 %v4881_v61, 16 }
 0x204   : > { %v3360_v52 = vrot.slane %v3359_v60, 4  ;;  %v3355_v28 = vsel %vm5321_vm3, %v3350_v54, %v6339_v9  ;;  %v4939_v60 = vrot.slane %v4923_v1, 9  ;;  %v6381_v1 = vld [vmem:[%s5309_s19 + $0xa4] sm:$0x1] }
 0x205   : > { %v3996_v57 = vpop.f32.mrf.mxu0  ;;  %v4142_v63 = vadd.f32 %v6337_v56, %v4108_v62  ;;  %v2565_v62 = vunpack.c.l.b16 %v2506_v5 }
 0x206   : > { %v3598_v43 = vpop.f32.mrf.mxu3  ;;  %4841 = vmatmul.msk.bf16.gmra.mxu2 %vm675_vm4, %v5008_v4  ;;  %v2659_v40 = vpop.f32.mrf.mxu1 }
 0x207   : > { %v3677_v39 = vadd.f32 %v3598_v43, %v3023_v29  ;;  %v4174_v8 = vmax.f32 %v4142_v63, 0.0  ;;  %v3364_v29 = vrot.slane %v3362_v59, 5  ;;  %v3380_v63 = vshrl.u32 %v6358_v17, 16 }
 0x208   : > { %v2586_v43 = vpack.c.b16 %v2565_v62, %v2564_v23  ;;  %v3369_v23 = vrot.slane %v3367_v34, 4  ;;  %v3372_v62 = vrot.slane %v3370_v55, 5  ;;  %v2735_v54 = vadd.f32 %v2659_v40, %v5813_v13 }
 0x209   : > { %v4075_v15 = vadd.f32 %v3996_v57, %v3677_v39  ;;  %4206 = vxpose.xlu0.b32.start [1/16] (narrow) %v4174_v8, 8  ;;  %v2947_v4 = vpop.f32.mrf.mxu2  ;;  %v3376_v57 = vshll.u32 %v6358_v17, 16  ;;  %v3847_v39 = vrot.slane %v6345_v49, 5  ;;  %v3382_v61 = vrot.slane %v3380_v63, 4 }
 0x20a   : > { %v3024_v3 = vadd.f32 %v2947_v4, %v2734_v50  ;;  %v3365_v50 = vsel %vm5321_vm3, %v3360_v52, %v3364_v29  ;;  %v3846_v4 = vrot.slane %v3844_v16, 4  ;;  %v5009_v52 = vld [vmem:[%s5309_s19 + $0x90] sm:$0xff]  ;;  %v3508_v29 = vunpack.c.l.b16 %v3355_v28 }
 0x20b   : > { %4906 = vmatmul.msk.bf16.gmra.mxu3 %vm675_vm4, %v3529_v19  ;;  %v4109_v53 = vmul.f32 %v6322_v58, %v4075_v15  ;;  %v5117_v19 = vld [vmem:[%s5309_s19 + $0x94] sm:$0xf]  ;;  %v6376_v9 = vrot.slane %v3376_v57, 5  ;;  %v3509_v55 = vunpack.c.l.b16 %v3365_v50  ;;  %v3845_v63 = vsel %vm5495_vm7, %v4939_v60, %v3844_v16 }
 0x20c   : > { %v2509_v8 = vrot.slane %v5117_v19, 5  ;;  %v3848_v13 = vsel %vm5495_vm7, %v3846_v4, %v3847_v39  ;;  %v3373_v40 = vor.u32 %v3372_v62, %v3369_v23 }
 0x20d   : > { %v3999_v10 = vpop.f32.mrf.mxu0  ;;  %v4143_v25 = vadd.f32 %v6337_v56, %v4109_v53  ;;  %v3530_v50 = vpack.c.b16 %v3509_v55, %v3508_v29  ;;  %v3907_v23 = vunpack.c.l.b16 %v3848_v13 }
 0x20e   : > { %v3601_v44 = vpop.f32.mrf.mxu3  ;;  %v2662_v5 = vpop.f32.mrf.mxu1 }
 0x20f   : > { %v3678_v59 = vadd.f32 %v3601_v44, %v3024_v3  ;;  %v4175_v15 = vmax.f32 %v4143_v25, 0.0  ;;  %v4713_v3 = vrot.slane %v4697_v21, 9  ;;  %v2511_v25 = vrot.slane %v2509_v8, 4  ;;  %v5118_v44 = vld [vmem:[%s5309_s19 + $0x98] sm:$0x1] }
 0x210   : > { %4955 = vmatmul.msk.bf16.gmra.mxu0 %vm675_vm4, %v3927_v7  ;;  %v2512_v7 = vrot.slane %v5118_v44, 5  ;;  %v4924_v44 = vld [vmem:[%s5309_s19 + $0x9c] sm:$0xe] }
 0x211   : > { %v4076_v49 = vadd.f32 %v3999_v10, %v3678_v59  ;;  %4207 = vxpose.xlu0.b32.cont [2/16] (narrow) %v4175_v15, 8  ;;  %v2949_v53 = vpop.f32.mrf.mxu2  ;;  %4729 = vmatmul.msk.bf16.gmra.mxu1 %vm675_vm4, %v2586_v43  ;;  %v3383_v10 = vor.u32 %v3382_v61, %v6376_v9  ;;  %v3386_v43 = vshll.u32 %v6381_v1, 16  ;;  %v2510_v19 = vsel %vm5495_vm7, %v4713_v3, %v2509_v8 }
 0x212   : > { %v3025_v34 = vadd.f32 %v2949_v53, %v2735_v54  ;;  %v3906_v15 = vunpack.c.l.b16 %v3845_v63  ;;  %v2513_v60 = vsel %vm5495_vm7, %v2511_v25, %v2512_v7  ;;  %v2566_v62 = vunpack.c.l.b16 %v2510_v19  ;;  %v4884_v25 = vld [vmem:[%s5309_s19 + $0xa8] sm:$0xf] }
 0x213   : > { %v4110_v57 = vmul.f32 %v6322_v58, %v4076_v49  ;;  %v3374_v61 = vrot.slane %v3373_v40, 4  ;;  %v3384_v49 = vrot.slane %v3383_v10, 4  ;;  %v3388_v54 = vrot.slane %v3386_v43, 5 }
 0x214   : > { %v2736_v8 = vadd.f32 %v2662_v5, %v5826_v20  ;;  %v3928_v29 = vpack.c.b16 %v3907_v23, %v3906_v15  ;;  %v4940_v5 = vrot.slane %v4924_v44, 9  ;;  %v3854_v63 = vrot.slane %v6381_v1, 5 }
 0x215   : > { %v4001_v21 = vpop.f32.mrf.mxu0  ;;  %v4144_v28 = vadd.f32 %v6337_v56, %v4110_v57  ;;  %v3851_v57 = vrot.slane %v6358_v17, 5  ;;  %v3379_v55 = vsel %vm5321_vm3, %v3374_v61, %v6376_v9  ;;  %v3389_v20 = vsel %vm5321_vm3, %v3384_v49, %v3388_v54  ;;  %v6411_v17 = vld [vmem:[%s5309_s19 + $0xac] sm:$0xf] }
 0x216   : > { %v3603_v59 = vpop.f32.mrf.mxu3  ;;  %4842 = vmatmul.msk.bf16.gmra.mxu2 %vm675_vm4, %v5009_v52  ;;  %v2664_v16 = vpop.f32.mrf.mxu1  ;;  %v2567_v52 = vunpack.c.l.b16 %v2513_v60  ;;  %v3394_v9 = vshll.u32 %v4884_v25, 16  ;;  %v3404_v1 = vshrl.u32 %v6411_v17, 16  ;;  %v3510_v23 = vunpack.c.l.b16 %v3379_v55 }
 0x217   : > { %v3679_v39 = vadd.f32 %v3603_v59, %v3025_v34  ;;  %v4176_v4 = vmax.f32 %v4144_v28, 0.0  ;;  %v3853_v43 = vrot.slane %v3851_v57, 4  ;;  %v5119_v59 = vld [vmem:[%s5309_s19 + $0xa0] sm:$0xf]  ;;  %v3852_v61 = vsel %vm5495_vm7, %v4940_v5, %v3851_v57 }
 0x218   : > { %v2587_v10 = vpack.c.b16 %v2567_v52, %v2566_v62  ;;  %v2516_v15 = vrot.slane %v5119_v59, 5  ;;  %v3511_v62 = vunpack.c.l.b16 %v3389_v20  ;;  %v2737_v54 = vadd.f32 %v2664_v16, %v5839_v38  ;;  %v5010_v52 = vld [vmem:[%s5309_s19 + $0x9c] sm:$0xff]  ;;  %v6431_v16 = vld [vmem:[%s5309_s19 + $0xb0] sm:$0x1] }
 0x219   : > { %v4077_v53 = vadd.f32 %v4001_v21, %v3679_v39  ;;  %4208 = vxpose.xlu0.b32.cont [3/16] (narrow) %v4176_v4, 8  ;;  %v2952_v3 = vpop.f32.mrf.mxu2  ;;  %v3391_v21 = vshrl.u32 %v4884_v25, 16  ;;  %v3400_v4 = vshll.u32 %v6411_v17, 16  ;;  %v3406_v38 = vrot.slane %v3404_v1, 4 }
 0x21a   : > { %v3026_v7 = vadd.f32 %v2952_v3, %v2736_v8  ;;  %v3855_v8 = vsel %vm5495_vm7, %v3853_v43, %v3854_v63  ;;  %v2518_v25 = vrot.slane %v2516_v15, 4  ;;  %v3908_v63 = vunpack.c.l.b16 %v3852_v61 }
 0x21b   : > { %4907 = vmatmul.msk.bf16.gmra.mxu3 %vm675_vm4, %v3530_v50  ;;  %v4111_v34 = vmul.f32 %v6322_v58, %v4077_v53  ;;  %v4698_v50 = vld [vmem:[%s5309_s19 + $0x9c] sm:$0xe]  ;;  %v3393_v3 = vrot.slane %v3391_v21, 4  ;;  %v6428_v20 = vrot.slane %v3400_v4, 5  ;;  %v3909_v43 = vunpack.c.l.b16 %v3855_v8 }
 0x21c   : > { %v4714_v44 = vrot.slane %v4698_v50, 9  ;;  %v3410_v4 = vshll.u32 %v6431_v16, 16 }
 0x21d   : > { %v4004_v13 = vpop.f32.mrf.mxu0  ;;  %v4145_v40 = vadd.f32 %v6337_v56, %v4111_v34  ;;  %v3396_v34 = vrot.slane %v3394_v9, 5  ;;  %v3407_v50 = vor.u32 %v3406_v38, %v6428_v20 }
 0x21e   : > { %v3606_v28 = vpop.f32.mrf.mxu3  ;;  %v2667_v19 = vpop.f32.mrf.mxu1 }
 0x21f   : > { %v3680_v60 = vadd.f32 %v3606_v28, %v3026_v7  ;;  %v4177_v39 = vmax.f32 %v4145_v40, 0.0  ;;  %v2517_v28 = vsel %vm5495_vm7, %v4714_v44, %v2516_v15  ;;  %v3397_v9 = vor.u32 %v3396_v34, %v3393_v3  ;;  %v6444_v15 = vld [vmem:[%s5309_s19 + $0xb8] sm:$0xf] }
 0x220   : > { %4956 = vmatmul.msk.bf16.gmra.mxu0 %vm675_vm4, %v3928_v29  ;;  %v5120_v29 = vld [vmem:[%s5309_s19 + $0xa4] sm:$0x1]  ;;  %v2568_v61 = vunpack.c.l.b16 %v2517_v28  ;;  %v3408_v44 = vrot.slane %v3407_v50, 4  ;;  %v3428_v34 = vshrl.u32 %v6444_v15, 16 }
 0x221   : > { %v4078_v49 = vadd.f32 %v4004_v13, %v3680_v60  ;;  %4209 = vxpose.xlu0.b32.cont [4/16] (narrow) %v4177_v39, 8  ;;  %v2954_v53 = vpop.f32.mrf.mxu2  ;;  %4730 = vmatmul.msk.bf16.gmra.mxu1 %vm675_vm4, %v2587_v10  ;;  %v2519_v7 = vrot.slane %v5120_v29, 5  ;;  %v3531_v13 = vpack.c.b16 %v3511_v62, %v3510_v23  ;;  %v2738_v23 = vadd.f32 %v2667_v19, %v5851_v41  ;;  %v4925_v29 = vld [vmem:[%s5309_s19 + $0xa8] sm:$0xe] }
 0x222   : > { %v3027_v55 = vadd.f32 %v2954_v53, %v2737_v54  ;;  %v4887_v54 = vld [vmem:[%s5309_s19 + $0xb4] sm:$0xf]  ;;  %v3929_v53 = vpack.c.b16 %v3909_v43, %v3908_v63  ;;  %v3398_v8 = vrot.slane %v3397_v9, 4  ;;  %v3424_v19 = vshll.u32 %v6444_v15, 16 }
 0x223   : > { %v4112_v57 = vmul.f32 %v6322_v58, %v4078_v49  ;;  %v2520_v59 = vsel %vm5495_vm7, %v2518_v25, %v2519_v7  ;;  %v3412_v25 = vrot.slane %v3410_v4, 5  ;;  %v3415_v7 = vshrl.u32 %v4887_v54, 16 }
 0x224   : > { %v2569_v49 = vunpack.c.l.b16 %v2520_v59  ;;  %v3418_v41 = vshll.u32 %v4887_v54, 16  ;;  %v4941_v63 = vrot.slane %v4925_v29, 9  ;;  %v3403_v9 = vsel %vm5321_vm3, %v3398_v8, %v6428_v20  ;;  %v6467_v54 = vld [vmem:[%s5309_s19 + $0xbc] sm:$0x1]  ;;  %v5011_v8 = vld [vmem:[%s5309_s19 + $0xa8] sm:$0xff] }
 0x225   : > { %v4006_v5 = vpop.f32.mrf.mxu0  ;;  %v4146_v40 = vadd.f32 %v6337_v56, %v4112_v57  ;;  %v6461_v4 = vrot.slane %v3424_v19, 5  ;;  %v3512_v29 = vunpack.c.l.b16 %v3403_v9 }
 0x226   : > { %v3608_v10 = vpop.f32.mrf.mxu3  ;;  %4843 = vmatmul.msk.bf16.gmra.mxu2 %vm675_vm4, %v5010_v52  ;;  %v2669_v21 = vpop.f32.mrf.mxu1  ;;  %v2588_v38 = vpack.c.b16 %v2569_v49, %v2568_v61  ;;  %v3420_v50 = vrot.slane %v3418_v41, 5  ;;  %v3861_v49 = vrot.slane %v6431_v16, 5  ;;  %v3434_v16 = vshll.u32 %v6467_v54, 16 }
 0x227   : > { %v3681_v60 = vadd.f32 %v3608_v10, %v3027_v55  ;;  %v4178_v39 = vmax.f32 %v4146_v40, 0.0  ;;  %v5121_v10 = vld [vmem:[%s5309_s19 + $0xac] sm:$0xf] }
 0x228   : > { %v2523_v43 = vrot.slane %v5121_v10, 5 }
 0x229   : > { %v4079_v1 = vadd.f32 %v4006_v5, %v3681_v60  ;;  %4210 = vxpose.xlu0.b32.cont [5/16] (narrow) %v4178_v39, 8  ;;  %v2957_v62 = vpop.f32.mrf.mxu2  ;;  %v3858_v5 = vrot.slane %v6411_v17, 5  ;;  %v3413_v60 = vsel %vm5321_vm3, %v3408_v44, %v3412_v25  ;;  %v4699_v39 = vld [vmem:[%s5309_s19 + $0xa8] sm:$0xe]  ;;  %v3417_v17 = vrot.slane %v3415_v7, 4 }
 0x22a   : > { %v3028_v3 = vadd.f32 %v2957_v62, %v2738_v23  ;;  %v2739_v62 = vadd.f32 %v2669_v21, %v5864_v31  ;;  %v3513_v7 = vunpack.c.l.b16 %v3413_v60 }
 0x22b   : > { %4908 = vmatmul.msk.bf16.gmra.mxu3 %vm675_vm4, %v3531_v13  ;;  %v4113_v52 = vmul.f32 %v6322_v58, %v4079_v1  ;;  %v3430_v1 = vrot.slane %v3428_v34, 4  ;;  %v3860_v20 = vrot.slane %v3858_v5, 4  ;;  %v3859_v31 = vsel %vm5495_vm7, %v4941_v63, %v3858_v5 }
 0x22c   : > { %v3421_v21 = vor.u32 %v3420_v50, %v3417_v17  ;;  %v3910_v9 = vunpack.c.l.b16 %v3859_v31  ;;  %v3436_v50 = vrot.slane %v3434_v16, 5 }
 0x22d   : > { %v4009_v55 = vpop.f32.mrf.mxu0  ;;  %v4147_v57 = vadd.f32 %v6337_v56, %v4113_v52  ;;  %v5122_v52 = vld [vmem:[%s5309_s19 + $0xb0] sm:$0x1]  ;;  %v3431_v19 = vor.u32 %v3430_v1, %v6461_v4 }
 0x22e   : > { %v3611_v13 = vpop.f32.mrf.mxu3  ;;  %v2672_v40 = vpop.f32.mrf.mxu1  ;;  %v2526_v44 = vrot.slane %v5122_v52, 5 }
 0x22f   : > { %v3682_v28 = vadd.f32 %v3611_v13, %v3028_v3  ;;  %v4179_v59 = vmax.f32 %v4147_v57, 0.0  ;;  %v2525_v3 = vrot.slane %v2523_v43, 4  ;;  %v3862_v57 = vsel %vm5495_vm7, %v3860_v20, %v3861_v49  ;;  %v4890_v20 = vld [vmem:[%s5309_s19 + $0xc0] sm:$0xf] }
 0x230   : > { %4957 = vmatmul.msk.bf16.gmra.mxu0 %vm675_vm4, %v3929_v53  ;;  %v4715_v53 = vrot.slane %v4699_v39, 9  ;;  %v3911_v60 = vunpack.c.l.b16 %v3862_v57  ;;  %v3422_v39 = vrot.slane %v3421_v21, 4  ;;  %v3432_v17 = vrot.slane %v3431_v19, 4  ;;  %v5123_v19 = vld [vmem:[%s5309_s19 + $0xb8] sm:$0xf] }
 0x231   : > { %v4080_v23 = vadd.f32 %v4009_v55, %v3682_v28  ;;  %4211 = vxpose.xlu0.b32.cont [6/16] (narrow) %v4179_v59, 8  ;;  %v2959_v61 = vpop.f32.mrf.mxu2  ;;  %4731 = vmatmul.msk.bf16.gmra.mxu1 %vm675_vm4, %v2588_v38  ;;  %v2527_v5 = vsel %vm5495_vm7, %v2525_v3, %v2526_v44  ;;  %v3532_v28 = vpack.c.b16 %v3513_v7, %v3512_v29  ;;  %v4926_v29 = vld [vmem:[%s5309_s19 + $0xb4] sm:$0xe]  ;;  %v3865_v7 = vrot.slane %v6444_v15, 5 }
 0x232   : > { %v3029_v25 = vadd.f32 %v2959_v61, %v2739_v62  ;;  %v2524_v10 = vsel %vm5495_vm7, %v4715_v53, %v2523_v43  ;;  %v2571_v61 = vunpack.c.l.b16 %v2527_v5  ;;  %v3930_v53 = vpack.c.b16 %v3911_v60, %v3910_v9  ;;  %v4700_v57 = vld [vmem:[%s5309_s19 + $0xb4] sm:$0xe] }
 0x233   : > { %v4114_v41 = vmul.f32 %v6322_v58, %v4080_v23  ;;  %v2740_v23 = vadd.f32 %v2672_v40, %v5878_v30  ;;  %v2570_v43 = vunpack.c.l.b16 %v2524_v10  ;;  %v3427_v3 = vsel %vm5321_vm3, %v3422_v39, %v6461_v4  ;;  %v6494_v40 = vld [vmem:[%s5309_s19 + $0xc4] sm:$0xf] }
 0x234   : > { %v3437_v30 = vsel %vm5321_vm3, %v3432_v17, %v3436_v50  ;;  %v2530_v16 = vrot.slane %v5123_v19, 5  ;;  %v3452_v10 = vshrl.u32 %v6494_v40, 16  ;;  %v3514_v5 = vunpack.c.l.b16 %v3427_v3  ;;  %v5012_v50 = vld [vmem:[%s5309_s19 + $0xb4] sm:$0xff] }
 0x235   : > { %v4011_v34 = vpop.f32.mrf.mxu0  ;;  %v4148_v55 = vadd.f32 %v6337_v56, %v4114_v41  ;;  %v3439_v41 = vshrl.u32 %v4890_v20, 16  ;;  %v4942_v15 = vrot.slane %v4926_v29, 9  ;;  %v3867_v39 = vrot.slane %v3865_v7, 4 }
 0x236   : > { %v3613_v38 = vpop.f32.mrf.mxu3  ;;  %4844 = vmatmul.msk.bf16.gmra.mxu2 %vm675_vm4, %v5011_v8  ;;  %v2674_v13 = vpop.f32.mrf.mxu1 }
 0x237   : > { %v3683_v63 = vadd.f32 %v3613_v38, %v3029_v25  ;;  %v4180_v59 = vmax.f32 %v4148_v55, 0.0  ;;  %v2589_v25 = vpack.c.b16 %v2571_v61, %v2570_v43  ;;  %v3448_v38 = vshll.u32 %v6494_v40, 16 }
 0x238   : > { %v2741_v9 = vadd.f32 %v2674_v13, %v5891_v48  ;;  %v3441_v17 = vrot.slane %v3439_v41, 4  ;;  %v6513_v48 = vld [vmem:[%s5309_s19 + $0xc8] sm:$0x1]  ;;  %v3866_v3 = vsel %vm5495_vm7, %v4942_v15, %v3865_v7 }
 0x239   : > { %v4081_v1 = vadd.f32 %v4011_v34, %v3683_v63  ;;  %4212 = vxpose.xlu0.b32.cont [7/16] (narrow) %v4180_v59, 8  ;;  %v2962_v62 = vpop.f32.mrf.mxu2  ;;  %v3442_v34 = vshll.u32 %v4890_v20, 16  ;;  %v3515_v63 = vunpack.c.l.b16 %v3437_v30  ;;  %v3458_v7 = vshll.u32 %v6513_v48, 16 }
 0x23a   : > { %v3030_v49 = vadd.f32 %v2962_v62, %v2740_v23  ;;  %v2532_v23 = vrot.slane %v2530_v16, 4  ;;  %v5124_v62 = vld [vmem:[%s5309_s19 + $0xbc] sm:$0x1] }
 0x23b   : > { %4909 = vmatmul.msk.bf16.gmra.mxu3 %vm675_vm4, %v3532_v28  ;;  %v4115_v8 = vmul.f32 %v6322_v58, %v4081_v1  ;;  %v3868_v28 = vrot.slane %v6467_v54, 5  ;;  %v4716_v1 = vrot.slane %v4700_v57, 9  ;;  %v2533_v43 = vrot.slane %v5124_v62, 5  ;;  %v6535_v62 = vld [vmem:[%s5309_s19 + $0xd0] sm:$0xf] }
 0x23c   : > { %v3444_v61 = vrot.slane %v3442_v34, 5  ;;  %v6510_v54 = vrot.slane %v3448_v38, 5 }
 0x23d   : > { %v4014_v52 = vpop.f32.mrf.mxu0  ;;  %v4149_v44 = vadd.f32 %v6337_v56, %v4115_v8  ;;  %v3454_v8 = vrot.slane %v3452_v10, 4  ;;  %v3869_v30 = vsel %vm5495_vm7, %v3867_v39, %v3868_v28  ;;  %v2531_v29 = vsel %vm5495_vm7, %v4716_v1, %v2530_v16  ;;  %v4927_v39 = vld [vmem:[%s5309_s19 + $0xc0] sm:$0xe] }
 0x23e   : > { %v3616_v31 = vpop.f32.mrf.mxu3  ;;  %v2677_v21 = vpop.f32.mrf.mxu1  ;;  %v2534_v41 = vsel %vm5495_vm7, %v2532_v23, %v2533_v43  ;;  %v3913_v57 = vunpack.c.l.b16 %v3869_v30  ;;  %v2572_v16 = vunpack.c.l.b16 %v2531_v29  ;;  %v3872_v1 = vrot.slane %v6494_v40, 5  ;;  %v4893_v23 = vld [vmem:[%s5309_s19 + $0xcc] sm:$0xf] }
 0x23f   : > { %v3684_v4 = vadd.f32 %v3616_v31, %v3030_v49  ;;  %v4181_v55 = vmax.f32 %v4149_v44, 0.0  ;;  %v3533_v44 = vpack.c.b16 %v3515_v63, %v3514_v5  ;;  %v3445_v31 = vor.u32 %v3444_v61, %v3441_v17 }
 0x240   : > { %4958 = vmatmul.msk.bf16.gmra.mxu0 %vm675_vm4, %v3930_v53  ;;  %v2742_v10 = vadd.f32 %v2677_v21, %v5907_v14  ;;  %v2573_v63 = vunpack.c.l.b16 %v2534_v41  ;;  %v3463_v40 = vshrl.u32 %v4893_v23, 16  ;;  %v3472_v29 = vshll.u32 %v6535_v62, 16 }
 0x241   : > { %v4082_v59 = vadd.f32 %v4014_v52, %v3684_v4  ;;  %4213 = vxpose.xlu0.b32.cont [8/16] (narrow) %v4181_v55, 8  ;;  %v2964_v60 = vpop.f32.mrf.mxu2  ;;  %4732 = vmatmul.msk.bf16.gmra.mxu1 %vm675_vm4, %v2589_v25  ;;  %v3455_v4 = vor.u32 %v3454_v8, %v6510_v54  ;;  %v3912_v55 = vunpack.c.l.b16 %v3866_v3  ;;  %v3446_v15 = vrot.slane %v3445_v31, 4 }
 0x242   : > { %v3031_v20 = vadd.f32 %v2964_v60, %v2741_v9  ;;  %v3460_v60 = vrot.slane %v3458_v7, 5  ;;  %v2590_v21 = vpack.c.b16 %v2573_v63, %v2572_v16  ;;  %v3476_v41 = vshrl.u32 %v6535_v62, 16  ;;  %v5013_v7 = vld [vmem:[%s5309_s19 + $0xc0] sm:$0xff] }
 0x243   : > { %v4116_v49 = vmul.f32 %v6322_v58, %v4082_v59  ;;  %v3456_v9 = vrot.slane %v3455_v4, 4  ;;  %v3931_v17 = vpack.c.b16 %v3913_v57, %v3912_v55  ;;  %v3451_v3 = vsel %vm5321_vm3, %v3446_v15, %v6510_v54 }
 0x244   : > { %v3874_v54 = vrot.slane %v3872_v1, 4  ;;  %v3875_v4 = vrot.slane %v6513_v48, 5  ;;  %v3516_v55 = vunpack.c.l.b16 %v3451_v3 }
 0x245   : > { %v4016_v13 = vpop.f32.mrf.mxu0  ;;  %v4150_v53 = vadd.f32 %v6337_v56, %v4116_v49  ;;  %v5125_v49 = vld [vmem:[%s5309_s19 + $0xc4] sm:$0xf]  ;;  %v3461_v30 = vsel %vm5321_vm3, %v3456_v9, %v3460_v60  ;;  %v3478_v9 = vrot.slane %v3476_v41, 4 }
 0x246   : > { %v3618_v52 = vpop.f32.mrf.mxu3  ;;  %4845 = vmatmul.msk.bf16.gmra.mxu2 %vm675_vm4, %v5012_v50  ;;  %v2679_v25 = vpop.f32.mrf.mxu1  ;;  %v2537_v8 = vrot.slane %v5125_v49, 5  ;;  %v3517_v63 = vunpack.c.l.b16 %v3461_v30 }
 0x247   : > { %v3685_v19 = vadd.f32 %v3618_v52, %v3031_v20  ;;  %v4182_v34 = vmax.f32 %v4150_v53, 0.0  ;;  %v4943_v20 = vrot.slane %v4927_v39, 9  ;;  %v4701_v52 = vld [vmem:[%s5309_s19 + $0xc0] sm:$0xe]  ;;  %v3876_v39 = vsel %vm5495_vm7, %v3874_v54, %v3875_v4 }
 0x248   : > { %v4717_v57 = vrot.slane %v4701_v52, 9 }
 0x249   : > { %v4083_v38 = vadd.f32 %v4016_v13, %v3685_v19  ;;  %4214 = vxpose.xlu0.b32.cont [9/16] (narrow) %v4182_v34, 8  ;;  %v2967_v5 = vpop.f32.mrf.mxu2  ;;  %v2743_v19 = vadd.f32 %v2679_v25, %v5932_v51  ;;  %v3873_v51 = vsel %vm5495_vm7, %v4943_v20, %v3872_v1  ;;  %v3465_v25 = vrot.slane %v3463_v40, 4  ;;  %v6703_v40 = vld [vmem:[#allocation5_spill] sm:$0xff] }
 0x24a   : > { %v3032_v28 = vadd.f32 %v2967_v5, %v2742_v10  ;;  %v5126_v10 = vld [vmem:[%s5309_s19 + $0xc8] sm:$0x1]  ;;  %v3914_v49 = vunpack.c.l.b16 %v3873_v51 }
 0x24b   : > { %4910 = vmatmul.msk.bf16.gmra.mxu3 %vm675_vm4, %v3533_v44  ;;  %v4117_v59 = vmul.f32 %v6322_v58, %v4083_v38  ;;  %v3466_v44 = vshll.u32 %v4893_v23, 16  ;;  %v2539_v38 = vrot.slane %v2537_v8, 4  ;;  %v2540_v5 = vrot.slane %v5126_v10, 5  ;;  %v4928_v10 = vld [vmem:[%s5309_s19 + $0xcc] sm:$0xe] }
 0x24d   : > { %v4019_v50 = vpop.f32.mrf.mxu0  ;;  %v4151_v14 = vadd.f32 %v6337_v56, %v4117_v59  ;;  %v3474_v59 = vrot.slane %v3472_v29, 5  ;;  %v2541_v1 = vsel %vm5495_vm7, %v2539_v38, %v2540_v5 }
 0x24e   : > { %v3621_v43 = vpop.f32.mrf.mxu3  ;;  %v2682_v61 = vpop.f32.mrf.mxu1 }
 0x24f   : > { %v3686_v13 = vadd.f32 %v3621_v43, %v3032_v28  ;;  %v4183_v53 = vmax.f32 %v4151_v14, 0.0  ;;  %v3468_v28 = vrot.slane %v3466_v44, 5  ;;  %v3534_v43 = vpack.c.b16 %v3517_v63, %v3516_v55 }
 0x250   : > { %4959 = vmatmul.msk.bf16.gmra.mxu0 %vm675_vm4, %v3931_v17  ;;  %v4895_v17 = vld [vmem:[%s5309_s19 + $0xd4] sm:$0x1]  ;;  %v3479_v3 = vor.u32 %v3478_v9, %v3474_v59  ;;  %v2744_v44 = vadd.f32 %v2682_v61, %v6703_v40  ;;  %v3879_v61 = vrot.slane %v6535_v62, 5 }
 0x251   : > { %v4084_v31 = vadd.f32 %v4019_v50, %v3686_v13  ;;  %4215 = vxpose.xlu0.b32.cont [10/16] (narrow) %v4183_v53, 8  ;;  %v2969_v34 = vpop.f32.mrf.mxu2  ;;  %4733 = vmatmul.msk.bf16.gmra.mxu1 %vm675_vm4, %v2590_v21  ;;  %v2538_v21 = vsel %vm5495_vm7, %v4717_v57, %v2537_v8  ;;  %v3915_v13 = vunpack.c.l.b16 %v3876_v39  ;;  %v3469_v53 = vor.u32 %v3468_v28, %v3465_v25 }
 0x252   : > { %v3033_v16 = vadd.f32 %v2969_v34, %v2743_v19  ;;  %v3482_v30 = vshll.u32 %v4895_v17, 16  ;;  %v2574_v41 = vunpack.c.l.b16 %v2538_v21  ;;  %v3480_v4 = vrot.slane %v3479_v3, 4  ;;  %v5014_v21 = vld [vmem:[%s5309_s19 + $0xcc] sm:$0xff]  ;;  %s175_s19 = sand.u32 1, %s5191_s13  }
 0x253   : > { %v4118_v15 = vmul.f32 %v6322_v58, %v4084_v31  ;;  %v2575_v31 = vunpack.c.l.b16 %v2541_v1  ;;  %v3932_v34 = vpack.c.b16 %v3915_v13, %v3914_v49  ;;  %v3470_v54 = vrot.slane %v3469_v53, 4  ;;  %s4376_s21 = sshll.u32 %s175_s19, 4  ;;  %s4273_s5 = scalar_lea.sflag [#allocation3], %s175_s19 }
 0x254   : > { %v4944_v28 = vrot.slane %v4928_v10, 9  ;;  %v3881_v62 = vrot.slane %v3879_v61, 4  ;;  %s177_s23 = scalar_lea.vmem [#allocation2], %s4376_s21 }
 0x255   : > { %v4021_v60 = vpop.f32.mrf.mxu0  ;;  %v4152_v48 = vadd.f32 %v6337_v56, %v4118_v15  ;;  %v2591_v38 = vpack.c.b16 %v2575_v31, %v2574_v41  ;;  %v3475_v51 = vsel %vm5321_vm3, %v3470_v54, %v3474_v59  ;;  %s4288_s30 = sshll.u32 %s177_s23, 4  ;;  %s4289_s30 = int_to_ptr.vmem [resolvable:$true] %s4288_s30 }
 0x256   : > { %v3623_v50 = vpop.f32.mrf.mxu3  ;;  %4846 = vmatmul.msk.bf16.gmra.mxu2 %vm675_vm4, %v5013_v7  ;;  %v2684_v14 = vpop.f32.mrf.mxu1  ;;  %v3484_v7 = vrot.slane %v3482_v30, 5  ;;  %v3880_v49 = vsel %vm5495_vm7, %v4944_v28, %v3879_v61 }
 0x257   : > { %v3687_v23 = vadd.f32 %v3623_v50, %v3033_v16  ;;  %v4184_v20 = vmax.f32 %v4152_v48, 0.0  ;;  %v3882_v50 = vrot.slane %v4895_v17, 5 }
 0x258   : > { %v3485_v25 = vsel %vm5321_vm3, %v3480_v4, %v3484_v7 }
 0x259   : > { %v4085_v52 = vadd.f32 %v4021_v60, %v3687_v23  ;;  %4216 = vxpose.xlu0.b32.cont [11/16] (narrow) %v4184_v20, 8  ;;  %v2972_v29 = vpop.f32.mrf.mxu2  ;;  %v6704_v60 = vld [vmem:[#allocation6_spill] sm:$0xff]  ;;  %v3518_v23 = vunpack.c.l.b16 %v3475_v51 }
 0x25a   : > { %v3034_v8 = vadd.f32 %v2972_v29, %v2744_v44  ;;  %v2745_v48 = vadd.f32 %v2684_v14, %v6704_v60  ;;  %v3883_v14 = vsel %vm5495_vm7, %v3881_v62, %v3882_v50 }
 0x25b   : > { %4911 = vmatmul.msk.bf16.gmra.mxu3 %vm675_vm4, %v3534_v43  ;;  %v4119_v19 = vmul.f32 %v6322_v58, %v4085_v52  ;;  %v3519_v43 = vunpack.c.l.b16 %v3485_v25  ;;  %v3916_v52 = vunpack.c.l.b16 %v3880_v49  ;;  %v3917_v40 = vunpack.c.l.b16 %v3883_v14 }
 0x25d   : > { %v4024_v55 = vpop.f32.mrf.mxu0  ;;  %v4153_v57 = vadd.f32 %v6337_v56, %v4119_v19  ;;  %v3535_v3 = vpack.c.b16 %v3519_v43, %v3518_v23 }
 0x25e   : > { %v3626_v5 = vpop.f32.mrf.mxu3  ;;  %v2687_v16 = vpop.f32.mrf.mxu1 }
 0x25f   : > { %v3688_v63 = vadd.f32 %v3626_v5, %v3034_v8  ;;  %v4185_v15 = vmax.f32 %v4153_v57, 0.0  ;;  %v2746_v29 = vadd.f32 %v2687_v16, %v5976_v6  ;;  %v3933_v8 = vpack.c.b16 %v3917_v40, %v3916_v52 }
 0x260   : > { %4960 = vmatmul.msk.bf16.gmra.mxu0 %vm675_vm4, %v3932_v34 }
 0x261   : > { %v4086_v9 = vadd.f32 %v4024_v55, %v3688_v63  ;;  %4217 = vxpose.xlu0.b32.cont [12/16] (narrow) %v4185_v15, 8  ;;  %v2974_v39 = vpop.f32.mrf.mxu2  ;;  %4734 = vmatmul.msk.bf16.gmra.mxu1 %vm675_vm4, %v2591_v38 }
 0x262   : > { %v3035_v1 = vadd.f32 %v2974_v39, %v2745_v48 }
 0x263   : > { %v4120_v20 = vmul.f32 %v6322_v58, %v4086_v9 }
 0x265   : > { %v4026_v59 = vpop.f32.mrf.mxu0  ;;  %v4154_v36 = vadd.f32 %v6337_v56, %v4120_v20 }
 0x266   : > { %v3628_v13 = vpop.f32.mrf.mxu3  ;;  %4847 = vmatmul.msk.bf16.gmra.mxu2 %vm675_vm4, %v5014_v21  ;;  %v2689_v53 = vpop.f32.mrf.mxu1 }
 0x267   : > { %v3689_v17 = vadd.f32 %v3628_v13, %v3035_v1  ;;  %v4186_v30 = vmax.f32 %v4154_v36, 0.0  ;;  %v2747_v6 = vadd.f32 %v2689_v53, %v5995_v37 }
 0x269   : > { %v4087_v44 = vadd.f32 %v4026_v59, %v3689_v17  ;;  %4218 = vxpose.xlu0.b32.cont [13/16] (narrow) %v4186_v30, 8  ;;  %v2977_v41 = vpop.f32.mrf.mxu2 }
 0x26a   : > { %v3036_v31 = vadd.f32 %v2977_v41, %v2746_v29 }
 0x26b   : > { %4912 = vmatmul.msk.bf16.gmra.mxu3 %vm675_vm4, %v3535_v3  ;;  %v4121_v18 = vmul.f32 %v6322_v58, %v4087_v44 }
 0x26d   : > { %v4029_v19 = vpop.f32.mrf.mxu0  ;;  %v4155_v34 = vadd.f32 %v6337_v56, %v4121_v18 }
 0x26e   : > { %v3631_v54 = vpop.f32.mrf.mxu3  ;;  %v2692_v4 = vpop.f32.mrf.mxu1 }
 0x26f   : > { %v3690_v7 = vadd.f32 %v3631_v54, %v3036_v31  ;;  %v4187_v55 = vmax.f32 %v4155_v34, 0.0  ;;  %v2748_v9 = vadd.f32 %v2692_v4, %v6015_v42 }
 0x270   : > { %4961 = vmatmul.msk.bf16.gmra.mxu0 %vm675_vm4, %v3933_v8 }
 0x271   : > { %v4088_v57 = vadd.f32 %v4029_v19, %v3690_v7  ;;  %4219 = vxpose.xlu0.b32.cont [14/16] (narrow) %v4187_v55, 8  ;;  %v2979_v38 = vpop.f32.mrf.mxu2 }
 0x272   : > { %v3037_v10 = vadd.f32 %v2979_v38, %v2747_v6 }
 0x273   : > { %v4122_v61 = vmul.f32 %v6322_v58, %v4088_v57 }
 0x275   : > { %v4031_v5 = vpop.f32.mrf.mxu0  ;;  %v4156_v16 = vadd.f32 %v6337_v56, %v4122_v61 }
 0x276   : > { %v3633_v63 = vpop.f32.mrf.mxu3  ;;  %v2694_v15 = vpop.f32.mrf.mxu1 }
 0x277   : > { %v3691_v51 = vadd.f32 %v3633_v63, %v3037_v10  ;;  %v4188_v25 = vmax.f32 %v4156_v16, 0.0  ;;  %v2749_v20 = vadd.f32 %v2694_v15, %v6034_v24 }
 0x279   : > { %v4089_v28 = vadd.f32 %v4031_v5, %v3691_v51  ;;  %4220 = vxpose.xlu0.b32.cont [15/16] (narrow) %v4188_v25, 8  ;;  %v2982_v60 = vpop.f32.mrf.mxu2  ;;  %v6615_v25 = vld [vmem:[%s6692_s2 + $0x1] ss:$0 sm:$0xff] }
 0x27a   : > { %v3038_v48 = vadd.f32 %v2982_v60, %v2748_v9 }
 0x27b   : > { %v4123_v37 = vmul.f32 %v6322_v58, %v4089_v28 }
 0x27d   : > { %v4034_v39 = vpop.f32.mrf.mxu0  ;;  %v4157_v62 = vadd.f32 %v6337_v56, %v4123_v37 }
 0x27e   : > { %v3636_v50 = vpop.f32.mrf.mxu3  ;;  %v2697_v21 = vpop.f32.mrf.mxu1 }
 0x27f   : > { %v3692_v1 = vadd.f32 %v3636_v50, %v3038_v48  ;;  %v4189_v23 = vmax.f32 %v4157_v62, 0.0  ;;  %v2750_v52 = vadd.f32 %v2697_v21, %v6054_v12  ;;  %v6606_v12 = vld [vmem:[%s6692_s2] ss:$0 sm:$0xff] }
 0x281   : > { %v4090_v43 = vadd.f32 %v4034_v39, %v3692_v1  ;;  %4221 = vxpose.xlu0.b32.end [16/16] (narrow) %v4189_v23, 8  ;;  %v2984_v59 = vpop.f32.mrf.mxu2 }
 0x282   : > { %v3039_v36 = vadd.f32 %v2984_v59, %v2749_v20 }
 0x283   : > { %v4124_v42 = vmul.f32 %v6322_v58, %v4090_v43 }
 0x285   : > { %v4036_v49 = vpop.f32.mrf.mxu0  ;;  %v4158_v14 = vadd.f32 %v6337_v56, %v4124_v42 }
 0x286   : > { %v3638_v13 = vpop.f32.mrf.mxu3  ;;  %v2699_v53 = vpop.f32.mrf.mxu1 }
 0x287   : > { %v3693_v17 = vadd.f32 %v3638_v13, %v3039_v36  ;;  %v4190_v3 = vmax.f32 %v4158_v14, 0.0  ;;  %v2751_v54 = vadd.f32 %v2699_v53, %v6073_v26 }
 0x289   : > { %v4091_v30 = vadd.f32 %v4036_v49, %v3693_v17  ;;  %4238 = vxpose.xlu1.b32.start [1/16] (narrow) %v4190_v3, 8  ;;  %v2987_v40 = vpop.f32.mrf.mxu2 }
 0x28a   : > { %v3040_v44 = vadd.f32 %v2987_v40, %v2750_v52 }
 0x28b   : > { %v4125_v24 = vmul.f32 %v6322_v58, %v4091_v30 }
 0x28d   : > { %v4039_v29 = vpop.f32.mrf.mxu0  ;;  %v4159_v41 = vadd.f32 %v6337_v56, %v4125_v24 }
 0x28e   : > { %v3641_v31 = vpop.f32.mrf.mxu3  ;;  %v2702_v18 = vpop.f32.mrf.mxu1 }
 0x28f   : > { %v3694_v8 = vadd.f32 %v3641_v31, %v3040_v44  ;;  %v4191_v19 = vmax.f32 %v4159_v41, 0.0  ;;  %v2752_v26 = vadd.f32 %v2702_v18, %v6093_v0 }
 0x291   : > { %v4092_v34 = vadd.f32 %v4039_v29, %v3694_v8  ;;  %4239 = vxpose.xlu1.b32.cont [2/16] (narrow) %v4191_v19, 8  ;;  %v2989_v4 = vpop.f32.mrf.mxu2 }
 0x292   : > { %v3041_v7 = vadd.f32 %v2989_v4, %v2751_v54 }
 0x293   : > { %v4126_v58 = vmul.f32 %v6606_v12, %v4092_v34 }
 0x295   : > { %v4041_v55 = vpop.f32.mrf.mxu0  ;;  %v4160_v57 = vadd.f32 %v6337_v56, %v4126_v58 }
 0x296   : > { %v3643_v6 = vpop.f32.mrf.mxu3  ;;  %v2704_v38 = vpop.f32.mrf.mxu1 }
 0x297   : > { %v3695_v10 = vadd.f32 %v3643_v6, %v3041_v7  ;;  %v4192_v61 = vmax.f32 %v4160_v57, 0.0  ;;  %v2753_v0 = vadd.f32 %v2704_v38, %v6112_v32 }
 0x299   : > { %v4093_v5 = vadd.f32 %v4041_v55, %v3695_v10  ;;  %4240 = vxpose.xlu1.b32.cont [3/16] (narrow) %v4192_v61, 8  ;;  %v2992_v16 = vpop.f32.mrf.mxu2 }
 0x29a   : > { %v3042_v63 = vadd.f32 %v2992_v16, %v2752_v26 }
 0x29b   : > { %v4127_v15 = vmul.f32 %v6606_v12, %v4093_v5 }
 0x29d   : > { %v4044_v51 = vpop.f32.mrf.mxu0  ;;  %v4161_v56 = vadd.f32 %v6615_v25, %v4127_v15 }
 0x29e   : > { %v3646_v28 = vpop.f32.mrf.mxu3  ;;  %v2707_v9 = vpop.f32.mrf.mxu1 }
 0x29f   : > { %v3696_v60 = vadd.f32 %v3646_v28, %v3042_v63  ;;  %v4193_v48 = vmax.f32 %v4161_v56, 0.0  ;;  %v2754_v42 = vadd.f32 %v2707_v9, %v6132_v27 }
 0x2a1   : > { %v4094_v37 = vadd.f32 %v4044_v51, %v3696_v60  ;;  %4241 = vxpose.xlu1.b32.cont [4/16] (narrow) %v4193_v48, 8  ;;  %v2994_v39 = vpop.f32.mrf.mxu2 }
 0x2a2   : > { %v3043_v62 = vadd.f32 %v2994_v39, %v2753_v0 }
 0x2a3   : > { %v4128_v50 = vmul.f32 %v6606_v12, %v4094_v37 }
 0x2a5   : > { %v4046_v21 = vpop.f32.mrf.mxu0  ;;  %v4162_v1 = vadd.f32 %v6615_v25, %v4128_v50 }
 0x2a6   : > { %v3648_v23 = vpop.f32.mrf.mxu3  ;;  %v2709_v43 = vpop.f32.mrf.mxu1 }
 0x2a7   : > { %v3697_v20 = vadd.f32 %v3648_v23, %v3043_v62  ;;  %v4194_v59 = vmax.f32 %v4162_v1, 0.0  ;;  %v2755_v44 = vadd.f32 %v2709_v43, %v6151_v45 }
 0x2a9   : > { %v4095_v36 = vadd.f32 %v4046_v21, %v3697_v20  ;;  %4242 = vxpose.xlu1.b32.cont [5/16] (narrow) %v4194_v59, 8  ;;  %v2997_v49 = vpop.f32.mrf.mxu2 }
 0x2aa   : > { %v3044_v14 = vadd.f32 %v2997_v49, %v2754_v42 }
 0x2ab   : > { %v4129_v32 = vmul.f32 %v6606_v12, %v4095_v36 }
 0x2ad   : > { %v4049_v13 = vpop.f32.mrf.mxu0  ;;  %v4163_v53 = vadd.f32 %v6615_v25, %v4129_v32 }
 0x2ae   : > { %v3651_v17 = vpop.f32.mrf.mxu3  ;;  %v2712_v3 = vpop.f32.mrf.mxu1 }
 0x2af   : > { %v3698_v30 = vadd.f32 %v3651_v17, %v3044_v14  ;;  %v4195_v52 = vmax.f32 %v4163_v53, 0.0  ;;  %v2756_v4 = vadd.f32 %v2712_v3, %v6171_v2 }
 0x2b1   : > { %v4096_v40 = vadd.f32 %v4049_v13, %v3698_v30  ;;  %4243 = vxpose.xlu1.b32.cont [6/16] (narrow) %v4195_v52, 8  ;;  %v2999_v24 = vpop.f32.mrf.mxu2 }
 0x2b2   : > { %v3045_v29 = vadd.f32 %v2999_v24, %v2755_v44 }
 0x2b3   : > { %v4130_v27 = vmul.f32 %v6606_v12, %v4096_v40 }
 0x2b5   : > { %v4051_v41 = vpop.f32.mrf.mxu0  ;;  %v4164_v31 = vadd.f32 %v6615_v25, %v4130_v27 }
 0x2b6   : > { %v3653_v18 = vpop.f32.mrf.mxu3  ;;  %v2714_v8 = vpop.f32.mrf.mxu1 }
 0x2b7   : > { %v3699_v19 = vadd.f32 %v3653_v18, %v3045_v29  ;;  %v4196_v34 = vmax.f32 %v4164_v31, 0.0  ;;  %v2757_v26 = vadd.f32 %v2714_v8, %v6190_v46 }
 0x2b9   : > { %v4097_v54 = vadd.f32 %v4051_v41, %v3699_v19  ;;  %4244 = vxpose.xlu1.b32.cont [7/16] (narrow) %v4196_v34, 8  ;;  %v3002_v7 = vpop.f32.mrf.mxu2 }
 0x2ba   : > { %v3046_v58 = vadd.f32 %v3002_v7, %v2756_v4 }
 0x2bb   : > { %v4131_v45 = vmul.f32 %v6606_v12, %v4097_v54 }
 0x2bd   : > { %v4054_v55 = vpop.f32.mrf.mxu0  ;;  %v4165_v57 = vadd.f32 %v6615_v25, %v4131_v45 }
 0x2be   : > { %v3656_v6 = vpop.f32.mrf.mxu3  ;;  %v2717_v38 = vpop.f32.mrf.mxu1 }
 0x2bf   : > { %v3700_v10 = vadd.f32 %v3656_v6, %v3046_v58  ;;  %v4197_v61 = vmax.f32 %v4165_v57, 0.0  ;;  %v2758_v37 = vadd.f32 %v2717_v38, %v6210_v33  ;;  %v6705_v57 = vld [vmem:[#allocation7_spill] sm:$0xff] }
 0x2c1   : > { %v4098_v5 = vadd.f32 %v4054_v55, %v3700_v10  ;;  %4245 = vxpose.xlu1.b32.cont [8/16] (narrow) %v4197_v61, 8  ;;  %v3004_v16 = vpop.f32.mrf.mxu2 }
 0x2c2   : > { %v3047_v63 = vadd.f32 %v3004_v16, %v2757_v26 }
 0x2c3   : > { %v4132_v2 = vmul.f32 %v6606_v12, %v4098_v5 }
 0x2c5   : > { %v4056_v15 = vpop.f32.mrf.mxu0  ;;  %v4166_v51 = vadd.f32 %v6615_v25, %v4132_v2 }
 0x2c6   : > { %v3658_v56 = vpop.f32.mrf.mxu3  ;;  %v2719_v28 = vpop.f32.mrf.mxu1 }
 0x2c7   : > { %v3701_v9 = vadd.f32 %v3658_v56, %v3047_v63  ;;  %v4198_v60 = vmax.f32 %v4166_v51, 0.0  ;;  %v2759_v59 = vadd.f32 %v2719_v28, %v6229_v47 }
 0x2c9   : > { %v4099_v48 = vadd.f32 %v4056_v15, %v3701_v9  ;;  %4246 = vxpose.xlu1.b32.cont [9/16] (narrow) %v4198_v60, 8  ;;  %v3007_v0 = vpop.f32.mrf.mxu2 }
 0x2ca   : > { %v3048_v39 = vadd.f32 %v3007_v0, %v2758_v37 }
 0x2cb   : > { %v4133_v46 = vmul.f32 %v6606_v12, %v4099_v48 }
 0x2cd   : > { %v4059_v62 = vpop.f32.mrf.mxu0  ;;  %v4167_v50 = vadd.f32 %v6615_v25, %v4133_v46 }
 0x2ce   : > { %v3661_v21 = vpop.f32.mrf.mxu3  ;;  %v2722_v43 = vpop.f32.mrf.mxu1 }
 0x2cf   : > { %v3702_v1 = vadd.f32 %v3661_v21, %v3048_v39  ;;  %v4199_v23 = vmax.f32 %v4167_v50, 0.0  ;;  %v2760_v3 = vadd.f32 %v2722_v43, %v6249_v22  ;;  %v4222_v21 = vpop.trf.xlu0 }
 0x2d0   : > { %4270 = vst [vmem:[%s177_s23] sm:$0xff] %v4222_v21 }
 0x2d1   : > { %v4100_v20 = vadd.f32 %v4059_v62, %v3702_v1  ;;  %4247 = vxpose.xlu1.b32.cont [10/16] (narrow) %v4199_v23, 8  ;;  %v3009_v36 = vpop.f32.mrf.mxu2 }
 0x2d2   : > { %v3049_v42 = vadd.f32 %v3009_v36, %v2759_v59 }
 0x2d3   : > { %v4134_v33 = vmul.f32 %v6606_v12, %v4100_v20 }
 0x2d5   : > { %v4061_v49 = vpop.f32.mrf.mxu0  ;;  %v4168_v14 = vadd.f32 %v6615_v25, %v4134_v33 }
 0x2d6   : > { %v3663_v32 = vpop.f32.mrf.mxu3  ;;  %v2724_v52 = vpop.f32.mrf.mxu1 }
 0x2d7   : > { %v3703_v13 = vadd.f32 %v3663_v32, %v3049_v42  ;;  %v4200_v53 = vmax.f32 %v4168_v14, 0.0  ;;  %v2761_v18 = vadd.f32 %v2724_v52, %v6266_v11 }
 0x2d9   : > { %v4101_v17 = vadd.f32 %v4061_v49, %v3703_v13  ;;  %4248 = vxpose.xlu1.b32.cont [11/16] (narrow) %v4200_v53, 8  ;;  %v3012_v30 = vpop.f32.mrf.mxu2 }
 0x2da   : > { %v3050_v40 = vadd.f32 %v3012_v30, %v2760_v3 }
 0x2db   : > { %v4135_v47 = vmul.f32 %v6606_v12, %v4101_v17 }
 0x2dd   : > { %v4064_v44 = vpop.f32.mrf.mxu0  ;;  %v4169_v24 = vadd.f32 %v6615_v25, %v4135_v47 }
 0x2de   : > { %v3666_v29 = vpop.f32.mrf.mxu3  ;;  %v2727_v34 = vpop.f32.mrf.mxu1 }
 0x2df   : > { %v3704_v27 = vadd.f32 %v3666_v29, %v3050_v40  ;;  %v4201_v41 = vmax.f32 %v4169_v24, 0.0  ;;  %v2762_v6 = vadd.f32 %v2727_v34, %v6705_v57 }
 0x2e1   : > { %v4102_v31 = vadd.f32 %v4064_v44, %v3704_v27  ;;  %4249 = vxpose.xlu1.b32.cont [12/16] (narrow) %v4201_v41, 8  ;;  %v3014_v8 = vpop.f32.mrf.mxu2 }
 0x2e2   : > { %v3051_v19 = vadd.f32 %v3014_v8, %v2761_v18 }
 0x2e3   : > { %v4136_v22 = vmul.f32 %v6606_v12, %v4102_v31 }
 0x2e5   : > { %v4066_v54 = vpop.f32.mrf.mxu0  ;;  %v4170_v4 = vadd.f32 %v6615_v25, %v4136_v22 }
 0x2e6   : > { %v3668_v7 = vpop.f32.mrf.mxu3  ;;  %v2729_v61 = vpop.f32.mrf.mxu1 }
 0x2e7   : > { %v3705_v58 = vadd.f32 %v3668_v7, %v3051_v19  ;;  %v4202_v45 = vmax.f32 %v4170_v4, 0.0  ;;  %v2763_v51 = vadd.f32 %v2729_v61, %v6311_v35 }
 0x2e9   : > { %v4103_v55 = vadd.f32 %v4066_v54, %v3705_v58  ;;  %4250 = vxpose.xlu1.b32.cont [13/16] (narrow) %v4202_v45, 8  ;;  %v3017_v38 = vpop.f32.mrf.mxu2 }
 0x2ea   : > { %v3052_v10 = vadd.f32 %v3017_v38, %v2762_v6 }
 0x2eb   : > { %v4137_v11 = vmul.f32 %v6606_v12, %v4103_v55 }
 0x2ed   : > { %v4171_v5 = vadd.f32 %v6615_v25, %v4137_v11  ;;  %v4069_v26 = vpop.f32.mrf.mxu0 }
 0x2ee   : > { %v3671_v16 = vpop.f32.mrf.mxu3 }
 0x2ef   : > { %v3706_v63 = vadd.f32 %v3671_v16, %v3052_v10  ;;  %v4203_v2 = vmax.f32 %v4171_v5, 0.0 }
 0x2f1   : > { %v4104_v15 = vadd.f32 %v4069_v26, %v3706_v63  ;;  %4251 = vxpose.xlu1.b32.cont [14/16] (narrow) %v4203_v2, 8  ;;  %v3019_v56 = vpop.f32.mrf.mxu2 }
 0x2f2   : > { %v3053_v28 = vadd.f32 %v3019_v56, %v2763_v51 }
 0x2f3   : > { %v4138_v9 = vmul.f32 %v6606_v12, %v4104_v15 }
 0x2f5   : > { %v4172_v60 = vadd.f32 %v6615_v25, %v4138_v9  ;;  %v4071_v39 = vpop.f32.mrf.mxu0 }
 0x2f6   : > { %v3673_v48 = vpop.f32.mrf.mxu3 }
 0x2f7   : > { %v3707_v37 = vadd.f32 %v3673_v48, %v3053_v28  ;;  %v4204_v0 = vmax.f32 %v4172_v60, 0.0 }
 0x2f9   : > { %v4105_v46 = vadd.f32 %v4071_v39, %v3707_v37  ;;  %4252 = vxpose.xlu1.b32.cont [15/16] (narrow) %v4204_v0, 8 }
 0x2fb   : > { %v4139_v62 = vmul.f32 %v6606_v12, %v4105_v46 }
 0x2fd   : > { %v4173_v50 = vadd.f32 %v6615_v25, %v4139_v62 }
 0x2ff   : > { %v4205_v35 = vmax.f32 %v4173_v50, 0.0 }
 0x301   : > { %4253 = vxpose.xlu1.b32.end [16/16] (narrow) %v4205_v35, 8 }
 0x32d   : > { %v4254_v12 = vpop.trf.xlu1 }
 0x32e   : > { %4271 = vst [vmem:[%s177_s23 + $0x8] sm:$0xff] %v4254_v12 }
 0x32f   : > { %5156 = shalt.err (!%p5153_p5)
}
 0x330   : > { %5020 = dma.vmem_to_hbm [thread:$0]  (%p5269_p4), %s4289_s30, 256, %s4291_s4, %s4273_s5  }
 0x331 PF: > { %p5026_p6 = scmp.ge.s32.totalorder %s5207_s17, 2  ;;  %s4302_s18 = sand.u32 1, %s5187_s12  }
 0x332   : > { %s4303_s19 = scalar_lea.sflag [#allocation3], %s4302_s18 }
 0x333   : > { %p5023_p7 = pnand %p5026_p6, %p5276_p8 }
 0x335   : > { %p5024_p9 = pneg %p5023_p7 }
 0x337   : > { %5182 = dma.done.wait (%p5024_p9), %s4303_s19, 256  }
 0x338   : > { %5184 = vsyncadd (%p5024_p9), %s4303_s19, 4294967040  ;;  %s16_s17 = sadd.s32 1, %s5207_s17   ;;  %s6706_s12 = smov %s5191_s13 }
 0x339   : > { %p13_p10 = scmp.ge.s32.totalorder %s16_s17, 4   ;;  %s6707_s13 = smov %s5195_s14 }
 0x33a   : > { %s6708_s14 = smov %s5282_s25  ;;  %s6709_s15 = smov %s5203_s16 }
 0x33b   : > { %s6710_s16 = smov %s6712_s20  ;;  %15 = sbr.rel (!%p13_p10) target bundleno = 4 (0x4), region = 78 }
 0x340   :  { %4309 = vsyncpa [#allocation3], 1 }
 0x341   :  { %4311 = vsyncpa [#allocation3 + $0x1], 1 }

</bundles_post_ra>
